<compile_context>
chip_gen: v6e
topology: v6e:2x2x1
jax: 0.10.0
libtpu: 0.0.40
codegen_flags: <defaults>
</compile_context>

<pallas_src>
import functools
from typing import NamedTuple, Tuple

import numpy as np
import jax
import jax.numpy as jnp
from jax import lax
from jax.experimental import pallas as pl
from jax.experimental.pallas import tpu as pltpu


_VMEM_LIMIT = 32 * 1024 * 1024   # scoped-VMEM budget: safe on v5e/v6e and v7x


def _pick_chunk(total, target):
    """Largest multiple of 8 that divides `total` and is <= target (else total)."""
    cand = min(target, total) // 8 * 8
    while cand >= 8:
        if total % cand == 0:
            return cand
        cand -= 8
    return total


# ----------------------------- stage 1 kernel -------------------------------
# All 1x1 convs + folded BN (+selective ReLU), input transpose folded in.

def _stage1_kernel(x_ref, w_ref, s_ref, t_ref, m_ref, o_ref):
    # x_ref: (1, Cin, RT) f32 channel-first rows; w_ref: (Cin, Ctot) bf16.
    x = x_ref[0].astype(jnp.bfloat16)
    # transposed-LHS dot == fused (C,T*V)->(T*V,C) transpose + matmul on the MXU
    y = lax.dot_general(x, w_ref[...], (((0,), (0,)), ((), ())),
                        preferred_element_type=jnp.float32)        # (RT, Ctot)
    y = y * s_ref[...] + t_ref[...]                                 # folded BN (f32)
    y = jnp.where(m_ref[...] > 0.5, jnp.maximum(y, 0.0), y)         # per-column ReLU
    o_ref[0] = y.astype(o_ref.dtype)


@functools.lru_cache(maxsize=None)
def _stage1_call(n, cin, tv, ctot, rt):
    return pl.pallas_call(
        _stage1_kernel,
        grid=(n, pl.cdiv(tv, rt)),
        in_specs=[pl.BlockSpec((1, cin, rt), lambda b, r: (b, 0, r)),
                  pl.BlockSpec((cin, ctot), lambda b, r: (0, 0)),
                  pl.BlockSpec((1, ctot), lambda b, r: (0, 0)),
                  pl.BlockSpec((1, ctot), lambda b, r: (0, 0)),
                  pl.BlockSpec((1, ctot), lambda b, r: (0, 0))],
        out_specs=pl.BlockSpec((1, rt, ctot), lambda b, r: (b, r, 0)),
        out_shape=jax.ShapeDtypeStruct((n, tv, ctot), jnp.bfloat16),
        compiler_params=pltpu.CompilerParams(
            dimension_semantics=("parallel", "parallel"),
            vmem_limit_bytes=_VMEM_LIMIT),
    )


# ----------------------------- stage 2 kernel -------------------------------
# Dilated temporal convs + maxpool + stride branch + BN + concat + residual add.

def _stage2_kernel(h_ref, tw_ref, pe_ref, s_ref, t_ref, o_ref, *,
                   row_chunk, v, pad_max, dils, ksize, bc, n_conv, cout):
    rbase = pl.multiple_of(pl.program_id(1) * row_chunk, 8)
    acc = jnp.zeros((row_chunk, cout), jnp.float32)

    # (a) dilated temporal-conv branches: lane-placed (bc, Cout) weights so that a
    #     single wide accumulator is used instead of 16-lane per-branch tiles.
    for i in range(n_conv):
        d = dils[i]
        pad_i = ((ksize - 1) * d) // 2
        for j in range(ksize):
            off = (pad_max - pad_i + j * d) * v
            tap = h_ref[0, pl.ds(rbase + off, row_chunk), i * bc:(i + 1) * bc]
            acc = acc + jnp.dot(tap, tw_ref[i * ksize + j],
                                preferred_element_type=jnp.float32)

    # (b) MaxPool(3,1) branch (zero padding exact because the input is post-ReLU >= 0)
    cp = n_conv * bc
    p0 = h_ref[0, pl.ds(rbase + (pad_max - 1) * v, row_chunk), cp:cp + bc].astype(jnp.float32)
    p1 = h_ref[0, pl.ds(rbase + pad_max * v, row_chunk), cp:cp + bc].astype(jnp.float32)
    p2 = h_ref[0, pl.ds(rbase + (pad_max + 1) * v, row_chunk), cp:cp + bc].astype(jnp.float32)
    pmax = jnp.maximum(jnp.maximum(p0, p1), p2).astype(jnp.bfloat16)
    acc = acc + jnp.dot(pmax, pe_ref[...], preferred_element_type=jnp.float32)

    # (c) fused tconv/pool BN epilogue + additive group (stride-branch 1x1 (+) residual)
    y = acc * s_ref[...] + t_ref[...]
    ca = (n_conv + 1) * bc
    y = y + h_ref[0, pl.ds(rbase + pad_max * v, row_chunk), ca:ca + cout].astype(jnp.float32)
    o_ref[0] = y.astype(o_ref.dtype)


@functools.lru_cache(maxsize=None)
def _stage2_call(n, rows_pad, ctot, cout, rc, n_chunks, bc, n_conv, ksize, v,
                 pad_max, dils):
    kern = functools.partial(_stage2_kernel, row_chunk=rc, v=v, pad_max=pad_max,
                             dils=dils, ksize=ksize, bc=bc, n_conv=n_conv,
                             cout=cout)
    return pl.pallas_call(
        kern,
        grid=(n, n_chunks),
        in_specs=[pl.BlockSpec((1, rows_pad, ctot), lambda b, c: (b, 0, 0)),
                  pl.BlockSpec((n_conv * ksize, bc, cout), lambda b, c: (0, 0, 0)),
                  pl.BlockSpec((bc, cout), lambda b, c: (0, 0)),
                  pl.BlockSpec((1, cout), lambda b, c: (0, 0)),
                  pl.BlockSpec((1, cout), lambda b, c: (0, 0))],
        out_specs=pl.BlockSpec((1, rc, cout), lambda b, c: (b, c, 0)),
        out_shape=jax.ShapeDtypeStruct((n, n_chunks * rc, cout), jnp.float32),
        compiler_params=pltpu.CompilerParams(
            dimension_semantics=("parallel", "parallel"),
            vmem_limit_bytes=_VMEM_LIMIT),
    )


# --------------------------- parameter building -----------------------------

class MSTCNConfig(NamedTuple):
    in_channels: int
    out_channels: int
    kernel_size: int = 3
    stride: int = 1
    dilations: Tuple[int, ...] = (1, 2, 3, 4)
    residual: bool = True
    residual_kernel_size: int = 1


def init_msconv_params(key, cfg):
    """Packed Pallas params + raw per-branch params for the pure-JAX reference.

    BN is folded in eval mode with freshly initialised running stats (mean=0,
    var=1, eps=1e-5); conv biases are 0; gamma~N(1,0.02), beta=0 (weights_init)."""
    cin, cout = cfg.in_channels, cfg.out_channels
    n_conv = len(cfg.dilations)
    nbr = n_conv + 2
    assert cout % nbr == 0, "# out channels should be multiples of # branches"
    assert isinstance(cfg.kernel_size, int), \
        "TODO(synk): per-branch kernel_size lists are not supported"
    bc = cout // nbr
    k = cfg.kernel_size
    need_res_conv = cfg.residual and not (cin == cout and cfg.stride == 1)
    if need_res_conv and cfg.residual_kernel_size != 1:
        # TODO(synk): residual_kernel_size > 1 (rare) not implemented
        raise NotImplementedError("residual_kernel_size > 1 not supported")

    keys = iter(jax.random.split(key, 4 * nbr + 8))
    eps = 1e-5
    f32 = jnp.float32

    def conv_w(shape, fan_out):
        # kaiming_normal_(mode='fan_out'); conv bias initialised to 0
        w = jax.random.normal(next(keys), shape, f32) * np.sqrt(2.0 / fan_out)
        return w.astype(jnp.bfloat16)

    def bn(c):
        gamma = 1.0 + 0.02 * jax.random.normal(next(keys), (c,), f32)
        scale = (gamma / np.sqrt(1.0 + eps)).astype(f32)
        shift = jnp.zeros((c,), f32)
        return scale, shift

    ref = {'w1': [], 's1': [], 't1': [], 'tw': [], 'ts': [], 'tt': []}
    for _ in range(n_conv):
        ref['w1'].append(conv_w((cin, bc), bc))
        sc, sh = bn(bc); ref['s1'].append(sc); ref['t1'].append(sh)
        ref['tw'].append(conv_w((k, bc, bc), bc * k))
        sc, sh = bn(bc); ref['ts'].append(sc); ref['tt'].append(sh)
    ref['wp'] = conv_w((cin, bc), bc)
    ref['sp'], ref['tp'] = bn(bc)
    ref['ps'], ref['pt'] = bn(bc)                 # second BN after the max-pool
    ref['w5'] = conv_w((cin, bc), bc)
    ref['s5'], ref['t5'] = bn(bc)
    if need_res_conv:
        ref['rw'] = conv_w((cin, cout), cout * cfg.residual_kernel_size)
        ref['rs'], ref['rt'] = bn(cout)

    # ---- stage-1 packed fused 1x1 weights / BN epilogue / ReLU mask ----------
    ctot = (n_conv + 1) * bc + cout
    w_cols = [w.astype(f32) for w in ref['w1']] + [ref['wp'].astype(f32)]
    s_cols = list(ref['s1']) + [ref['sp']]
    t_cols = list(ref['t1']) + [ref['tp']]
    m_cols = [jnp.ones((bc,), f32)] * (n_conv + 1)

    # additive group = (stride-branch 1x1 + BN)  (+)  residual path, folded into
    # one (Cin, Cout) affine map evaluated by the same stage-1 MXU pass.
    if not cfg.residual:
        wadd = jnp.zeros((cin, cout), f32)
        tadd = jnp.zeros((cout,), f32)
    elif not need_res_conv:                        # identity residual
        wadd = jnp.eye(cin, dtype=f32)
        tadd = jnp.zeros((cout,), f32)
    else:                                          # 1x1 TemporalConv residual
        wadd = ref['rw'].astype(f32) * ref['rs'][None, :]
        tadd = ref['rt']
    sb = (n_conv + 1) * bc                         # stride-branch output columns
    wadd = wadd.at[:, sb:sb + bc].add(ref['w5'].astype(f32) * ref['s5'][None, :])
    tadd = tadd.at[sb:sb + bc].add(ref['t5'])
    w_cols.append(wadd)
    s_cols.append(jnp.ones((cout,), f32))
    t_cols.append(tadd)
    m_cols.append(jnp.zeros((cout,), f32))

    params = {
        'w1': jnp.concatenate(w_cols, axis=1).astype(jnp.bfloat16),
        's1': jnp.concatenate(s_cols).reshape(1, ctot).astype(f32),
        't1': jnp.concatenate(t_cols).reshape(1, ctot).astype(f32),
        'm1': jnp.concatenate(m_cols).reshape(1, ctot).astype(f32),
    }

    # ---- stage-2 lane-placed temporal-conv weights + BN, pool placement -----
    tww = jnp.zeros((n_conv * k, bc, cout), f32)
    s2 = jnp.ones((cout,), f32)
    t2 = jnp.zeros((cout,), f32)
    for i in range(n_conv):
        for j in range(k):
            tww = tww.at[i * k + j, :, i * bc:(i + 1) * bc].set(
                ref['tw'][i][j].astype(f32))
        s2 = s2.at[i * bc:(i + 1) * bc].set(ref['ts'][i])
        t2 = t2.at[i * bc:(i + 1) * bc].set(ref['tt'][i])
    cp = n_conv * bc
    s2 = s2.at[cp:cp + bc].set(ref['ps'])
    t2 = t2.at[cp:cp + bc].set(ref['pt'])
    pe = jnp.zeros((bc, cout), f32).at[:, cp:cp + bc].set(jnp.eye(bc, dtype=f32))

    params['tww'] = tww.astype(jnp.bfloat16)
    params['pe'] = pe.astype(jnp.bfloat16)
    params['s2'] = s2.reshape(1, cout)
    params['t2'] = t2.reshape(1, cout)
    return params, ref


# ------------------------------ forward pass --------------------------------

@functools.partial(jax.jit, static_argnums=0)
def msconv_forward(cfg, params, x):
    """x: (N, Cin, T, V) float32 (PyTorch layout); returns (N, Cout, T_out, V)."""
    n, cin, t, v = x.shape
    cout = cfg.out_channels
    n_conv = len(cfg.dilations)
    bc = cout // (n_conv + 2)
    k = cfg.kernel_size
    s = cfg.stride
    tv = t * v
    ctot = (n_conv + 1) * bc + cout
    assert all((k - 1) * d % 2 == 0 for d in cfg.dilations), \
        "branch output lengths must match for the channel concat"
    pads = [((k - 1) * d) // 2 for d in cfg.dilations]
    pad_max = max(pads + [1])

    # -- stage 1: all 1x1 convs (+BN, +ReLU where needed) + residual fold; the
    #    (N,C,T,V)->(N,T,V,C) transpose is folded into the matmul.
    rt = tv if tv <= 256 else (256 if ctot <= 384 else 128)
    h = _stage1_call(n, cin, tv, ctot, rt)(
        x.reshape(n, cin, tv), params['w1'], params['s1'], params['t1'],
        params['m1'])

    # -- one shared, max-padded slab feeds every temporal branch (single pad pass)
    hp = jnp.pad(h.reshape(n, t, v, ctot),
                 ((0, 0), (pad_max, pad_max), (0, 0), (0, 0)))
    rows_pad = (t + 2 * pad_max) * v
    hp = hp.reshape(n, rows_pad, ctot)

    # -- stage 2: dilated tconvs + maxpool + stride branch + BN + concat + residual
    rc = _pick_chunk(tv, 256 if cout <= 128 else 128)
    out = _stage2_call(n, rows_pad, ctot, cout, rc, tv // rc, bc, n_conv, k, v,
                       pad_max, tuple(cfg.dilations))(
        hp, params['tww'], params['pe'], params['s2'], params['t2'])

    out = out.reshape(n, t, v, cout)
    if s > 1:
        # TODO(synk): temporal stride is applied as post-decimation glue (result is
        # identical); in-kernel strided taps would avoid ~2x tconv work for s>1.
        out = out[:, ::s]
    return jnp.transpose(out, (0, 3, 1, 2))          # back to (N, Cout, T_out, V)


# ------------------------- pure-JAX reference (check) ------------------------

def msconv_reference(cfg, ref, x):
    """Straightforward JAX implementation of the PyTorch module (eval-mode BN),
    using the same bf16-rounded activations/weights as the kernels."""
    n, cin, t, v = x.shape
    cout = cfg.out_channels
    bc = cout // (len(cfg.dilations) + 2)
    k, s = cfg.kernel_size, cfg.stride
    t_out = (t - 1) // s + 1
    f32 = jnp.float32
    xcl = jnp.transpose(x, (0, 2, 3, 1)).astype(jnp.bfloat16).astype(f32)

    def conv1x1(xin, w, sc, sh, relu):
        y = jnp.einsum('ntvc,cd->ntvd', xin, w.astype(f32)) * sc + sh
        return jnp.maximum(y, 0.0) if relu else y

    outs = []
    for i, d in enumerate(cfg.dilations):
        h = conv1x1(xcl, ref['w1'][i], ref['s1'][i], ref['t1'][i], True)
        h = h.astype(jnp.bfloat16).astype(f32)
        pad = ((k - 1) * d) // 2
        hpad = jnp.pad(h, ((0, 0), (pad, pad), (0, 0), (0, 0)))
        y = 0.0
        for j in range(k):
            tap = hpad[:, j * d: j * d + (t_out - 1) * s + 1: s]
            y = y + jnp.einsum('ntvc,cd->ntvd', tap, ref['tw'][i][j].astype(f32))
        outs.append(y * ref['ts'][i] + ref['tt'][i])
    # max-pool branch (PyTorch MaxPool2d pads with -inf)
    h = conv1x1(xcl, ref['wp'], ref['sp'], ref['tp'], True)
    h = h.astype(jnp.bfloat16).astype(f32)
    hpad = jnp.pad(h, ((0, 0), (1, 1), (0, 0), (0, 0)),
                   constant_values=-jnp.inf)
    taps = [hpad[:, j: j + (t_out - 1) * s + 1: s] for j in range(3)]
    y = jnp.maximum(jnp.maximum(taps[0], taps[1]), taps[2])
    outs.append(y * ref['ps'] + ref['pt'])
    # strided 1x1 branch
    xs = xcl[:, ::s]
    outs.append(conv1x1(xs, ref['w5'], ref['s5'], ref['t5'], False))
    out = jnp.concatenate(outs, axis=-1)
    # residual
    if cfg.residual:
        if cin == cout and s == 1:
            out = out + xcl
        else:
            out = out + conv1x1(xs, ref['rw'], ref['rs'], ref['rt'], False)
    return jnp.transpose(out, (0, 3, 1, 2))


# ---------------------------------- main -------------------------------------

if __name__ == "__main__":
    key = jax.random.PRNGKey(0)
    kx1, kx2, kp1, kp2 = jax.random.split(key, 4)

    # Config A: default MultiScale_TemporalConv (identity residual, stride 1)
    cfgA = MSTCNConfig(96, 96, 3, 1, (1, 2, 3, 4), True, 1)
    paramsA, refA = init_msconv_params(kp1, cfgA)
    xA = jax.random.normal(kx1, (2, 96, 16, 16), jnp.float32)     # (N, Cin, T, V)
    outA = jax.block_until_ready(msconv_forward(cfgA, paramsA, xA))
    assert outA.shape == (2, 96, 16, 16), outA.shape
    assert bool(jnp.all(jnp.isfinite(outA)))
    refoA = msconv_reference(cfgA, refA, xA)
    errA = float(jnp.max(jnp.abs(outA - refoA)) / (jnp.max(jnp.abs(refoA)) + 1e-6))
    assert np.isfinite(errA) and errA < 5e-2, f"config A mismatch: {errA}"

    # Config B: channel change + temporal stride 2 (1x1 TemporalConv residual)
    cfgB = MSTCNConfig(48, 96, 3, 2, (1, 2, 3, 4), True, 1)
    paramsB, refB = init_msconv_params(kp2, cfgB)
    xB = jax.random.normal(kx2, (2, 48, 16, 16), jnp.float32)
    outB = jax.block_until_ready(msconv_forward(cfgB, paramsB, xB))
    assert outB.shape == (2, 96, 8, 16), outB.shape
    assert bool(jnp.all(jnp.isfinite(outB)))
    refoB = msconv_reference(cfgB, refB, xB)
    errB = float(jnp.max(jnp.abs(outB - refoB)) / (jnp.max(jnp.abs(refoB)) + 1e-6))
    assert np.isfinite(errB) and errB < 5e-2, f"config B mismatch: {errB}"

    print("KERNEL_OK")
</pallas_src>

<mosaic_0001>
module attributes {stable_mosaic.version = 11 : i64} {
  func.func @_stage1_kernel(%arg0: i32, %arg1: i32, %arg2: memref<1x96x256xf32, #tpu.memory_space<vmem>>, %arg3: memref<96x176xbf16, #tpu.memory_space<vmem>>, %arg4: memref<1x176xf32, #tpu.memory_space<vmem>>, %arg5: memref<1x176xf32, #tpu.memory_space<vmem>>, %arg6: memref<1x176xf32, #tpu.memory_space<vmem>>, %arg7: memref<1x256x176xbf16, #tpu.memory_space<vmem>>) attributes {dimension_semantics = [#tpu.dimension_semantics<parallel>, #tpu.dimension_semantics<parallel>], iteration_bounds = array<i64: 2, 1>, scalar_prefetch = 0 : i64, scratch_operands = 0 : i64, tpu.core_type = #tpu.core_type<tc>, window_params = [{transform_indices = @transform_0, window_bounds = array<i64: 1, 96, 256>}, {pipeline_mode = #tpu.pipeline_mode<synchronous>, transform_indices = @transform_1, window_bounds = array<i64: 96, 176>}, {pipeline_mode = #tpu.pipeline_mode<synchronous>, transform_indices = @transform_2, window_bounds = array<i64: 1, 176>}, {pipeline_mode = #tpu.pipeline_mode<synchronous>, transform_indices = @transform_3, window_bounds = array<i64: 1, 176>}, {pipeline_mode = #tpu.pipeline_mode<synchronous>, transform_indices = @transform_4, window_bounds = array<i64: 1, 176>}, {transform_indices = @transform_5, window_bounds = array<i64: 1, 256, 176>}]} {
    %c0 = arith.constant 0 : index
    %c0_0 = arith.constant 0 : index
    %c0_1 = arith.constant 0 : index
    %0 = vector.load %arg2[%c0, %c0_0, %c0_1] : memref<1x96x256xf32, #tpu.memory_space<vmem>>, vector<1x96x256xf32>
    %1 = vector.shape_cast %0 : vector<1x96x256xf32> to vector<96x256xf32>
    %2 = arith.truncf %1 : vector<96x256xf32> to vector<96x256xbf16>
    %c0_2 = arith.constant 0 : index
    %c0_3 = arith.constant 0 : index
    %3 = vector.load %arg3[%c0_2, %c0_3] : memref<96x176xbf16, #tpu.memory_space<vmem>>, vector<96x176xbf16>
    %cst = arith.constant dense<0.000000e+00> : vector<256x176xf32>
    %4 = tpu.matmul %2, %3, %cst {dimension_numbers = #tpu.dot_dimension_numbers<[0], [0], [1], [1], [0, 1, 1, 1], [], []>} : vector<96x256xbf16>, vector<96x176xbf16>, vector<256x176xf32> -> vector<256x176xf32>
    %c0_4 = arith.constant 0 : index
    %c0_5 = arith.constant 0 : index
    %5 = vector.load %arg4[%c0_4, %c0_5] : memref<1x176xf32, #tpu.memory_space<vmem>>, vector<1x176xf32>
    %6 = vector.broadcast %5 : vector<1x176xf32> to vector<256x176xf32>
    %7 = arith.mulf %4, %6 : vector<256x176xf32>
    %c0_6 = arith.constant 0 : index
    %c0_7 = arith.constant 0 : index
    %8 = vector.load %arg5[%c0_6, %c0_7] : memref<1x176xf32, #tpu.memory_space<vmem>>, vector<1x176xf32>
    %9 = vector.broadcast %8 : vector<1x176xf32> to vector<256x176xf32>
    %10 = arith.addf %7, %9 : vector<256x176xf32>
    %c0_8 = arith.constant 0 : index
    %c0_9 = arith.constant 0 : index
    %11 = vector.load %arg6[%c0_8, %c0_9] : memref<1x176xf32, #tpu.memory_space<vmem>>, vector<1x176xf32>
    %cst_10 = arith.constant 5.000000e-01 : f32
    %12 = vector.broadcast %cst_10 : f32 to vector<1x176xf32>
    %13 = arith.cmpf ogt, %11, %12 : vector<1x176xf32>
    %cst_11 = arith.constant 0.000000e+00 : f32
    %14 = vector.broadcast %cst_11 : f32 to vector<256x176xf32>
    %15 = arith.maximumf %10, %14 : vector<256x176xf32>
    %16 = vector.shape_cast %13 : vector<1x176xi1> to vector<1x176xi1>
    %17 = vector.broadcast %16 : vector<1x176xi1> to vector<256x176xi1>
    %18 = arith.select %17, %15, %10 : vector<256x176xi1>, vector<256x176xf32>
    %19 = arith.truncf %18 : vector<256x176xf32> to vector<256x176xbf16>
    %c0_12 = arith.constant 0 : index
    %c0_13 = arith.constant 0 : index
    %c0_14 = arith.constant 0 : index
    %20 = vector.load %arg7[%c0_12, %c0_13, %c0_14] : memref<1x256x176xbf16, #tpu.memory_space<vmem>>, vector<1x256x176xbf16>
    %21 = vector.shape_cast %20 : vector<1x256x176xbf16> to vector<256x176xbf16>
    %22 = vector.shape_cast %19 : vector<256x176xbf16> to vector<1x256x176xbf16>
    tpu.vector_store %arg7[%c0_12, %c0_13, %c0_14], %22 {strides = array<i32>} : memref<1x256x176xbf16, #tpu.memory_space<vmem>>, vector<1x256x176xbf16>,
    return
  }
  func.func @transform_0(%arg0: i32, %arg1: i32) -> (i32, i32, i32) {
    %c0_i32 = arith.constant 0 : i32
    %c0_i32_0 = arith.constant 0 : i32
    return %arg0, %c0_i32, %arg1 : i32, i32, i32
  }
  func.func @transform_1(%arg0: i32, %arg1: i32) -> (i32, i32) {
    %c0_i32 = arith.constant 0 : i32
    %c0_i32_0 = arith.constant 0 : i32
    %c0_i32_1 = arith.constant 0 : i32
    return %c0_i32, %c0_i32_0 : i32, i32
  }
  func.func @transform_2(%arg0: i32, %arg1: i32) -> (i32, i32) {
    %c0_i32 = arith.constant 0 : i32
    %c0_i32_0 = arith.constant 0 : i32
    %c0_i32_1 = arith.constant 0 : i32
    return %c0_i32, %c0_i32_0 : i32, i32
  }
  func.func @transform_3(%arg0: i32, %arg1: i32) -> (i32, i32) {
    %c0_i32 = arith.constant 0 : i32
    %c0_i32_0 = arith.constant 0 : i32
    %c0_i32_1 = arith.constant 0 : i32
    return %c0_i32, %c0_i32_0 : i32, i32
  }
  func.func @transform_4(%arg0: i32, %arg1: i32) -> (i32, i32) {
    %c0_i32 = arith.constant 0 : i32
    %c0_i32_0 = arith.constant 0 : i32
    %c0_i32_1 = arith.constant 0 : i32
    return %c0_i32, %c0_i32_0 : i32, i32
  }
  func.func @transform_5(%arg0: i32, %arg1: i32) -> (i32, i32, i32) {
    %c0_i32 = arith.constant 0 : i32
    %c0_i32_0 = arith.constant 0 : i32
    return %arg0, %arg1, %c0_i32 : i32, i32, i32
  }
}

module attributes {stable_mosaic.version = 11 : i64} {
  func.func @_stage2_kernel(%arg0: i32, %arg1: i32, %arg2: memref<1x384x176xbf16, #tpu.memory_space<vmem>>, %arg3: memref<12x16x96xbf16, #tpu.memory_space<vmem>>, %arg4: memref<16x96xbf16, #tpu.memory_space<vmem>>, %arg5: memref<1x96xf32, #tpu.memory_space<vmem>>, %arg6: memref<1x96xf32, #tpu.memory_space<vmem>>, %arg7: memref<1x256x96xf32, #tpu.memory_space<vmem>>) attributes {dimension_semantics = [#tpu.dimension_semantics<parallel>, #tpu.dimension_semantics<parallel>], iteration_bounds = array<i64: 2, 1>, scalar_prefetch = 0 : i64, scratch_operands = 0 : i64, tpu.core_type = #tpu.core_type<tc>, window_params = [{transform_indices = @transform_0, window_bounds = array<i64: 1, 384, 176>}, {pipeline_mode = #tpu.pipeline_mode<synchronous>, transform_indices = @transform_1, window_bounds = array<i64: 12, 16, 96>}, {pipeline_mode = #tpu.pipeline_mode<synchronous>, transform_indices = @transform_2, window_bounds = array<i64: 16, 96>}, {pipeline_mode = #tpu.pipeline_mode<synchronous>, transform_indices = @transform_3, window_bounds = array<i64: 1, 96>}, {pipeline_mode = #tpu.pipeline_mode<synchronous>, transform_indices = @transform_4, window_bounds = array<i64: 1, 96>}, {transform_indices = @transform_5, window_bounds = array<i64: 1, 256, 96>}]} {
    %c256_i32 = arith.constant 256 : i32
    %0 = arith.muli %arg1, %c256_i32 : i32
    %1 = tpu.assume_multiple %0, 8 : i32
    %cst = arith.constant 0.000000e+00 : f32
    %2 = vector.broadcast %cst : f32 to vector<256x96xf32>
    %c48_i32 = arith.constant 48 : i32
    %3 = arith.addi %1, %c48_i32 : i32
    %c0 = arith.constant 0 : index
    %4 = arith.index_cast %3 : i32 to index
    %c0_0 = arith.constant 0 : index
    %5 = vector.load %arg2[%c0, %4, %c0_0] : memref<1x384x176xbf16, #tpu.memory_space<vmem>>, vector<1x256x16xbf16>
    %6 = vector.shape_cast %5 : vector<1x256x16xbf16> to vector<256x16xbf16>
    %c0_1 = arith.constant 0 : index
    %c0_2 = arith.constant 0 : index
    %c0_3 = arith.constant 0 : index
    %7 = vector.load %arg3[%c0_1, %c0_2, %c0_3] : memref<12x16x96xbf16, #tpu.memory_space<vmem>>, vector<1x16x96xbf16>
    %8 = vector.shape_cast %7 : vector<1x16x96xbf16> to vector<16x96xbf16>
    %cst_4 = arith.constant dense<0.000000e+00> : vector<256x96xf32>
    %9 = tpu.matmul %6, %8, %cst_4 {dimension_numbers = #tpu.dot_dimension_numbers<[1], [0], [0], [1], [0, 0, 1, 1], [], []>} : vector<256x16xbf16>, vector<16x96xbf16>, vector<256x96xf32> -> vector<256x96xf32>
    %10 = arith.addf %2, %9 : vector<256x96xf32>
    %c64_i32 = arith.constant 64 : i32
    %11 = arith.addi %1, %c64_i32 : i32
    %c0_5 = arith.constant 0 : index
    %12 = arith.index_cast %11 : i32 to index
    %c0_6 = arith.constant 0 : index
    %13 = vector.load %arg2[%c0_5, %12, %c0_6] : memref<1x384x176xbf16, #tpu.memory_space<vmem>>, vector<1x256x16xbf16>
    %14 = vector.shape_cast %13 : vector<1x256x16xbf16> to vector<256x16xbf16>
    %c1 = arith.constant 1 : index
    %c0_7 = arith.constant 0 : index
    %c0_8 = arith.constant 0 : index
    %15 = vector.load %arg3[%c1, %c0_7, %c0_8] : memref<12x16x96xbf16, #tpu.memory_space<vmem>>, vector<1x16x96xbf16>
    %16 = vector.shape_cast %15 : vector<1x16x96xbf16> to vector<16x96xbf16>
    %cst_9 = arith.constant dense<0.000000e+00> : vector<256x96xf32>
    %17 = tpu.matmul %14, %16, %cst_9 {dimension_numbers = #tpu.dot_dimension_numbers<[1], [0], [0], [1], [0, 0, 1, 1], [], []>} : vector<256x16xbf16>, vector<16x96xbf16>, vector<256x96xf32> -> vector<256x96xf32>
    %18 = arith.addf %10, %17 : vector<256x96xf32>
    %c80_i32 = arith.constant 80 : i32
    %19 = arith.addi %1, %c80_i32 : i32
    %c0_10 = arith.constant 0 : index
    %20 = arith.index_cast %19 : i32 to index
    %c0_11 = arith.constant 0 : index
    %21 = vector.load %arg2[%c0_10, %20, %c0_11] : memref<1x384x176xbf16, #tpu.memory_space<vmem>>, vector<1x256x16xbf16>
    %22 = vector.shape_cast %21 : vector<1x256x16xbf16> to vector<256x16xbf16>
    %c2 = arith.constant 2 : index
    %c0_12 = arith.constant 0 : index
    %c0_13 = arith.constant 0 : index
    %23 = vector.load %arg3[%c2, %c0_12, %c0_13] : memref<12x16x96xbf16, #tpu.memory_space<vmem>>, vector<1x16x96xbf16>
    %24 = vector.shape_cast %23 : vector<1x16x96xbf16> to vector<16x96xbf16>
    %cst_14 = arith.constant dense<0.000000e+00> : vector<256x96xf32>
    %25 = tpu.matmul %22, %24, %cst_14 {dimension_numbers = #tpu.dot_dimension_numbers<[1], [0], [0], [1], [0, 0, 1, 1], [], []>} : vector<256x16xbf16>, vector<16x96xbf16>, vector<256x96xf32> -> vector<256x96xf32>
    %26 = arith.addf %18, %25 : vector<256x96xf32>
    %c32_i32 = arith.constant 32 : i32
    %27 = arith.addi %1, %c32_i32 : i32
    %c0_15 = arith.constant 0 : index
    %28 = arith.index_cast %27 : i32 to index
    %c16 = arith.constant 16 : index
    %29 = vector.load %arg2[%c0_15, %28, %c16] : memref<1x384x176xbf16, #tpu.memory_space<vmem>>, vector<1x256x16xbf16>
    %30 = vector.shape_cast %29 : vector<1x256x16xbf16> to vector<256x16xbf16>
    %c3 = arith.constant 3 : index
    %c0_16 = arith.constant 0 : index
    %c0_17 = arith.constant 0 : index
    %31 = vector.load %arg3[%c3, %c0_16, %c0_17] : memref<12x16x96xbf16, #tpu.memory_space<vmem>>, vector<1x16x96xbf16>
    %32 = vector.shape_cast %31 : vector<1x16x96xbf16> to vector<16x96xbf16>
    %cst_18 = arith.constant dense<0.000000e+00> : vector<256x96xf32>
    %33 = tpu.matmul %30, %32, %cst_18 {dimension_numbers = #tpu.dot_dimension_numbers<[1], [0], [0], [1], [0, 0, 1, 1], [], []>} : vector<256x16xbf16>, vector<16x96xbf16>, vector<256x96xf32> -> vector<256x96xf32>
    %34 = arith.addf %26, %33 : vector<256x96xf32>
    %c64_i32_19 = arith.constant 64 : i32
    %35 = arith.addi %1, %c64_i32_19 : i32
    %c0_20 = arith.constant 0 : index
    %36 = arith.index_cast %35 : i32 to index
    %c16_21 = arith.constant 16 : index
    %37 = vector.load %arg2[%c0_20, %36, %c16_21] : memref<1x384x176xbf16, #tpu.memory_space<vmem>>, vector<1x256x16xbf16>
    %38 = vector.shape_cast %37 : vector<1x256x16xbf16> to vector<256x16xbf16>
    %c4 = arith.constant 4 : index
    %c0_22 = arith.constant 0 : index
    %c0_23 = arith.constant 0 : index
    %39 = vector.load %arg3[%c4, %c0_22, %c0_23] : memref<12x16x96xbf16, #tpu.memory_space<vmem>>, vector<1x16x96xbf16>
    %40 = vector.shape_cast %39 : vector<1x16x96xbf16> to vector<16x96xbf16>
    %cst_24 = arith.constant dense<0.000000e+00> : vector<256x96xf32>
    %41 = tpu.matmul %38, %40, %cst_24 {dimension_numbers = #tpu.dot_dimension_numbers<[1], [0], [0], [1], [0, 0, 1, 1], [], []>} : vector<256x16xbf16>, vector<16x96xbf16>, vector<256x96xf32> -> vector<256x96xf32>
    %42 = arith.addf %34, %41 : vector<256x96xf32>
    %c96_i32 = arith.constant 96 : i32
    %43 = arith.addi %1, %c96_i32 : i32
    %c0_25 = arith.constant 0 : index
    %44 = arith.index_cast %43 : i32 to index
    %c16_26 = arith.constant 16 : index
    %45 = vector.load %arg2[%c0_25, %44, %c16_26] : memref<1x384x176xbf16, #tpu.memory_space<vmem>>, vector<1x256x16xbf16>
    %46 = vector.shape_cast %45 : vector<1x256x16xbf16> to vector<256x16xbf16>
    %c5 = arith.constant 5 : index
    %c0_27 = arith.constant 0 : index
    %c0_28 = arith.constant 0 : index
    %47 = vector.load %arg3[%c5, %c0_27, %c0_28] : memref<12x16x96xbf16, #tpu.memory_space<vmem>>, vector<1x16x96xbf16>
    %48 = vector.shape_cast %47 : vector<1x16x96xbf16> to vector<16x96xbf16>
    %cst_29 = arith.constant dense<0.000000e+00> : vector<256x96xf32>
    %49 = tpu.matmul %46, %48, %cst_29 {dimension_numbers = #tpu.dot_dimension_numbers<[1], [0], [0], [1], [0, 0, 1, 1], [], []>} : vector<256x16xbf16>, vector<16x96xbf16>, vector<256x96xf32> -> vector<256x96xf32>
    %50 = arith.addf %42, %49 : vector<256x96xf32>
    %c16_i32 = arith.constant 16 : i32
    %51 = arith.addi %1, %c16_i32 : i32
    %c0_30 = arith.constant 0 : index
    %52 = arith.index_cast %51 : i32 to index
    %c32 = arith.constant 32 : index
    %53 = vector.load %arg2[%c0_30, %52, %c32] : memref<1x384x176xbf16, #tpu.memory_space<vmem>>, vector<1x256x16xbf16>
    %54 = vector.shape_cast %53 : vector<1x256x16xbf16> to vector<256x16xbf16>
    %c6 = arith.constant 6 : index
    %c0_31 = arith.constant 0 : index
    %c0_32 = arith.constant 0 : index
    %55 = vector.load %arg3[%c6, %c0_31, %c0_32] : memref<12x16x96xbf16, #tpu.memory_space<vmem>>, vector<1x16x96xbf16>
    %56 = vector.shape_cast %55 : vector<1x16x96xbf16> to vector<16x96xbf16>
    %cst_33 = arith.constant dense<0.000000e+00> : vector<256x96xf32>
    %57 = tpu.matmul %54, %56, %cst_33 {dimension_numbers = #tpu.dot_dimension_numbers<[1], [0], [0], [1], [0, 0, 1, 1], [], []>} : vector<256x16xbf16>, vector<16x96xbf16>, vector<256x96xf32> -> vector<256x96xf32>
    %58 = arith.addf %50, %57 : vector<256x96xf32>
    %c64_i32_34 = arith.constant 64 : i32
    %59 = arith.addi %1, %c64_i32_34 : i32
    %c0_35 = arith.constant 0 : index
    %60 = arith.index_cast %59 : i32 to index
    %c32_36 = arith.constant 32 : index
    %61 = vector.load %arg2[%c0_35, %60, %c32_36] : memref<1x384x176xbf16, #tpu.memory_space<vmem>>, vector<1x256x16xbf16>
    %62 = vector.shape_cast %61 : vector<1x256x16xbf16> to vector<256x16xbf16>
    %c7 = arith.constant 7 : index
    %c0_37 = arith.constant 0 : index
    %c0_38 = arith.constant 0 : index
    %63 = vector.load %arg3[%c7, %c0_37, %c0_38] : memref<12x16x96xbf16, #tpu.memory_space<vmem>>, vector<1x16x96xbf16>
    %64 = vector.shape_cast %63 : vector<1x16x96xbf16> to vector<16x96xbf16>
    %cst_39 = arith.constant dense<0.000000e+00> : vector<256x96xf32>
    %65 = tpu.matmul %62, %64, %cst_39 {dimension_numbers = #tpu.dot_dimension_numbers<[1], [0], [0], [1], [0, 0, 1, 1], [], []>} : vector<256x16xbf16>, vector<16x96xbf16>, vector<256x96xf32> -> vector<256x96xf32>
    %66 = arith.addf %58, %65 : vector<256x96xf32>
    %c112_i32 = arith.constant 112 : i32
    %67 = arith.addi %1, %c112_i32 : i32
    %c0_40 = arith.constant 0 : index
    %68 = arith.index_cast %67 : i32 to index
    %c32_41 = arith.constant 32 : index
    %69 = vector.load %arg2[%c0_40, %68, %c32_41] : memref<1x384x176xbf16, #tpu.memory_space<vmem>>, vector<1x256x16xbf16>
    %70 = vector.shape_cast %69 : vector<1x256x16xbf16> to vector<256x16xbf16>
    %c8 = arith.constant 8 : index
    %c0_42 = arith.constant 0 : index
    %c0_43 = arith.constant 0 : index
    %71 = vector.load %arg3[%c8, %c0_42, %c0_43] : memref<12x16x96xbf16, #tpu.memory_space<vmem>>, vector<1x16x96xbf16>
    %72 = vector.shape_cast %71 : vector<1x16x96xbf16> to vector<16x96xbf16>
    %cst_44 = arith.constant dense<0.000000e+00> : vector<256x96xf32>
    %73 = tpu.matmul %70, %72, %cst_44 {dimension_numbers = #tpu.dot_dimension_numbers<[1], [0], [0], [1], [0, 0, 1, 1], [], []>} : vector<256x16xbf16>, vector<16x96xbf16>, vector<256x96xf32> -> vector<256x96xf32>
    %74 = arith.addf %66, %73 : vector<256x96xf32>
    %c0_i32 = arith.constant 0 : i32
    %75 = arith.addi %1, %c0_i32 : i32
    %c0_45 = arith.constant 0 : index
    %76 = arith.index_cast %75 : i32 to index
    %c48 = arith.constant 48 : index
    %77 = vector.load %arg2[%c0_45, %76, %c48] : memref<1x384x176xbf16, #tpu.memory_space<vmem>>, vector<1x256x16xbf16>
    %78 = vector.shape_cast %77 : vector<1x256x16xbf16> to vector<256x16xbf16>
    %c9 = arith.constant 9 : index
    %c0_46 = arith.constant 0 : index
    %c0_47 = arith.constant 0 : index
    %79 = vector.load %arg3[%c9, %c0_46, %c0_47] : memref<12x16x96xbf16, #tpu.memory_space<vmem>>, vector<1x16x96xbf16>
    %80 = vector.shape_cast %79 : vector<1x16x96xbf16> to vector<16x96xbf16>
    %cst_48 = arith.constant dense<0.000000e+00> : vector<256x96xf32>
    %81 = tpu.matmul %78, %80, %cst_48 {dimension_numbers = #tpu.dot_dimension_numbers<[1], [0], [0], [1], [0, 0, 1, 1], [], []>} : vector<256x16xbf16>, vector<16x96xbf16>, vector<256x96xf32> -> vector<256x96xf32>
    %82 = arith.addf %74, %81 : vector<256x96xf32>
    %c64_i32_49 = arith.constant 64 : i32
    %83 = arith.addi %1, %c64_i32_49 : i32
    %c0_50 = arith.constant 0 : index
    %84 = arith.index_cast %83 : i32 to index
    %c48_51 = arith.constant 48 : index
    %85 = vector.load %arg2[%c0_50, %84, %c48_51] : memref<1x384x176xbf16, #tpu.memory_space<vmem>>, vector<1x256x16xbf16>
    %86 = vector.shape_cast %85 : vector<1x256x16xbf16> to vector<256x16xbf16>
    %c10 = arith.constant 10 : index
    %c0_52 = arith.constant 0 : index
    %c0_53 = arith.constant 0 : index
    %87 = vector.load %arg3[%c10, %c0_52, %c0_53] : memref<12x16x96xbf16, #tpu.memory_space<vmem>>, vector<1x16x96xbf16>
    %88 = vector.shape_cast %87 : vector<1x16x96xbf16> to vector<16x96xbf16>
    %cst_54 = arith.constant dense<0.000000e+00> : vector<256x96xf32>
    %89 = tpu.matmul %86, %88, %cst_54 {dimension_numbers = #tpu.dot_dimension_numbers<[1], [0], [0], [1], [0, 0, 1, 1], [], []>} : vector<256x16xbf16>, vector<16x96xbf16>, vector<256x96xf32> -> vector<256x96xf32>
    %90 = arith.addf %82, %89 : vector<256x96xf32>
    %c128_i32 = arith.constant 128 : i32
    %91 = arith.addi %1, %c128_i32 : i32
    %c0_55 = arith.constant 0 : index
    %92 = arith.index_cast %91 : i32 to index
    %c48_56 = arith.constant 48 : index
    %93 = vector.load %arg2[%c0_55, %92, %c48_56] : memref<1x384x176xbf16, #tpu.memory_space<vmem>>, vector<1x256x16xbf16>
    %94 = vector.shape_cast %93 : vector<1x256x16xbf16> to vector<256x16xbf16>
    %c11 = arith.constant 11 : index
    %c0_57 = arith.constant 0 : index
    %c0_58 = arith.constant 0 : index
    %95 = vector.load %arg3[%c11, %c0_57, %c0_58] : memref<12x16x96xbf16, #tpu.memory_space<vmem>>, vector<1x16x96xbf16>
    %96 = vector.shape_cast %95 : vector<1x16x96xbf16> to vector<16x96xbf16>
    %cst_59 = arith.constant dense<0.000000e+00> : vector<256x96xf32>
    %97 = tpu.matmul %94, %96, %cst_59 {dimension_numbers = #tpu.dot_dimension_numbers<[1], [0], [0], [1], [0, 0, 1, 1], [], []>} : vector<256x16xbf16>, vector<16x96xbf16>, vector<256x96xf32> -> vector<256x96xf32>
    %98 = arith.addf %90, %97 : vector<256x96xf32>
    %c48_i32_60 = arith.constant 48 : i32
    %99 = arith.addi %1, %c48_i32_60 : i32
    %c0_61 = arith.constant 0 : index
    %100 = arith.index_cast %99 : i32 to index
    %c64 = arith.constant 64 : index
    %101 = vector.load %arg2[%c0_61, %100, %c64] : memref<1x384x176xbf16, #tpu.memory_space<vmem>>, vector<1x256x16xbf16>
    %102 = vector.shape_cast %101 : vector<1x256x16xbf16> to vector<256x16xbf16>
    %103 = arith.extf %102 : vector<256x16xbf16> to vector<256x16xf32>
    %c64_i32_62 = arith.constant 64 : i32
    %104 = arith.addi %1, %c64_i32_62 : i32
    %c0_63 = arith.constant 0 : index
    %105 = arith.index_cast %104 : i32 to index
    %c64_64 = arith.constant 64 : index
    %106 = vector.load %arg2[%c0_63, %105, %c64_64] : memref<1x384x176xbf16, #tpu.memory_space<vmem>>, vector<1x256x16xbf16>
    %107 = vector.shape_cast %106 : vector<1x256x16xbf16> to vector<256x16xbf16>
    %108 = arith.extf %107 : vector<256x16xbf16> to vector<256x16xf32>
    %c80_i32_65 = arith.constant 80 : i32
    %109 = arith.addi %1, %c80_i32_65 : i32
    %c0_66 = arith.constant 0 : index
    %110 = arith.index_cast %109 : i32 to index
    %c64_67 = arith.constant 64 : index
    %111 = vector.load %arg2[%c0_66, %110, %c64_67] : memref<1x384x176xbf16, #tpu.memory_space<vmem>>, vector<1x256x16xbf16>
    %112 = vector.shape_cast %111 : vector<1x256x16xbf16> to vector<256x16xbf16>
    %113 = arith.extf %112 : vector<256x16xbf16> to vector<256x16xf32>
    %114 = arith.maximumf %103, %108 : vector<256x16xf32>
    %115 = arith.maximumf %114, %113 : vector<256x16xf32>
    %116 = arith.truncf %115 : vector<256x16xf32> to vector<256x16xbf16>
    %c0_68 = arith.constant 0 : index
    %c0_69 = arith.constant 0 : index
    %117 = vector.load %arg4[%c0_68, %c0_69] : memref<16x96xbf16, #tpu.memory_space<vmem>>, vector<16x96xbf16>
    %cst_70 = arith.constant dense<0.000000e+00> : vector<256x96xf32>
    %118 = tpu.matmul %116, %117, %cst_70 {dimension_numbers = #tpu.dot_dimension_numbers<[1], [0], [0], [1], [0, 0, 1, 1], [], []>} : vector<256x16xbf16>, vector<16x96xbf16>, vector<256x96xf32> -> vector<256x96xf32>
    %119 = arith.addf %98, %118 : vector<256x96xf32>
    %c0_71 = arith.constant 0 : index
    %c0_72 = arith.constant 0 : index
    %120 = vector.load %arg5[%c0_71, %c0_72] : memref<1x96xf32, #tpu.memory_space<vmem>>, vector<1x96xf32>
    %121 = vector.broadcast %120 : vector<1x96xf32> to vector<256x96xf32>
    %122 = arith.mulf %119, %121 : vector<256x96xf32>
    %c0_73 = arith.constant 0 : index
    %c0_74 = arith.constant 0 : index
    %123 = vector.load %arg6[%c0_73, %c0_74] : memref<1x96xf32, #tpu.memory_space<vmem>>, vector<1x96xf32>
    %124 = vector.broadcast %123 : vector<1x96xf32> to vector<256x96xf32>
    %125 = arith.addf %122, %124 : vector<256x96xf32>
    %c64_i32_75 = arith.constant 64 : i32
    %126 = arith.addi %1, %c64_i32_75 : i32
    %c0_76 = arith.constant 0 : index
    %127 = arith.index_cast %126 : i32 to index
    %c80 = arith.constant 80 : index
    %128 = vector.load %arg2[%c0_76, %127, %c80] : memref<1x384x176xbf16, #tpu.memory_space<vmem>>, vector<1x256x96xbf16>
    %129 = vector.shape_cast %128 : vector<1x256x96xbf16> to vector<256x96xbf16>
    %130 = arith.extf %129 : vector<256x96xbf16> to vector<256x96xf32>
    %131 = arith.addf %125, %130 : vector<256x96xf32>
    %c0_77 = arith.constant 0 : index
    %c0_78 = arith.constant 0 : index
    %c0_79 = arith.constant 0 : index
    %132 = vector.load %arg7[%c0_77, %c0_78, %c0_79] : memref<1x256x96xf32, #tpu.memory_space<vmem>>, vector<1x256x96xf32>
    %133 = vector.shape_cast %132 : vector<1x256x96xf32> to vector<256x96xf32>
    %134 = vector.shape_cast %131 : vector<256x96xf32> to vector<1x256x96xf32>
    tpu.vector_store %arg7[%c0_77, %c0_78, %c0_79], %134 {strides = array<i32>} : memref<1x256x96xf32, #tpu.memory_space<vmem>>, vector<1x256x96xf32>,
    return
  }
  func.func @transform_0(%arg0: i32, %arg1: i32) -> (i32, i32, i32) {
    %c0_i32 = arith.constant 0 : i32
    %c0_i32_0 = arith.constant 0 : i32
    %c0_i32_1 = arith.constant 0 : i32
    return %arg0, %c0_i32, %c0_i32_0 : i32, i32, i32
  }
  func.func @transform_1(%arg0: i32, %arg1: i32) -> (i32, i32, i32) {
    %c0_i32 = arith.constant 0 : i32
    %c0_i32_0 = arith.constant 0 : i32
    %c0_i32_1 = arith.constant 0 : i32
    %c0_i32_2 = arith.constant 0 : i32
    return %c0_i32, %c0_i32_0, %c0_i32_1 : i32, i32, i32
  }
  func.func @transform_2(%arg0: i32, %arg1: i32) -> (i32, i32) {
    %c0_i32 = arith.constant 0 : i32
    %c0_i32_0 = arith.constant 0 : i32
    %c0_i32_1 = arith.constant 0 : i32
    return %c0_i32, %c0_i32_0 : i32, i32
  }
  func.func @transform_3(%arg0: i32, %arg1: i32) -> (i32, i32) {
    %c0_i32 = arith.constant 0 : i32
    %c0_i32_0 = arith.constant 0 : i32
    %c0_i32_1 = arith.constant 0 : i32
    return %c0_i32, %c0_i32_0 : i32, i32
  }
  func.func @transform_4(%arg0: i32, %arg1: i32) -> (i32, i32) {
    %c0_i32 = arith.constant 0 : i32
    %c0_i32_0 = arith.constant 0 : i32
    %c0_i32_1 = arith.constant 0 : i32
    return %c0_i32, %c0_i32_0 : i32, i32
  }
  func.func @transform_5(%arg0: i32, %arg1: i32) -> (i32, i32, i32) {
    %c0_i32 = arith.constant 0 : i32
    %c0_i32_0 = arith.constant 0 : i32
    return %arg0, %arg1, %c0_i32 : i32, i32, i32
  }
}

</mosaic_0001>

<bundles_post_ra>
// kernel: msconv_forward.2
= control target key start
LH: loop header
LB: loop body
LE: loop exit
PB: predicated region body
PF: predicated region fallthrough
CT: control target
= control target key end

     0   :  { %s1476_s18 = smov 0   ;;  %s1478_s19 = smov 0   ;;  %s1992_s0 = inlined_call_operand.vmem [shape: f32[2,96,256], index: 0, kind: input, shape index: {}]   ;;  %s1993_s1 = inlined_call_operand.vmem [shape: bf16[96,176], index: 1, kind: input, shape index: {}]   ;;  %s1994_s2 = inlined_call_operand.vmem [shape: f32[1,176], index: 2, kind: input, shape index: {}]   ;;  %s1995_s3 = inlined_call_operand.vmem [shape: f32[1,176], index: 3, kind: input, shape index: {}]   ;;  %s1996_s4 = inlined_call_operand.vmem [shape: f32[1,176], index: 4, kind: input, shape index: {}]   ;;  %s1997_s5 = inlined_call_operand.vmem [shape: bf16[2,256,176], index: 5, kind: output, shape index: {}]  }
   0x1   :  { %s1480_s20 = smov 0  }
   0x2 LB: > { %s27_s21 = sadd.s32 1, %s1439_s19  ;;  %p1266_p0 = scmp.ge.s32.totalorder %s1443_s20, 1  ;;  %s1443_s20 = sphi %s1480_s20, %s15_s20   ;;  %s1439_s19 = sphi %s1478_s19, %s2005_s19   ;;  %s1435_s18 = sphi %s1476_s18, %s2004_s18  }
   0x3   : > { %p29_p1 = scmp.ge.s32.totalorder %s27_s21, 2  ;;  %p208_p2 = scmp.lt.s32.totalorder %s1443_s20, 3 }
   0x5   : > { %s2007_s21 = smov (%p29_p1, %s27_s21), 0  ;;  %p209_p3 = pnand %p1266_p0, %p208_p2 }
   0x6   : > { %p246_p4 = scmp.lt.s32.totalorder (!%p209_p3), %s1435_s18, 1 }
   0x7   : > { %212 = sbr.rel (%p209_p3) target bundleno = 393 (0x189), region = 40 }
   0xc   : > { %v1403_v0 = vld [vmem:[%s1993_s1 + $0x54] ss:$8 sps:$4 sm:$0xff]   ;;  %v1405_v1 = vld [vmem:[%s1993_s1 + $0x50] ss:$8 sps:$4 sm:$0xff]   ;;  %v1445_v2 = vmov 0   ;;  %s2009_s18 = smov (!%p246_p4, %s1435_s18), 1 }
   0xd   : > { %488 = vmatprep.mubr.bf16.mxu0 %v1445_v2  ;;  %568 = vmatprep.mubr.bf16.mxu1 %v1445_v2  ;;  %v1406_v3 = vld [vmem:[%s1993_s1 + $0x44] ss:$8 sps:$4 sm:$0xff]   ;;  %v1408_v4 = vld [vmem:[%s1993_s1 + $0x40] ss:$8 sps:$4 sm:$0xff]   ;;  %s1377_s30 = smul.u32 192, %s2009_s18  ;;  %vm407_vm0 = vcmask 785408  }
   0xe   : > { %460 = vmatprep.subr.bf16.mxu0 %v1403_v0  ;;  %1365 = vmatprep.subr.bf16.mxu1 %v1403_v0  ;;  %v1409_v5 = vld [vmem:[%s1993_s1 + $0x34] ss:$8 sps:$4 sm:$0xff]   ;;  %v1411_v6 = vld [vmem:[%s1993_s1 + $0x30] ss:$8 sps:$4 sm:$0xff]   ;;  %v1412_v7 = vld [vmem:[%s1993_s1 + $0x24] ss:$8 sps:$4 sm:$0xff]  }
   0xf   : > { %461 = vmatpush1.bf16.msra.mxu0 %v1405_v1  ;;  %1371 = vmatpush1.bf16.msra.mxu1 %v1405_v1  ;;  %s1517_s10 = scalar_lea.vmem %s1992_s0, %s1377_s30  ;;  %v1414_v22 = vld [vmem:[%s1993_s1 + $0x20] ss:$8 sps:$4 sm:$0xff]   ;;  %v1415_v25 = vld [vmem:[%s1993_s1 + $0x14] ss:$8 sps:$4 sm:$0xff]   ;;  %v1417_v27 = vld [vmem:[%s1993_s1 + $0x10] ss:$8 sps:$4 sm:$0xff]   ;;  %v651_v1 = vlaneseq }
  0x10   : > { %462 = vmatprep.subr.bf16.mxu0 %v1406_v3  ;;  %1366 = vmatprep.subr.bf16.mxu1 %v1406_v3  ;;  %v268_v8 = vld [vmem:[%s1517_s10 + $0x8] sm:$0xff]  ;;  %v270_v9 = vld [vmem:[%s1517_s10 + $0x18] sm:$0xff]  ;;  %v267_v10 = vld [vmem:[%s1517_s10] sm:$0xff]  ;;  %vm1134_vm4 = vcmask 1043456   ;;  %vm1135_vm5 = vcmask 392196  }
  0x11   : > { %v292_v11 = vpack.c.bf16 %v270_v9, %v268_v8  ;;  %v269_v12 = vld [vmem:[%s1517_s10 + $0x10] sm:$0xff]  ;;  %v272_v13 = vld [vmem:[%s1517_s10 + $0x28] sm:$0xff]  ;;  %v274_v14 = vld [vmem:[%s1517_s10 + $0x38] sm:$0xff]  ;;  %v652_v3 = vshrl.u32 %v651_v1, 7 }
  0x12   : > { %v291_v15 = vpack.c.bf16 %v269_v12, %v267_v10  ;;  %v271_v16 = vld [vmem:[%s1517_s10 + $0x20] sm:$0xff]  ;;  %v273_v17 = vld [vmem:[%s1517_s10 + $0x30] sm:$0xff]  ;;  %v294_v18 = vpack.c.bf16 %v274_v14, %v272_v13  ;;  %v276_v20 = vld [vmem:[%s1517_s10 + $0x48] sm:$0xff] }
  0x13   : > { %463 = vmatpush1.bf16.msra.mxu0 %v1408_v4  ;;  %1372 = vmatpush1.bf16.msra.mxu1 %v1408_v4  ;;  %v293_v19 = vpack.c.bf16 %v273_v17, %v271_v16  ;;  %v278_v21 = vld [vmem:[%s1517_s10 + $0x58] sm:$0xff]  ;;  %v275_v23 = vld [vmem:[%s1517_s10 + $0x40] sm:$0xff]  ;;  %v277_v24 = vld [vmem:[%s1517_s10 + $0x50] sm:$0xff] }
  0x14   : > { %464 = vmatprep.subr.bf16.mxu0 %v1409_v5  ;;  %1367 = vmatprep.subr.bf16.mxu1 %v1409_v5  ;;  %v296_v26 = vpack.c.bf16 %v278_v21, %v276_v20  ;;  %v295_v28 = vpack.c.bf16 %v277_v24, %v275_v23  ;;  %v280_v29 = vld [vmem:[%s1517_s10 + $0x68] sm:$0xff]  ;;  %v282_v30 = vld [vmem:[%s1517_s10 + $0x78] sm:$0xff]  ;;  %v279_v31 = vld [vmem:[%s1517_s10 + $0x60] sm:$0xff]  ;;  %v653_v5 = vsub.s32 0, %v652_v3 }
  0x15   : > { %331 = vxpose.xlu1.c.b16.start [1/6] (short) %v292_v11, 128  ;;  %315 = vxpose.xlu0.c.b16.start [1/6] (short) %v291_v15, 128  ;;  %v281_v32 = vld [vmem:[%s1517_s10 + $0x70] sm:$0xff]  ;;  %v1418_v33 = vld [vmem:[%s1993_s1 + $0x4] ss:$8 sps:$4 sm:$0xff]   ;;  %v298_v34 = vpack.c.bf16 %v282_v30, %v280_v29  ;;  %v286_v37 = vld [vmem:[%s1517_s10 + $0x98] sm:$0xff] }
  0x16   : > { %v297_v35 = vpack.c.bf16 %v281_v32, %v279_v31  ;;  %v284_v36 = vld [vmem:[%s1517_s10 + $0x88] sm:$0xff]  ;;  %v283_v39 = vld [vmem:[%s1517_s10 + $0x80] sm:$0xff]  ;;  %v285_v40 = vld [vmem:[%s1517_s10 + $0x90] sm:$0xff] }
  0x17   : > { %465 = vmatpush1.bf16.msra.mxu0 %v1411_v6  ;;  %1373 = vmatpush1.bf16.msra.mxu1 %v1411_v6  ;;  %v1420_v38 = vld [vmem:[%s1993_s1] ss:$8 sps:$4 sm:$0xff]   ;;  %v300_v41 = vpack.c.bf16 %v286_v37, %v284_v36  ;;  %v299_v42 = vpack.c.bf16 %v285_v40, %v283_v39  ;;  %v290_v44 = vld [vmem:[%s1517_s10 + $0xb8] sm:$0xff]  ;;  %v289_v46 = vld [vmem:[%s1517_s10 + $0xb0] sm:$0xff] }
  0x18   : > { %466 = vmatprep.subr.bf16.mxu0 %v1412_v7  ;;  %1368 = vmatprep.subr.bf16.mxu1 %v1412_v7  ;;  %v288_v43 = vld [vmem:[%s1517_s10 + $0xa8] sm:$0xff]  ;;  %v287_v45 = vld [vmem:[%s1517_s10 + $0xa0] sm:$0xff]  ;;  %v657_v7 = vsub.s32 1, %v652_v3  ;;  %s1332_s10 = sshll.u32 %s2009_s18, 8  ;;  %vm1645_vm6 = vmor %vm1135_vm5, %vm1134_vm4 }
  0x19   : > { %332 = vxpose.xlu1.c.b16.cont [2/6] (short) %v294_v18, 128  ;;  %316 = vxpose.xlu0.c.b16.cont [2/6] (short) %v293_v19, 128  ;;  %v302_v47 = vpack.c.bf16 %v290_v44, %v288_v43  ;;  %v301_v48 = vpack.c.bf16 %v289_v46, %v287_v45  ;;  %v801_v4 = vld [vmem:[%s1996_s4] sm:$0x3]  ;;  %s1642_s12 = scalar_lea.vmem %s1997_s5, %s1332_s10 }
  0x1a   : > { %v649_v6 = vld [vmem:[%s1994_s2] sm:$0x3]  ;;  %vm802_vm1 = vcmp.gt.f32.partialorder %v801_v4, 0.5 }
  0x1b   : > { %467 = vmatpush1.bf16.msra.mxu0 %v1414_v22  ;;  %1374 = vmatpush1.bf16.msra.mxu1 %v1414_v22  ;;  %v725_v8 = vld [vmem:[%s1995_s3] sm:$0x3]  ;;  %v1603_v9 = vrot.slane %v649_v6, %v653_v5  ;;  %v867_v10 = vsel %vm802_vm1, 1, %v1445_v2  ;;  %v1608_v12 = vrot.slane %v649_v6, %v657_v7 }
  0x1c   : > { %468 = vmatprep.subr.bf16.mxu0 %v1415_v25  ;;  %1369 = vmatprep.subr.bf16.mxu1 %v1415_v25  ;;  %v1606_v11 = vrot.slane %v725_v8, %v653_v5  ;;  %v871_v13 = vrot.slane %v867_v10, %v653_v5  ;;  %v875_v15 = vrot.slane %v867_v10, %v657_v7 }
  0x1d   : > { %333 = vxpose.xlu1.c.b16.cont [3/6] (short) %v296_v26, 128  ;;  %317 = vxpose.xlu0.c.b16.cont [3/6] (short) %v295_v28, 128  ;;  %v1611_v18 = vrot.slane %v725_v8, %v657_v7 }
  0x1e   : > { %vm1617_vm2 = vcmp.eq.s32.totalorder %v871_v13, 1  ;;  %vm1622_vm3 = vcmp.eq.s32.totalorder %v875_v15, 1 }
  0x1f   : > { %469 = vmatpush1.bf16.msra.mxu0 %v1417_v27  ;;  %1375 = vmatpush1.bf16.msra.mxu1 %v1417_v27 }
  0x20   : > { %470 = vmatprep.subr.bf16.mxu0 %v1418_v33  ;;  %1370 = vmatprep.subr.bf16.mxu1 %v1418_v33 }
  0x21   : > { %334 = vxpose.xlu1.c.b16.cont [4/6] (short) %v298_v34, 128  ;;  %318 = vxpose.xlu0.c.b16.cont [4/6] (short) %v297_v35, 128 }
  0x23   : > { %471 = vmatpush1.bf16.msra.mxu0 %v1420_v38  ;;  %1376 = vmatpush1.bf16.msra.mxu1 %v1420_v38 }
  0x25   : > { %335 = vxpose.xlu1.c.b16.cont [5/6] (short) %v300_v41, 128  ;;  %319 = vxpose.xlu0.c.b16.cont [5/6] (short) %v299_v42, 128 }
  0x29   : > { %336 = vxpose.xlu1.c.b16.end [6/6] (short) %v302_v47, 128  ;;  %320 = vxpose.xlu0.c.b16.end [6/6] (short) %v301_v48, 128 }
  0x77   : > { %v339_v49 = vpop.trf.xlu1  ;;  %v323_v50 = vpop.trf.xlu0 }
  0x78   : > { %1290 = vmatmul.mubr.msk.bf16.vlgmr.msra.gmra.mxu1 %vm407_vm0, %v339_v49  ;;  %1282 = vmatmul.mubr.msk.bf16.vlgmr.msra.gmra.mxu0 %vm407_vm0, %v323_v50 }
  0x79   : > { %578 = vmatprep.mubr.bf16.mxu1 %v1445_v2  ;;  %498 = vmatprep.mubr.bf16.mxu0 %v1445_v2 }
  0x7b   : > { %v340_v51 = vpop.trf.xlu1  ;;  %v324_v52 = vpop.trf.xlu0 }
  0x7f   : > { %v341_v53 = vpop.trf.xlu1  ;;  %v325_v54 = vpop.trf.xlu0 }
  0x80   : > { %1291 = vmatmul.mubr.msk.bf16.gmra.mxu1 %vm407_vm0, %v340_v51  ;;  %1283 = vmatmul.mubr.msk.bf16.gmra.mxu0 %vm407_vm0, %v324_v52 }
  0x81   : > { %588 = vmatprep.mubr.bf16.mxu1 %v1445_v2  ;;  %508 = vmatprep.mubr.bf16.mxu0 %v1445_v2 }
  0x83   : > { %v342_v55 = vpop.trf.xlu1  ;;  %v326_v56 = vpop.trf.xlu0 }
  0x87   : > { %v343_v57 = vpop.trf.xlu1  ;;  %v327_v58 = vpop.trf.xlu0 }
  0x88   : > { %1292 = vmatmul.mubr.msk.bf16.gmra.mxu1 %vm407_vm0, %v341_v53  ;;  %1284 = vmatmul.mubr.msk.bf16.gmra.mxu0 %vm407_vm0, %v325_v54 }
  0x89   : > { %598 = vmatprep.mubr.bf16.mxu1 %v1445_v2  ;;  %518 = vmatprep.mubr.bf16.mxu0 %v1445_v2 }
  0x8b   : > { %v344_v59 = vpop.trf.xlu1  ;;  %v328_v60 = vpop.trf.xlu0 }
  0x8f   : > { %v345_v61 = vpop.trf.xlu1  ;;  %v329_v62 = vpop.trf.xlu0 }
  0x90   : > { %1293 = vmatmul.mubr.msk.bf16.gmra.mxu1 %vm407_vm0, %v342_v55  ;;  %1285 = vmatmul.mubr.msk.bf16.gmra.mxu0 %vm407_vm0, %v326_v56 }
  0x91   : > { %608 = vmatprep.mubr.bf16.mxu1 %v1445_v2  ;;  %528 = vmatprep.mubr.bf16.mxu0 %v1445_v2 }
  0x93   : > { %v346_v63 = vpop.trf.xlu1  ;;  %v330_v0 = vpop.trf.xlu0 }
  0x98   : > { %1294 = vmatmul.mubr.msk.bf16.gmra.mxu1 %vm407_vm0, %v343_v57  ;;  %1286 = vmatmul.mubr.msk.bf16.gmra.mxu0 %vm407_vm0, %v327_v58 }
  0x99   : > { %618 = vmatprep.mubr.bf16.mxu1 %v1445_v2  ;;  %538 = vmatprep.mubr.bf16.mxu0 %v1445_v2 }
  0xa0   : > { %1295 = vmatmul.mubr.msk.bf16.gmra.mxu1 %vm407_vm0, %v344_v59  ;;  %1287 = vmatmul.mubr.msk.bf16.gmra.mxu0 %vm407_vm0, %v328_v60 }
  0xa1   : > { %628 = vmatprep.mubr.bf16.mxu1 %v1445_v2  ;;  %548 = vmatprep.mubr.bf16.mxu0 %v1445_v2 }
  0xa8   : > { %1296 = vmatmul.mubr.msk.bf16.gmra.mxu1 %vm407_vm0, %v345_v61  ;;  %1288 = vmatmul.mubr.msk.bf16.gmra.mxu0 %vm407_vm0, %v329_v62 }
  0xa9   : > { %638 = vmatprep.mubr.bf16.mxu1 %v1445_v2  ;;  %558 = vmatprep.mubr.bf16.mxu0 %v1445_v2 }
  0xb0   : > { %1297 = vmatmul.mubr.msk.bf16.gmra.mxu1 %vm407_vm0, %v346_v63  ;;  %1289 = vmatmul.mubr.msk.bf16.gmra.mxu0 %vm407_vm0, %v330_v0 }
 0x138   : > { %v570_v14 = vpop.f32.mrf.mxu1  ;;  %v490_v16 = vpop.f32.mrf.mxu0 }
 0x139   : > { %v693_v17 = vmul.f32 %v1603_v9, %v570_v14  ;;  %v661_v19 = vmul.f32 %v1603_v9, %v490_v16 }
 0x13a   : > { %v572_v20 = vpop.f32.mrf.mxu1  ;;  %v492_v22 = vpop.f32.mrf.mxu0 }
 0x13b   : > { %v769_v21 = vadd.f32 %v1606_v11, %v693_v17  ;;  %v694_v2 = vmul.f32 %v1608_v12, %v572_v20  ;;  %v737_v23 = vadd.f32 %v1606_v11, %v661_v19  ;;  %v662_v25 = vmul.f32 %v1608_v12, %v492_v22 }
 0x13c   : > { %v574_v27 = vpop.f32.mrf.mxu1  ;;  %v494_v30 = vpop.f32.mrf.mxu0 }
 0x13d   : > { %v835_v28 = vmax.f32 %v769_v21, 0.0  ;;  %v770_v29 = vadd.f32 %v1611_v18, %v694_v2  ;;  %v695_v31 = vmul.f32 %v1603_v9, %v574_v27  ;;  %v803_v32 = vmax.f32 %v737_v23, 0.0 }
 0x13e   : > { %v738_v33 = vadd.f32 %v1611_v18, %v662_v25  ;;  %v663_v34 = vmul.f32 %v1603_v9, %v494_v30  ;;  %v576_v35 = vpop.f32.mrf.mxu1  ;;  %v496_v39 = vpop.f32.mrf.mxu0 }
 0x13f   : > { %v910_v36 = vsel %vm1617_vm2, %v835_v28, %v769_v21  ;;  %v836_v37 = vmax.f32 %v770_v29, 0.0  ;;  %v771_v38 = vadd.f32 %v1606_v11, %v695_v31  ;;  %v696_v40 = vmul.f32 %v1608_v12, %v576_v35 }
 0x140   : > { %v878_v41 = vsel %vm1617_vm2, %v803_v32, %v737_v23  ;;  %v804_v42 = vmax.f32 %v738_v33, 0.0  ;;  %v739_v43 = vadd.f32 %v1606_v11, %v663_v34  ;;  %v664_v44 = vmul.f32 %v1608_v12, %v496_v39  ;;  %v580_v45 = vpop.f32.mrf.mxu1  ;;  %v500_v50 = vpop.f32.mrf.mxu0 }
 0x141   : > { %v911_v47 = vsel %vm1622_vm3, %v836_v37, %v770_v29  ;;  %v837_v48 = vmax.f32 %v771_v38, 0.0  ;;  %v772_v49 = vadd.f32 %v1611_v18, %v696_v40  ;;  %v697_v51 = vmul.f32 %v1603_v9, %v580_v45 }
 0x142   : > { %v879_v52 = vsel %vm1622_vm3, %v804_v42, %v738_v33  ;;  %v1349_v53 = vpack.c.bf16 %v911_v47, %v910_v36  ;;  %v805_v54 = vmax.f32 %v739_v43, 0.0  ;;  %v740_v55 = vadd.f32 %v1611_v18, %v664_v44  ;;  %v582_v56 = vpop.f32.mrf.mxu1  ;;  %v502_v61 = vpop.f32.mrf.mxu0 }
 0x143   : > { %v1333_v57 = vpack.c.bf16 %v879_v52, %v878_v41  ;;  %v912_v58 = vsel %vm1617_vm2, %v837_v48, %v771_v38  ;;  %v838_v59 = vmax.f32 %v772_v49, 0.0  ;;  %v665_v60 = vmul.f32 %v1603_v9, %v500_v50 }
 0x144   : > { %1153 = vst.msk [vmem:[%s1642_s12 + $0x80] sm:$0xff] %vm1645_vm6, %v1349_v53  ;;  %v880_v62 = vsel %vm1617_vm2, %v805_v54, %v739_v43  ;;  %v806_v63 = vmax.f32 %v740_v55, 0.0  ;;  %v773_v0 = vadd.f32 %v1606_v11, %v697_v51  ;;  %v666_v1 = vmul.f32 %v1608_v12, %v502_v61  ;;  %v584_v3 = vpop.f32.mrf.mxu1  ;;  %v504_v7 = vpop.f32.mrf.mxu0 }
 0x145   : > { %1137 = vst.msk [vmem:[%s1642_s12] sm:$0xff] %vm1645_vm6, %v1333_v57  ;;  %v913_v4 = vsel %vm1622_vm3, %v838_v59, %v772_v49  ;;  %v741_v5 = vadd.f32 %v1606_v11, %v665_v60  ;;  %v698_v6 = vmul.f32 %v1608_v12, %v582_v56  ;;  %v699_v8 = vmul.f32 %v1603_v9, %v584_v3 }
 0x146   : > { %v881_v10 = vsel %vm1622_vm3, %v806_v63, %v740_v55  ;;  %v1350_v13 = vpack.c.bf16 %v913_v4, %v912_v58  ;;  %v839_v14 = vmax.f32 %v773_v0, 0.0  ;;  %v742_v15 = vadd.f32 %v1611_v18, %v666_v1  ;;  %v586_v16 = vpop.f32.mrf.mxu1  ;;  %v506_v22 = vpop.f32.mrf.mxu0 }
 0x147   : > { %v1334_v17 = vpack.c.bf16 %v881_v10, %v880_v62  ;;  %v807_v19 = vmax.f32 %v741_v5, 0.0  ;;  %v774_v20 = vadd.f32 %v1611_v18, %v698_v6  ;;  %v667_v21 = vmul.f32 %v1603_v9, %v504_v7 }
 0x148   : > { %1154 = vst.msk [vmem:[%s1642_s12 + $0x88] sm:$0xff] %vm1645_vm6, %v1350_v13  ;;  %v914_v2 = vsel %vm1617_vm2, %v839_v14, %v773_v0  ;;  %v808_v23 = vmax.f32 %v742_v15, 0.0  ;;  %v775_v25 = vadd.f32 %v1606_v11, %v699_v8  ;;  %v668_v27 = vmul.f32 %v1608_v12, %v506_v22  ;;  %v590_v28 = vpop.f32.mrf.mxu1  ;;  %v510_v33 = vpop.f32.mrf.mxu0 }
 0x149   : > { %1138 = vst.msk [vmem:[%s1642_s12 + $0x8] sm:$0xff] %vm1645_vm6, %v1334_v17  ;;  %v882_v29 = vsel %vm1617_vm2, %v807_v19, %v741_v5  ;;  %v840_v30 = vmax.f32 %v774_v20, 0.0  ;;  %v743_v31 = vadd.f32 %v1606_v11, %v667_v21  ;;  %v700_v32 = vmul.f32 %v1608_v12, %v586_v16 }
 0x14a   : > { %v883_v34 = vsel %vm1622_vm3, %v808_v23, %v742_v15  ;;  %v841_v35 = vmax.f32 %v775_v25, 0.0  ;;  %v744_v36 = vadd.f32 %v1611_v18, %v668_v27  ;;  %v669_v37 = vmul.f32 %v1603_v9, %v510_v33  ;;  %v592_v38 = vpop.f32.mrf.mxu1  ;;  %v512_v43 = vpop.f32.mrf.mxu0 }
 0x14b   : > { %v1335_v39 = vpack.c.bf16 %v883_v34, %v882_v29  ;;  %v915_v40 = vsel %vm1622_vm3, %v840_v30, %v774_v20  ;;  %v809_v41 = vmax.f32 %v743_v31, 0.0  ;;  %v776_v42 = vadd.f32 %v1611_v18, %v700_v32 }
 0x14c   : > { %v1351_v44 = vpack.c.bf16 %v915_v40, %v914_v2  ;;  %v916_v45 = vsel %vm1617_vm2, %v841_v35, %v775_v25  ;;  %v810_v47 = vmax.f32 %v744_v36, 0.0  ;;  %v745_v48 = vadd.f32 %v1606_v11, %v669_v37  ;;  %v594_v49 = vpop.f32.mrf.mxu1  ;;  %v514_v54 = vpop.f32.mrf.mxu0 }
 0x14d   : > { %1139 = vst.msk [vmem:[%s1642_s12 + $0x10] sm:$0xff] %vm1645_vm6, %v1335_v39  ;;  %v884_v50 = vsel %vm1617_vm2, %v809_v41, %v743_v31  ;;  %v842_v51 = vmax.f32 %v776_v42, 0.0  ;;  %v701_v52 = vmul.f32 %v1603_v9, %v590_v28  ;;  %v670_v53 = vmul.f32 %v1608_v12, %v512_v43 }
 0x14e   : > { %1155 = vst.msk [vmem:[%s1642_s12 + $0x90] sm:$0xff] %vm1645_vm6, %v1351_v44  ;;  %v885_v55 = vsel %vm1622_vm3, %v810_v47, %v744_v36  ;;  %v811_v56 = vmax.f32 %v745_v48, 0.0  ;;  %v702_v57 = vmul.f32 %v1608_v12, %v592_v38  ;;  %v671_v58 = vmul.f32 %v1603_v9, %v514_v54  ;;  %v596_v59 = vpop.f32.mrf.mxu1  ;;  %v516_v0 = vpop.f32.mrf.mxu0 }
 0x14f   : > { %v1336_v60 = vpack.c.bf16 %v885_v55, %v884_v50  ;;  %v917_v61 = vsel %vm1622_vm3, %v842_v51, %v776_v42  ;;  %v777_v62 = vadd.f32 %v1606_v11, %v701_v52  ;;  %v746_v63 = vadd.f32 %v1611_v18, %v670_v53 }
 0x150   : > { %v1352_v1 = vpack.c.bf16 %v917_v61, %v916_v45  ;;  %v886_v3 = vsel %vm1617_vm2, %v811_v56, %v745_v48  ;;  %v778_v4 = vadd.f32 %v1611_v18, %v702_v57  ;;  %v747_v5 = vadd.f32 %v1606_v11, %v671_v58  ;;  %v600_v6 = vpop.f32.mrf.mxu1  ;;  %v520_v14 = vpop.f32.mrf.mxu0 }
 0x151   : > { %1140 = vst.msk [vmem:[%s1642_s12 + $0x18] sm:$0xff] %vm1645_vm6, %v1336_v60  ;;  %v843_v7 = vmax.f32 %v777_v62, 0.0  ;;  %v812_v8 = vmax.f32 %v746_v63, 0.0  ;;  %v703_v10 = vmul.f32 %v1603_v9, %v594_v49  ;;  %v672_v13 = vmul.f32 %v1608_v12, %v516_v0 }
 0x152   : > { %1156 = vst.msk [vmem:[%s1642_s12 + $0x98] sm:$0xff] %vm1645_vm6, %v1352_v1  ;;  %v844_v15 = vmax.f32 %v778_v4, 0.0  ;;  %v813_v16 = vmax.f32 %v747_v5, 0.0  ;;  %v704_v17 = vmul.f32 %v1608_v12, %v596_v59  ;;  %v673_v19 = vmul.f32 %v1603_v9, %v520_v14  ;;  %v602_v20 = vpop.f32.mrf.mxu1  ;;  %v522_v25 = vpop.f32.mrf.mxu0 }
 0x153   : > { %v918_v21 = vsel %vm1617_vm2, %v843_v7, %v777_v62  ;;  %v887_v22 = vsel %vm1622_vm3, %v812_v8, %v746_v63  ;;  %v779_v2 = vadd.f32 %v1606_v11, %v703_v10  ;;  %v748_v23 = vadd.f32 %v1611_v18, %v672_v13 }
 0x154   : > { %v1337_v27 = vpack.c.bf16 %v887_v22, %v886_v3  ;;  %v919_v28 = vsel %vm1622_vm3, %v844_v15, %v778_v4  ;;  %v888_v29 = vsel %vm1617_vm2, %v813_v16, %v747_v5  ;;  %v780_v30 = vadd.f32 %v1611_v18, %v704_v17  ;;  %v604_v31 = vpop.f32.mrf.mxu1  ;;  %v524_v36 = vpop.f32.mrf.mxu0 }
 0x155   : > { %v1353_v32 = vpack.c.bf16 %v919_v28, %v918_v21  ;;  %v845_v33 = vmax.f32 %v779_v2, 0.0  ;;  %v814_v34 = vmax.f32 %v748_v23, 0.0  ;;  %v749_v35 = vadd.f32 %v1606_v11, %v673_v19 }
 0x156   : > { %1141 = vst.msk [vmem:[%s1642_s12 + $0x20] sm:$0xff] %vm1645_vm6, %v1337_v27  ;;  %v846_v37 = vmax.f32 %v780_v30, 0.0  ;;  %v705_v38 = vmul.f32 %v1603_v9, %v600_v6  ;;  %v674_v39 = vmul.f32 %v1608_v12, %v522_v25  ;;  %v706_v40 = vmul.f32 %v1608_v12, %v602_v20  ;;  %v606_v41 = vpop.f32.mrf.mxu1  ;;  %v526_v47 = vpop.f32.mrf.mxu0 }
 0x157   : > { %1157 = vst.msk [vmem:[%s1642_s12 + $0xa0] sm:$0xff] %vm1645_vm6, %v1353_v32  ;;  %v920_v42 = vsel %vm1617_vm2, %v845_v33, %v779_v2  ;;  %v889_v43 = vsel %vm1622_vm3, %v814_v34, %v748_v23  ;;  %v815_v44 = vmax.f32 %v749_v35, 0.0  ;;  %v675_v45 = vmul.f32 %v1603_v9, %v524_v36 }
 0x158   : > { %v1338_v48 = vpack.c.bf16 %v889_v43, %v888_v29  ;;  %v921_v49 = vsel %vm1622_vm3, %v846_v37, %v780_v30  ;;  %v781_v50 = vadd.f32 %v1606_v11, %v705_v38  ;;  %v750_v51 = vadd.f32 %v1611_v18, %v674_v39  ;;  %v610_v52 = vpop.f32.mrf.mxu1  ;;  %v530_v57 = vpop.f32.mrf.mxu0 }
 0x159   : > { %v1354_v53 = vpack.c.bf16 %v921_v49, %v920_v42  ;;  %v890_v54 = vsel %vm1617_vm2, %v815_v44, %v749_v35  ;;  %v782_v55 = vadd.f32 %v1611_v18, %v706_v40  ;;  %v751_v56 = vadd.f32 %v1606_v11, %v675_v45 }
 0x15a   : > { %1142 = vst.msk [vmem:[%s1642_s12 + $0x28] sm:$0xff] %vm1645_vm6, %v1338_v48  ;;  %v847_v58 = vmax.f32 %v781_v50, 0.0  ;;  %v816_v59 = vmax.f32 %v750_v51, 0.0  ;;  %v707_v60 = vmul.f32 %v1603_v9, %v604_v31  ;;  %v676_v61 = vmul.f32 %v1608_v12, %v526_v47  ;;  %v612_v62 = vpop.f32.mrf.mxu1  ;;  %v532_v4 = vpop.f32.mrf.mxu0 }
 0x15b   : > { %1158 = vst.msk [vmem:[%s1642_s12 + $0xa8] sm:$0xff] %vm1645_vm6, %v1354_v53  ;;  %v848_v63 = vmax.f32 %v782_v55, 0.0  ;;  %v817_v0 = vmax.f32 %v751_v56, 0.0  ;;  %v708_v1 = vmul.f32 %v1608_v12, %v606_v41  ;;  %v677_v3 = vmul.f32 %v1603_v9, %v530_v57 }
 0x15c   : > { %v922_v5 = vsel %vm1617_vm2, %v847_v58, %v781_v50  ;;  %v891_v6 = vsel %vm1622_vm3, %v816_v59, %v750_v51  ;;  %v783_v7 = vadd.f32 %v1606_v11, %v707_v60  ;;  %v752_v8 = vadd.f32 %v1611_v18, %v676_v61  ;;  %v614_v10 = vpop.f32.mrf.mxu1  ;;  %v534_v17 = vpop.f32.mrf.mxu0 }
 0x15d   : > { %v1339_v13 = vpack.c.bf16 %v891_v6, %v890_v54  ;;  %v923_v14 = vsel %vm1622_vm3, %v848_v63, %v782_v55  ;;  %v892_v15 = vsel %vm1617_vm2, %v817_v0, %v751_v56  ;;  %v784_v16 = vadd.f32 %v1611_v18, %v708_v1 }
 0x15e   : > { %v1355_v19 = vpack.c.bf16 %v923_v14, %v922_v5  ;;  %v849_v20 = vmax.f32 %v783_v7, 0.0  ;;  %v818_v21 = vmax.f32 %v752_v8, 0.0  ;;  %v753_v22 = vadd.f32 %v1606_v11, %v677_v3  ;;  %v616_v2 = vpop.f32.mrf.mxu1  ;;  %v536_v29 = vpop.f32.mrf.mxu0 }
 0x15f   : > { %1143 = vst.msk [vmem:[%s1642_s12 + $0x30] sm:$0xff] %vm1645_vm6, %v1339_v13  ;;  %v850_v23 = vmax.f32 %v784_v16, 0.0  ;;  %v709_v25 = vmul.f32 %v1603_v9, %v610_v52  ;;  %v678_v27 = vmul.f32 %v1608_v12, %v532_v4  ;;  %v710_v28 = vmul.f32 %v1608_v12, %v612_v62 }
 0x160   : > { %1159 = vst.msk [vmem:[%s1642_s12 + $0xb0] sm:$0xff] %vm1645_vm6, %v1355_v19  ;;  %v924_v30 = vsel %vm1617_vm2, %v849_v20, %v783_v7  ;;  %v893_v31 = vsel %vm1622_vm3, %v818_v21, %v752_v8  ;;  %v819_v32 = vmax.f32 %v753_v22, 0.0  ;;  %v679_v33 = vmul.f32 %v1603_v9, %v534_v17  ;;  %v620_v34 = vpop.f32.mrf.mxu1  ;;  %v540_v39 = vpop.f32.mrf.mxu0 }
 0x161   : > { %v1340_v35 = vpack.c.bf16 %v893_v31, %v892_v15  ;;  %v925_v36 = vsel %vm1622_vm3, %v850_v23, %v784_v16  ;;  %v785_v37 = vadd.f32 %v1606_v11, %v709_v25  ;;  %v754_v38 = vadd.f32 %v1611_v18, %v678_v27 }
 0x162   : > { %v1356_v40 = vpack.c.bf16 %v925_v36, %v924_v30  ;;  %v894_v41 = vsel %vm1617_vm2, %v819_v32, %v753_v22  ;;  %v786_v42 = vadd.f32 %v1611_v18, %v710_v28  ;;  %v755_v43 = vadd.f32 %v1606_v11, %v679_v33  ;;  %v622_v44 = vpop.f32.mrf.mxu1  ;;  %v542_v50 = vpop.f32.mrf.mxu0 }
 0x163   : > { %1144 = vst.msk [vmem:[%s1642_s12 + $0x38] sm:$0xff] %vm1645_vm6, %v1340_v35  ;;  %v851_v45 = vmax.f32 %v785_v37, 0.0  ;;  %v820_v47 = vmax.f32 %v754_v38, 0.0  ;;  %v711_v48 = vmul.f32 %v1603_v9, %v614_v10  ;;  %v680_v49 = vmul.f32 %v1608_v12, %v536_v29 }
 0x164   : > { %1160 = vst.msk [vmem:[%s1642_s12 + $0xb8] sm:$0xff] %vm1645_vm6, %v1356_v40  ;;  %v852_v51 = vmax.f32 %v786_v42, 0.0  ;;  %v821_v52 = vmax.f32 %v755_v43, 0.0  ;;  %v712_v53 = vmul.f32 %v1608_v12, %v616_v2  ;;  %v681_v54 = vmul.f32 %v1603_v9, %v540_v39  ;;  %v624_v55 = vpop.f32.mrf.mxu1  ;;  %v544_v60 = vpop.f32.mrf.mxu0 }
 0x165   : > { %v926_v56 = vsel %vm1617_vm2, %v851_v45, %v785_v37  ;;  %v895_v57 = vsel %vm1622_vm3, %v820_v47, %v754_v38  ;;  %v787_v58 = vadd.f32 %v1606_v11, %v711_v48  ;;  %v756_v59 = vadd.f32 %v1611_v18, %v680_v49 }
 0x166   : > { %v1341_v61 = vpack.c.bf16 %v895_v57, %v894_v41  ;;  %v927_v62 = vsel %vm1622_vm3, %v852_v51, %v786_v42  ;;  %v896_v63 = vsel %vm1617_vm2, %v821_v52, %v755_v43  ;;  %v788_v0 = vadd.f32 %v1611_v18, %v712_v53  ;;  %v626_v1 = vpop.f32.mrf.mxu1  ;;  %v546_v7 = vpop.f32.mrf.mxu0 }
 0x167   : > { %v1357_v3 = vpack.c.bf16 %v927_v62, %v926_v56  ;;  %v853_v4 = vmax.f32 %v787_v58, 0.0  ;;  %v822_v5 = vmax.f32 %v756_v59, 0.0  ;;  %v757_v6 = vadd.f32 %v1606_v11, %v681_v54 }
 0x168   : > { %1145 = vst.msk [vmem:[%s1642_s12 + $0x40] sm:$0xff] %vm1645_vm6, %v1341_v61  ;;  %v854_v8 = vmax.f32 %v788_v0, 0.0  ;;  %v713_v10 = vmul.f32 %v1603_v9, %v620_v34  ;;  %v682_v13 = vmul.f32 %v1608_v12, %v542_v50  ;;  %v714_v14 = vmul.f32 %v1608_v12, %v622_v44  ;;  %v630_v15 = vpop.f32.mrf.mxu1  ;;  %v550_v21 = vpop.f32.mrf.mxu0 }
 0x169   : > { %1161 = vst.msk [vmem:[%s1642_s12 + $0xc0] sm:$0xff] %vm1645_vm6, %v1357_v3  ;;  %v928_v16 = vsel %vm1617_vm2, %v853_v4, %v787_v58  ;;  %v897_v17 = vsel %vm1622_vm3, %v822_v5, %v756_v59  ;;  %v823_v19 = vmax.f32 %v757_v6, 0.0  ;;  %v683_v20 = vmul.f32 %v1603_v9, %v544_v60 }
 0x16a   : > { %v1342_v22 = vpack.c.bf16 %v897_v17, %v896_v63  ;;  %v929_v2 = vsel %vm1622_vm3, %v854_v8, %v788_v0  ;;  %v789_v23 = vadd.f32 %v1606_v11, %v713_v10  ;;  %v758_v25 = vadd.f32 %v1611_v18, %v682_v13  ;;  %v632_v27 = vpop.f32.mrf.mxu1  ;;  %v552_v32 = vpop.f32.mrf.mxu0 }
 0x16b   : > { %v1358_v28 = vpack.c.bf16 %v929_v2, %v928_v16  ;;  %v898_v29 = vsel %vm1617_vm2, %v823_v19, %v757_v6  ;;  %v790_v30 = vadd.f32 %v1611_v18, %v714_v14  ;;  %v759_v31 = vadd.f32 %v1606_v11, %v683_v20 }
 0x16c   : > { %1146 = vst.msk [vmem:[%s1642_s12 + $0x48] sm:$0xff] %vm1645_vm6, %v1342_v22  ;;  %v855_v33 = vmax.f32 %v789_v23, 0.0  ;;  %v824_v34 = vmax.f32 %v758_v25, 0.0  ;;  %v715_v35 = vmul.f32 %v1603_v9, %v624_v55  ;;  %v684_v36 = vmul.f32 %v1608_v12, %v546_v7  ;;  %v634_v37 = vpop.f32.mrf.mxu1  ;;  %v554_v42 = vpop.f32.mrf.mxu0 }
 0x16d   : > { %1162 = vst.msk [vmem:[%s1642_s12 + $0xc8] sm:$0xff] %vm1645_vm6, %v1358_v28  ;;  %v856_v38 = vmax.f32 %v790_v30, 0.0  ;;  %v825_v39 = vmax.f32 %v759_v31, 0.0  ;;  %v716_v40 = vmul.f32 %v1608_v12, %v626_v1  ;;  %v685_v41 = vmul.f32 %v1603_v9, %v550_v21 }
 0x16e   : > { %v930_v43 = vsel %vm1617_vm2, %v855_v33, %v789_v23  ;;  %v899_v44 = vsel %vm1622_vm3, %v824_v34, %v758_v25  ;;  %v791_v45 = vadd.f32 %v1606_v11, %v715_v35  ;;  %v760_v47 = vadd.f32 %v1611_v18, %v684_v36  ;;  %v636_v48 = vpop.f32.mrf.mxu1  ;;  %v556_v53 = vpop.f32.mrf.mxu0 }
 0x16f   : > { %v1343_v49 = vpack.c.bf16 %v899_v44, %v898_v29  ;;  %v931_v50 = vsel %vm1622_vm3, %v856_v38, %v790_v30  ;;  %v900_v51 = vsel %vm1617_vm2, %v825_v39, %v759_v31  ;;  %v792_v52 = vadd.f32 %v1611_v18, %v716_v40 }
 0x170   : > { %v1359_v54 = vpack.c.bf16 %v931_v50, %v930_v43  ;;  %v857_v55 = vmax.f32 %v791_v45, 0.0  ;;  %v826_v56 = vmax.f32 %v760_v47, 0.0  ;;  %v761_v57 = vadd.f32 %v1606_v11, %v685_v41  ;;  %v640_v58 = vpop.f32.mrf.mxu1  ;;  %v560_v63 = vpop.f32.mrf.mxu0 }
 0x171   : > { %1147 = vst.msk [vmem:[%s1642_s12 + $0x50] sm:$0xff] %vm1645_vm6, %v1343_v49  ;;  %v858_v59 = vmax.f32 %v792_v52, 0.0  ;;  %v717_v60 = vmul.f32 %v1603_v9, %v630_v15  ;;  %v686_v61 = vmul.f32 %v1608_v12, %v552_v32  ;;  %v718_v62 = vmul.f32 %v1608_v12, %v632_v27 }
 0x172   : > { %1163 = vst.msk [vmem:[%s1642_s12 + $0xd0] sm:$0xff] %vm1645_vm6, %v1359_v54  ;;  %v932_v0 = vsel %vm1617_vm2, %v857_v55, %v791_v45  ;;  %v901_v1 = vsel %vm1622_vm3, %v826_v56, %v760_v47  ;;  %v827_v3 = vmax.f32 %v761_v57, 0.0  ;;  %v687_v4 = vmul.f32 %v1603_v9, %v554_v42  ;;  %v562_v10 = vpop.f32.mrf.mxu0  ;;  %v642_v17 = vpop.f32.mrf.mxu1 }
 0x173   : > { %v1344_v5 = vpack.c.bf16 %v901_v1, %v900_v51  ;;  %v933_v6 = vsel %vm1622_vm3, %v858_v59, %v792_v52  ;;  %v793_v7 = vadd.f32 %v1606_v11, %v717_v60  ;;  %v762_v8 = vadd.f32 %v1611_v18, %v686_v61 }
 0x174   : > { %v1360_v13 = vpack.c.bf16 %v933_v6, %v932_v0  ;;  %v902_v14 = vsel %vm1617_vm2, %v827_v3, %v761_v57  ;;  %v794_v15 = vadd.f32 %v1611_v18, %v718_v62  ;;  %v763_v16 = vadd.f32 %v1606_v11, %v687_v4  ;;  %v564_v32 = vpop.f32.mrf.mxu0 }
 0x175   : > { %1148 = vst.msk [vmem:[%s1642_s12 + $0x58] sm:$0xff] %vm1645_vm6, %v1344_v5  ;;  %v859_v19 = vmax.f32 %v793_v7, 0.0  ;;  %v828_v20 = vmax.f32 %v762_v8, 0.0  ;;  %v719_v21 = vmul.f32 %v1603_v9, %v634_v37  ;;  %v688_v22 = vmul.f32 %v1608_v12, %v556_v53  ;;  %v644_v37 = vpop.f32.mrf.mxu1 }
 0x176   : > { %1164 = vst.msk [vmem:[%s1642_s12 + $0xd8] sm:$0xff] %vm1645_vm6, %v1360_v13  ;;  %v860_v2 = vmax.f32 %v794_v15, 0.0  ;;  %v829_v23 = vmax.f32 %v763_v16, 0.0  ;;  %v720_v25 = vmul.f32 %v1608_v12, %v636_v48  ;;  %v689_v27 = vmul.f32 %v1603_v9, %v560_v63  ;;  %v566_v51 = vpop.f32.mrf.mxu0 }
 0x177   : > { %v934_v28 = vsel %vm1617_vm2, %v859_v19, %v793_v7  ;;  %v903_v29 = vsel %vm1622_vm3, %v828_v20, %v762_v8  ;;  %v795_v30 = vadd.f32 %v1606_v11, %v719_v21  ;;  %v764_v31 = vadd.f32 %v1611_v18, %v688_v22  ;;  %v646_v56 = vpop.f32.mrf.mxu1 }
 0x178   : > { %v1345_v33 = vpack.c.bf16 %v903_v29, %v902_v14  ;;  %v935_v34 = vsel %vm1622_vm3, %v860_v2, %v794_v15  ;;  %v904_v35 = vsel %vm1617_vm2, %v829_v23, %v763_v16  ;;  %v796_v36 = vadd.f32 %v1611_v18, %v720_v25 }
 0x179   : > { %v1361_v38 = vpack.c.bf16 %v935_v34, %v934_v28  ;;  %v861_v39 = vmax.f32 %v795_v30, 0.0  ;;  %v830_v40 = vmax.f32 %v764_v31, 0.0  ;;  %v765_v41 = vadd.f32 %v1606_v11, %v689_v27 }
 0x17a   : > { %1149 = vst.msk [vmem:[%s1642_s12 + $0x60] sm:$0xff] %vm1645_vm6, %v1345_v33  ;;  %v862_v42 = vmax.f32 %v796_v36, 0.0  ;;  %v721_v43 = vmul.f32 %v1603_v9, %v640_v58  ;;  %v690_v44 = vmul.f32 %v1608_v12, %v562_v10  ;;  %v722_v45 = vmul.f32 %v1608_v12, %v642_v17 }
 0x17b   : > { %1165 = vst.msk [vmem:[%s1642_s12 + $0xe0] sm:$0xff] %vm1645_vm6, %v1361_v38  ;;  %v936_v47 = vsel %vm1617_vm2, %v861_v39, %v795_v30  ;;  %v905_v48 = vsel %vm1622_vm3, %v830_v40, %v764_v31  ;;  %v831_v49 = vmax.f32 %v765_v41, 0.0  ;;  %v691_v50 = vmul.f32 %v1603_v9, %v564_v32 }
 0x17c   : > { %v1346_v52 = vpack.c.bf16 %v905_v48, %v904_v35  ;;  %v937_v53 = vsel %vm1622_vm3, %v862_v42, %v796_v36  ;;  %v797_v54 = vadd.f32 %v1606_v11, %v721_v43  ;;  %v766_v55 = vadd.f32 %v1611_v18, %v690_v44 }
 0x17d   : > { %v1362_v57 = vpack.c.bf16 %v937_v53, %v936_v47  ;;  %v798_v58 = vadd.f32 %v1611_v18, %v722_v45  ;;  %v767_v59 = vadd.f32 %v1606_v11, %v691_v50  ;;  %v723_v62 = vmul.f32 %v1603_v9, %v644_v37 }
 0x17e   : > { %1150 = vst.msk [vmem:[%s1642_s12 + $0x68] sm:$0xff] %vm1645_vm6, %v1346_v52  ;;  %v863_v60 = vmax.f32 %v797_v54, 0.0  ;;  %v832_v61 = vmax.f32 %v766_v55, 0.0  ;;  %v692_v63 = vmul.f32 %v1608_v12, %v566_v51  ;;  %v906_v0 = vsel %vm1617_vm2, %v831_v49, %v765_v41 }
 0x17f   : > { %1166 = vst.msk [vmem:[%s1642_s12 + $0xe8] sm:$0xff] %vm1645_vm6, %v1362_v57  ;;  %v864_v1 = vmax.f32 %v798_v58, 0.0  ;;  %v724_v3 = vmul.f32 %v1608_v12, %v646_v56  ;;  %v833_v5 = vmax.f32 %v767_v59, 0.0  ;;  %v799_v6 = vadd.f32 %v1606_v11, %v723_v62 }
 0x180   : > { %v907_v4 = vsel %vm1622_vm3, %v832_v61, %v766_v55  ;;  %v768_v9 = vadd.f32 %v1611_v18, %v692_v63  ;;  %v938_v7 = vsel %vm1617_vm2, %v863_v60, %v797_v54 }
 0x181   : > { %v1347_v8 = vpack.c.bf16 %v907_v4, %v906_v0  ;;  %v939_v10 = vsel %vm1622_vm3, %v864_v1, %v798_v58  ;;  %v800_v13 = vadd.f32 %v1611_v18, %v724_v3  ;;  %v865_v14 = vmax.f32 %v799_v6, 0.0 }
 0x182   : > { %v1363_v12 = vpack.c.bf16 %v939_v10, %v938_v7  ;;  %v834_v15 = vmax.f32 %v768_v9, 0.0  ;;  %v908_v16 = vsel %vm1617_vm2, %v833_v5, %v767_v59 }
 0x183   : > { %1151 = vst.msk [vmem:[%s1642_s12 + $0x70] sm:$0xff] %vm1645_vm6, %v1347_v8  ;;  %v866_v11 = vmax.f32 %v800_v13, 0.0  ;;  %v940_v19 = vsel %vm1617_vm2, %v865_v14, %v799_v6 }
 0x184   : > { %1167 = vst.msk [vmem:[%s1642_s12 + $0xf0] sm:$0xff] %vm1645_vm6, %v1363_v12  ;;  %v909_v17 = vsel %vm1622_vm3, %v834_v15, %v768_v9 }
 0x185   : > { %v1348_v18 = vpack.c.bf16 %v909_v17, %v908_v16  ;;  %v941_v20 = vsel %vm1622_vm3, %v866_v11, %v800_v13 }
 0x186   : > { %v1364_v21 = vpack.c.bf16 %v941_v20, %v940_v19 }
 0x187   : > { %1152 = vst.msk [vmem:[%s1642_s12 + $0x78] sm:$0xff] %vm1645_vm6, %v1348_v18 }
 0x188   : > { %1168 = vst.msk [vmem:[%s1642_s12 + $0xf8] sm:$0xff] %vm1645_vm6, %v1364_v21 }
 0x189 PF: > { %s15_s20 = sadd.s32 1, %s1443_s20   ;;  %s2004_s18 = smov %s1439_s19 }
 0x18a   : > { %p12_p5 = scmp.ge.s32.totalorder %s15_s20, 4   ;;  %s2005_s19 = smov %s2007_s21 }
 0x18c   :  { %14 = sbr.rel (!%p12_p5) target bundleno = 2 (0x2), region = 70 }

// kernel: msconv_forward.3
= control target key start
LH: loop header
LB: loop body
LE: loop exit
PB: predicated region body
PF: predicated region fallthrough
CT: control target
= control target key end

     0   :  { %10 = vsyncpa [#allocation3], 0  ;;  %s9870_s0 = inlined_call_operand.vmem [shape: bf16[2,384,176], index: 0, kind: input, shape index: {}]   ;;  %s9871_s1 = inlined_call_operand.vmem [shape: bf16[12,16,96], index: 1, kind: input, shape index: {}]   ;;  %s9872_s2 = inlined_call_operand.vmem [shape: bf16[16,96], index: 2, kind: input, shape index: {}]   ;;  %s9873_s3 = inlined_call_operand.vmem [shape: f32[1,96], index: 3, kind: input, shape index: {}]   ;;  %s9874_s4 = inlined_call_operand.vmem [shape: f32[1,96], index: 4, kind: input, shape index: {}]   ;;  %s9875_s5 = inlined_call_operand.hbm [shape: f32[2,256,96], index: 5, kind: output, shape index: {}]  }
   0x1   :  { %12 = vsyncpa [#allocation3 + $0x1], 0  ;;  %s7484_s18 = smov 0   ;;  %s7486_s19 = smov 0  }
   0x2   :  { %s7488_s20 = smov 0   ;;  %s7490_s21 = smov 0  }
   0x3   :  { %s7492_s22 = smov 0   ;;  %s7494_s23 = smov 0  }
   0x4 LB: > { %s5601_s24 = sadd.s32 4294967295, %s7444_s23   ;;  %s5602_s25 = sadd.s32 4294967294, %s7444_s23   ;;  %s7444_s23 = sphi %s7494_s23, %s18_s23   ;;  %s7440_s22 = sphi %s7492_s22, %s10199_s22   ;;  %s7436_s21 = sphi %s7490_s21, %s10198_s21   ;;  %s7432_s20 = sphi %s7488_s20, %s10197_s20   ;;  %s7428_s19 = sphi %s7486_s19, %s10196_s19   ;;  %s7424_s18 = sphi %s7484_s18, %s10195_s18  }
   0x5   : > { %s30_s26 = sadd.s32 1, %s7440_s22  ;;  %s149_s27 = sadd.s32 1, %s7432_s20 }
   0x6   : > { %p32_p0 = scmp.ge.s32.totalorder %s30_s26, 2  ;;  %p159_p1 = scmp.ne.s32.totalorder %s7432_s20, %s7428_s19 }
   0x7   : > { %p160_p2 = scmp.eq.s32.totalorder %s5601_s24, 1  ;;  %p165_p3 = scmp.ne.s32.totalorder %s7428_s19, %s7424_s18 }
   0x8   : > { %s10201_s26 = smov (%p32_p0, %s30_s26), 0  ;;  %p166_p5 = scmp.eq.s32.totalorder %s5602_s25, 1 }
   0x9   : > { %p7524_p4 = por %p160_p2, %p159_p1  ;;  %s144_s29 = ssub.s32 %s7440_s22, %s10201_s26 }
   0xa   : > { %p5605_p6 = scmp.ge.s32.totalorder %s7444_s23, 1  ;;  %p147_p7 = scmp.eq.s32.totalorder %s144_s29, 0 }
   0xb   : > { %p7531_p8 = por %p166_p5, %p165_p3  ;;  %p204_p9 = scmp.lt.s32.totalorder %s7444_s23, 3 }
   0xc   : > { %s7537_s6 = scalar_select %p147_p7, %s7432_s20, %s149_s27  }
   0xd   : > { %p205_p10 = pnand %p5605_p6, %p204_p9 }
   0xf   : > { %208 = sbr.rel (%p205_p10) target bundleno = 684 (0x2ac), region = 40 }
  0x14   : > { %v7179_v0 = vld [vmem:[%s9871_s1 + $0x8] sm:$0xff]   ;;  %p232_p11 = scmp.lt.s32.totalorder %s7436_s21, 1  ;;  %v7198_v1 = vld [vmem:[%s9871_s1] sm:$0xff]   ;;  %v7200_v2 = vld [vmem:[%s9871_s1 + $0x10] sm:$0xff]   ;;  %vm407_vm0 = vcmask 130048   ;;  %s7446_s24 = smov 112  }
  0x15   : > { %6954 = vmatprep.subr.bf16.mxu1 %v7179_v0  ;;  %6512 = vmatprep.subr.bf16.mxu0 %v7179_v0  ;;  %v7568_v11 = vld [vmem:[%s9871_s1 + $0x18] sm:$0xff]   ;;  %v7584_v18 = vld [vmem:[%s9871_s1 + $0x20] sm:$0xff]   ;;  %s7447_s10 = smov 96   ;;  %s7448_s7 = smov 80   ;;  %vm5364_vm1 = vcmask 392192   ;;  %vm5461_vm2 = vcmask 785408  }
  0x16   : > { %s233_s9 = scalar_select %p232_p11, %s7436_s21, 1  ;;  %6955 = vmatpush3.bf16.msra.mxu1 %v7179_v0  ;;  %6513 = vmatpush3.bf16.msra.mxu0 %v7179_v0 }
  0x17   : > { %6546 = vmatprep.subr.bf16.mxu1 %v7198_v1  ;;  %6580 = vmatprep.subr.bf16.mxu0 %v7200_v2  ;;  %s7449_s12 = smov 64   ;;  %s7450_s13 = smov 48  }
  0x18   : > { %s6956_s14 = smul.u32 384, %s233_s9  ;;  %s229_s15 = sand.u32 1, %s7428_s19  }
  0x19   : > { %s9502_s25 = sshll.u32 %s229_s15, 8  ;;  %s6290_s29 = sshll.u32 %s7436_s21, 12 }
  0x1a   : > { %s7553_s17 = scalar_lea.vmem %s9870_s0, %s6956_s14  ;;  %s9539_s27 = scalar_lea.vmem [#allocation2], %s9502_s25 }
  0x1b   : > { %v7180_v3 = vld [vmem:[%s7553_s17 + $0x20] ss:$8 sps:$4 sm:$0xff]   ;;  %v5658_v9 = vld [vmem:[%s7553_s17 + $0xd0] sm:$0xf]  ;;  %v5659_v10 = vld [vmem:[%s7553_s17 + $0xd8] sm:$0xf] }
  0x1c   : > { %v5656_v4 = vld [vmem:[%s7553_s17 + $0xc0] sm:$0xf]  ;;  %v5657_v5 = vld [vmem:[%s7553_s17 + $0xc8] sm:$0xf]  ;;  %1401 = vrot.lane.b32.xlu0 %v7180_v3, %s7446_s24  ;;  %v7572_v13 = vcombine.low %v5658_v9, %v5659_v10  ;;  %v5642_v14 = vld [vmem:[%s7553_s17 + $0x50] sm:$0xf] }
  0x1d   : > { %v5640_v6 = vld [vmem:[%s7553_s17 + $0x40] sm:$0xf]  ;;  %v7560_v7 = vcombine.low %v5656_v4, %v5657_v5  ;;  %v5641_v8 = vld [vmem:[%s7553_s17 + $0x48] sm:$0xf]  ;;  %v5643_v15 = vld [vmem:[%s7553_s17 + $0x58] sm:$0xf] }
  0x1e   : > { %v7570_v12 = vcombine.low %v5640_v6, %v5641_v8  ;;  %9941 = vst [vmem:[#allocation7_spill] sm:$0xff] %v7572_v13  ;;  %v7578_v16 = vcombine.low %v5642_v14, %v5643_v15  ;;  %v7185_v17 = vld [vmem:[%s7553_s17 + $0x30] ss:$8 sps:$4 sm:$0xff]   ;;  %v7186_v19 = vld [vmem:[%s7553_s17 + $0x40] ss:$8 sps:$4 sm:$0xff]   ;;  %s9825_s21 = scalar_lea.sflag [#allocation3], %s229_s15 }
  0x1f   : > { %9939 = vst [vmem:[#allocation5_spill] sm:$0xff] %v7560_v7  ;;  %6530 = vmatprep.mubr.msk.bf16.mxu1 %vm407_vm0, %v7560_v7  ;;  %v5660_v20 = vld [vmem:[%s7553_s17 + $0xe0] sm:$0xf]  ;;  %v5661_v21 = vld [vmem:[%s7553_s17 + $0xe8] sm:$0xf] }
  0x20   : > { %9940 = vst [vmem:[#allocation6_spill] sm:$0xff] %v7570_v12  ;;  %1683 = vrot.lane.b32.xlu1 %v7570_v12, %s7446_s24  ;;  %6531 = vmatmul.mubr.msk.bf16.vlgmr.msra.gmra.mxu1 %vm407_vm0, %v7572_v13  ;;  %v5662_v22 = vld [vmem:[%s7553_s17 + $0xf0] sm:$0xf]  ;;  %v5663_v23 = vld [vmem:[%s7553_s17 + $0xf8] sm:$0xf]  ;;  %v7600_v24 = vcombine.low %v5660_v20, %v5661_v21 }
  0x21   : > { %6514 = vmatprep.mubr.msk.bf16.mxu0 %vm407_vm0, %v7570_v12  ;;  %1403 = vrot.lane.b32.xlu0 %v7185_v17, %s7446_s24  ;;  %v7189_v25 = vld [vmem:[%s7553_s17 + $0x50] ss:$8 sps:$4 sm:$0xff]   ;;  %v5644_v26 = vld [vmem:[%s7553_s17 + $0x60] sm:$0xf]  ;;  %v5645_v27 = vld [vmem:[%s7553_s17 + $0x68] sm:$0xf]  ;;  %v7611_v29 = vcombine.low %v5662_v22, %v5663_v23 }
  0x22   : > { %6515 = vmatmul.mubr.msk.bf16.vlgmr.msra.gmra.mxu0 %vm407_vm0, %v7578_v16  ;;  %9942 = vst [vmem:[#allocation8_spill] sm:$0xff] %v7600_v24  ;;  %6547 = vmatpush3.bf16.msra.mxu1 %v7198_v1  ;;  %v5646_v28 = vld [vmem:[%s7553_s17 + $0x70] sm:$0xf]  ;;  %v7613_v30 = vcombine.low %v5644_v26, %v5645_v27  ;;  %v5647_v31 = vld [vmem:[%s7553_s17 + $0x78] sm:$0xf]  ;;  %v7751_v23 = vld [vmem:[%s9871_s1 + $0x28] sm:$0xff]  }
  0x23   : > { %6581 = vmatpush3.bf16.msra.mxu0 %v7200_v2  ;;  %6614 = vmatprep.subr.bf16.mxu1 %v7568_v11  ;;  %9943 = vst [vmem:[#allocation9_spill] sm:$0xff] %v7611_v29  ;;  %v5664_v32 = vld [vmem:[%s7553_s17 + $0x100] sm:$0xf]  ;;  %v5665_v33 = vld [vmem:[%s7553_s17 + $0x108] sm:$0xf]  ;;  %v7624_v35 = vcombine.low %v5646_v28, %v5647_v31 }
  0x24   : > { %1685 = vrot.lane.b32.xlu1 %v7578_v16, %s7446_s24  ;;  %6534 = vmatprep.mubr.msk.bf16.mxu1 %vm407_vm0, %v7600_v24  ;;  %v7619_v34 = vcombine.low %v5664_v32, %v5665_v33  ;;  %v5648_v36 = vld [vmem:[%s7553_s17 + $0x80] sm:$0xf]  ;;  %v5666_v38 = vld [vmem:[%s7553_s17 + $0x110] sm:$0xf]  ;;  %v5649_v39 = vld [vmem:[%s7553_s17 + $0x88] sm:$0xf] }
  0x25   : > { %1405 = vrot.lane.b32.xlu0 %v7186_v19, %s7446_s24  ;;  %6648 = vmatprep.subr.bf16.mxu0 %v7584_v18  ;;  %v7193_v37 = vld [vmem:[%s7553_s17 + $0x60] ss:$8 sps:$4 sm:$0xff]   ;;  %v5667_v40 = vld [vmem:[%s7553_s17 + $0x118] sm:$0xf]  ;;  %v7638_v41 = vcombine.low %v5648_v36, %v5649_v39  ;;  %v5650_v42 = vld [vmem:[%s7553_s17 + $0x90] sm:$0xf] }
  0x26   : > { %9944 = vst [vmem:[#allocation10_spill] sm:$0xff] %v7619_v34  ;;  %6518 = vmatprep.mubr.msk.bf16.mxu0 %vm407_vm0, %v7613_v30  ;;  %v5668_v43 = vld [vmem:[%s7553_s17 + $0x120] sm:$0xf]  ;;  %v5669_v44 = vld [vmem:[%s7553_s17 + $0x128] sm:$0xf]  ;;  %v7650_v46 = vcombine.low %v5666_v38, %v5667_v40 }
  0x27   : > { %v5651_v45 = vld [vmem:[%s7553_s17 + $0x98] sm:$0xf]  ;;  %v5652_v48 = vld [vmem:[%s7553_s17 + $0xa0] sm:$0xf]  ;;  %v5653_v49 = vld [vmem:[%s7553_s17 + $0xa8] sm:$0xf]  ;;  %v7656_v50 = vcombine.low %v5668_v43, %v5669_v44 }
  0x28   : > { %6535 = vmatmul.mubr.msk.bf16.gmra.mxu1 %vm407_vm0, %v7611_v29  ;;  %1407 = vrot.lane.b32.xlu1 %v7189_v25, %s7446_s24  ;;  %9945 = vst [vmem:[#allocation11_spill] sm:$0xff] %v7650_v46  ;;  %v7195_v47 = vld [vmem:[%s7553_s17 + $0x70] ss:$8 sps:$4 sm:$0xff]   ;;  %v7658_v51 = vcombine.low %v5650_v42, %v5651_v45  ;;  %v7660_v52 = vcombine.low %v5652_v48, %v5653_v49  ;;  %v7201_v53 = vld [vmem:[%s7553_s17 + $0x80] ss:$8 sps:$4 sm:$0xff]  }
  0x29   : > { %1687 = vrot.lane.b32.xlu0 %v7613_v30, %s7446_s24  ;;  %6538 = vmatprep.mubr.msk.bf16.mxu1 %vm407_vm0, %v7619_v34  ;;  %9946 = vst [vmem:[#allocation12_spill] sm:$0xff] %v7656_v50  ;;  %v5670_v54 = vld [vmem:[%s7553_s17 + $0x130] sm:$0xf]  ;;  %v5671_v55 = vld [vmem:[%s7553_s17 + $0x138] sm:$0xf] }
  0x2a   : > { %6519 = vmatmul.mubr.msk.bf16.gmra.mxu0 %vm407_vm0, %v7624_v35  ;;  %v7673_v56 = vld [vmem:[%s7553_s17 + $0x30] sm:$0xf]  ;;  %v7679_v58 = vld [vmem:[%s7553_s17 + $0x38] sm:$0xf]  ;;  %v7690_v62 = vcombine.low %v5670_v54, %v5671_v55  ;;  %v7206_v3 = vld [vmem:[%s7553_s17 + $0xa0] ss:$8 sps:$4 sm:$0xff]  }
  0x2b   : > { %6522 = vmatprep.mubr.msk.bf16.mxu0 %vm407_vm0, %v7638_v41  ;;  %v7203_v57 = vld [vmem:[%s7553_s17 + $0x90] ss:$8 sps:$4 sm:$0xff]   ;;  %v5707_v0 = vcombine.low %v7673_v56, %v7679_v58  ;;  %v7710_v4 = vld [vmem:[%s7553_s17 + $0x40] sm:$0xf]  ;;  %v7713_v5 = vld [vmem:[%s7553_s17 + $0x48] sm:$0xf] }
  0x2c   : > { %1689 = vrot.lane.b32.xlu1 %v7624_v35, %s7446_s24  ;;  %v5654_v59 = vld [vmem:[%s7553_s17 + $0xb0] sm:$0xf]  ;;  %v5655_v60 = vld [vmem:[%s7553_s17 + $0xb8] sm:$0xf]  ;;  %9947 = vst [vmem:[#allocation13_spill] sm:$0xff] %v7690_v62  ;;  %v5708_v15 = vcombine.low %v7710_v4, %v7713_v5 }
  0x2d   : > { %1409 = vrot.lane.b32.xlu0 %v7193_v37, %s7446_s24  ;;  %v7686_v61 = vld [vmem:[%s7553_s17 + $0x50] sm:$0xf]  ;;  %v7693_v63 = vld [vmem:[%s7553_s17 + $0x58] sm:$0xf]  ;;  %v7698_v1 = vcombine.low %v5654_v59, %v5655_v60  ;;  %v7726_v10 = vld [vmem:[%s7553_s17 + $0x60] sm:$0xf] }
  0x2e   : > { %v5774_v2 = vcombine.low %v7686_v61, %v7693_v63  ;;  %v7208_v6 = vld [vmem:[%s7553_s17 + $0xb0] ss:$8 sps:$4 sm:$0xff]   ;;  %v7729_v14 = vld [vmem:[%s7553_s17 + $0x68] sm:$0xf]  ;;  %v7760_v26 = vld [vmem:[%s7553_s17 + $0x60] sm:$0xf] }
  0x2f   : > { %v7719_v8 = vld [vmem:[%s7553_s17 + $0x50] sm:$0xf]  ;;  %v7722_v9 = vld [vmem:[%s7553_s17 + $0x58] sm:$0xf]  ;;  %v5775_v21 = vcombine.low %v7726_v10, %v7729_v14  ;;  %v7212_v25 = vld [vmem:[%s7553_s17 + $0xc0] ss:$8 sps:$4 sm:$0xff]  }
  0x30   : > { %6539 = vmatmul.mubr.msk.bf16.gmra.mxu1 %vm407_vm0, %v7650_v46  ;;  %1411 = vrot.lane.b32.xlu1 %v7195_v47, %s7446_s24  ;;  %v7736_v17 = vld [vmem:[%s7553_s17 + $0x70] sm:$0xf]  ;;  %v7739_v19 = vld [vmem:[%s7553_s17 + $0x78] sm:$0xf]  ;;  %v5709_v20 = vcombine.low %v7719_v8, %v7722_v9  ;;  %v7763_v27 = vld [vmem:[%s7553_s17 + $0x68] sm:$0xf] }
  0x31   : > { %1691 = vrot.lane.b32.xlu0 %v7638_v41, %s7446_s24  ;;  %6542 = vmatprep.mubr.msk.bf16.mxu1 %vm407_vm0, %v7656_v50  ;;  %v5776_v22 = vcombine.low %v7736_v17, %v7739_v19  ;;  %v7766_v28 = vld [vmem:[%s7553_s17 + $0x70] sm:$0xf]  ;;  %v7770_v31 = vld [vmem:[%s7553_s17 + $0x78] sm:$0xf]  ;;  %v7775_v32 = vld [vmem:[%s7553_s17 + $0x80] sm:$0xf]  ;;  %v5710_v37 = vcombine.low %v7760_v26, %v7763_v27 }
  0x32   : > { %6523 = vmatmul.mubr.msk.bf16.gmra.mxu0 %vm407_vm0, %v7658_v51  ;;  %v7778_v33 = vld [vmem:[%s7553_s17 + $0x88] sm:$0xf]  ;;  %v7214_v36 = vld [vmem:[%s7553_s17 + $0xd0] ss:$8 sps:$4 sm:$0xff]   ;;  %v7807_v43 = vld [vmem:[%s7553_s17 + $0x80] sm:$0xf] }
  0x33   : > { %6526 = vmatprep.mubr.msk.bf16.mxu0 %vm407_vm0, %v7660_v52  ;;  %v7790_v38 = vld [vmem:[%s7553_s17 + $0x98] sm:$0xf]  ;;  %v5777_v39 = vcombine.low %v7775_v32, %v7778_v33  ;;  %v7218_v42 = vld [vmem:[%s7553_s17 + $0xe0] ss:$8 sps:$4 sm:$0xff]   ;;  %v7818_v48 = vld [vmem:[%s7553_s17 + $0x90] sm:$0xf] }
  0x34   : > { %1693 = vrot.lane.b32.xlu1 %v7658_v51, %s7446_s24  ;;  %v7810_v44 = vld [vmem:[%s7553_s17 + $0x88] sm:$0xf]  ;;  %v7220_v45 = vld [vmem:[%s7553_s17 + $0xf0] ss:$8 sps:$4 sm:$0xff]   ;;  %v7815_v47 = vld [vmem:[%s7553_s17 + $0xa0] sm:$0xf] }
  0x35   : > { %1413 = vrot.lane.b32.xlu0 %v7201_v53, %s7446_s24  ;;  %v7821_v49 = vld [vmem:[%s7553_s17 + $0x98] sm:$0xf]  ;;  %v7825_v53 = vld [vmem:[%s7553_s17 + $0xa8] sm:$0xf]  ;;  %v7828_v54 = vld [vmem:[%s7553_s17 + $0xb0] sm:$0xf]  ;;  %v5712_v55 = vcombine.low %v7807_v43, %v7810_v44 }
  0x36   : > { %v5713_v59 = vcombine.low %v7818_v48, %v7821_v49  ;;  %v5779_v60 = vcombine.low %v7815_v47, %v7825_v53 }
  0x38   : > { %6543 = vmatmul.mubr.msk.bf16.gmra.mxu1 %vm407_vm0, %v7690_v62  ;;  %1415 = vrot.lane.b32.xlu1 %v7203_v57, %s7446_s24  ;;  %v7835_v57 = vld [vmem:[%s7553_s17 + $0xb8] sm:$0xf] }
  0x39   : > { %1695 = vrot.lane.b32.xlu0 %v7660_v52, %s7446_s24  ;;  %6548 = vmatprep.mubr.msk.bf16.mxu1 %vm407_vm0, %v5707_v0  ;;  %v5780_v0 = vcombine.low %v7828_v54, %v7835_v57 }
  0x3a   : > { %6527 = vmatmul.mubr.msk.bf16.gmra.mxu0 %vm407_vm0, %v7698_v1 }
  0x3b   : > { %6582 = vmatprep.mubr.msk.bf16.mxu0 %vm407_vm0, %v5774_v2  ;;  %v7225_v2 = vld [vmem:[%s7553_s17 + $0x100] ss:$8 sps:$4 sm:$0xff]  }
  0x3c   : > { %1697 = vrot.lane.b32.xlu1 %v7698_v1, %s7446_s24 }
  0x3d   : > { %1417 = vrot.lane.b32.xlu0 %v7206_v3, %s7446_s24  ;;  %v7848_v3 = vld [vmem:[%s7553_s17 + $0xa0] sm:$0xf] }
  0x40   : > { %1419 = vrot.lane.b32.xlu1 %v7208_v6, %s7446_s24  ;;  %6549 = vmatmul.mubr.msk.bf16.vlgmr.msra.gmra.mxu1 %vm407_vm0, %v5708_v15  ;;  %v7851_v6 = vld [vmem:[%s7553_s17 + $0xa8] sm:$0xf]  ;;  %v7857_v15 = vld [vmem:[%s7553_s17 + $0xc0] sm:$0xf] }
  0x41   : > { %1699 = vrot.lane.b32.xlu0 %v7560_v7, %s7446_s24  ;;  %6552 = vmatprep.mubr.msk.bf16.mxu1 %vm407_vm0, %v5709_v20  ;;  %v7860_v20 = vld [vmem:[%s7553_s17 + $0xc8] sm:$0xf] }
  0x42   : > { %6583 = vmatmul.mubr.msk.bf16.vlgmr.msra.gmra.mxu0 %vm407_vm0, %v5775_v21  ;;  %6615 = vmatpush3.bf16.msra.mxu1 %v7568_v11  ;;  %v7787_v11 = vld [vmem:[%s7553_s17 + $0x90] sm:$0xf] }
  0x43   : > { %6586 = vmatprep.mubr.msk.bf16.mxu0 %vm407_vm0, %v5776_v22  ;;  %6649 = vmatpush3.bf16.msra.mxu0 %v7584_v18  ;;  %v5711_v18 = vcombine.low %v7766_v28, %v7770_v31  ;;  %v5778_v40 = vcombine.low %v7787_v11, %v7790_v38  ;;  %v7863_v21 = vld [vmem:[%s7553_s17 + $0xb0] sm:$0xf] }
  0x44   : > { %1701 = vrot.lane.b32.xlu1 %v7572_v13, %s7446_s24  ;;  %6682 = vmatprep.subr.bf16.mxu1 %v7751_v23  ;;  %v7228_v22 = vld [vmem:[%s7553_s17 + $0x110] ss:$8 sps:$4 sm:$0xff]  }
  0x45   : > { %1421 = vrot.lane.b32.xlu0 %v7212_v25, %s7446_s24  ;;  %v7868_v25 = vld [vmem:[%s7553_s17 + $0xb8] sm:$0xf] }
  0x48   : > { %1423 = vrot.lane.b32.xlu1 %v7214_v36, %s7446_s24  ;;  %6553 = vmatmul.mubr.msk.bf16.gmra.mxu1 %vm407_vm0, %v5710_v37  ;;  %v7872_v36 = vld [vmem:[%s7553_s17 + $0xd0] sm:$0xf]  ;;  %v5714_v37 = vcombine.low %v7848_v3, %v7851_v6 }
  0x49   : > { %1703 = vrot.lane.b32.xlu0 %v7600_v24, %s7446_s24  ;;  %6556 = vmatprep.mubr.msk.bf16.mxu1 %vm407_vm0, %v5711_v18  ;;  %v7879_v18 = vld [vmem:[%s7553_s17 + $0xd8] sm:$0xf]  ;;  %v7934_v24 = vld [vmem:[%s7553_s17 + $0xe0] sm:$0xf] }
  0x4a   : > { %6587 = vmatmul.mubr.msk.bf16.gmra.mxu0 %vm407_vm0, %v5777_v39  ;;  %9948 = vst [vmem:[#allocation14_spill] sm:$0xff] %v7879_v18  ;;  %v5715_v39 = vcombine.low %v7863_v21, %v7868_v25  ;;  %9955 = vst [vmem:[#allocation21_spill] sm:$0xff] %v7934_v24 }
  0x4b   : > { %6590 = vmatprep.mubr.msk.bf16.mxu0 %vm407_vm0, %v5778_v40  ;;  %v5781_v40 = vcombine.low %v7857_v15, %v7860_v20 }
  0x4c   : > { %1705 = vrot.lane.b32.xlu1 %v7611_v29, %s7446_s24  ;;  %v7240_v29 = vld [vmem:[%s7553_s17 + $0x80] ss:$8 sps:$4 sm:$0xff]  }
  0x4d   : > { %1425 = vrot.lane.b32.xlu0 %v7218_v42, %s7446_s24  ;;  %v5782_v42 = vcombine.low %v7872_v36, %v7879_v18  ;;  %v7256_v18 = vld [vmem:[%s7553_s17 + $0xc0] ss:$8 sps:$4 sm:$0xff]  }
  0x50   : > { %1427 = vrot.lane.b32.xlu1 %v7220_v45, %s7446_s24  ;;  %6557 = vmatmul.mubr.msk.bf16.gmra.mxu1 %vm407_vm0, %v5712_v55  ;;  %v7232_v45 = vld [vmem:[%s7553_s17 + $0x60] ss:$8 sps:$4 sm:$0xff]  }
  0x51   : > { %1707 = vrot.lane.b32.xlu0 %v7619_v34, %s7446_s24  ;;  %6560 = vmatprep.mubr.msk.bf16.mxu1 %vm407_vm0, %v5713_v59  ;;  %v7892_v55 = vld [vmem:[%s7553_s17 + $0xc0] sm:$0xf]  ;;  %v7895_v59 = vld [vmem:[%s7553_s17 + $0xc8] sm:$0xf] }
  0x52   : > { %6591 = vmatmul.mubr.msk.bf16.gmra.mxu0 %vm407_vm0, %v5779_v60  ;;  %v7901_v60 = vld [vmem:[%s7553_s17 + $0xe0] sm:$0xf] }
  0x53   : > { %6594 = vmatprep.mubr.msk.bf16.mxu0 %vm407_vm0, %v5780_v0  ;;  %9949 = vst [vmem:[#allocation15_spill] sm:$0xff] %v7901_v60  ;;  %v7904_v0 = vld [vmem:[%s7553_s17 + $0xe8] sm:$0xf] }
  0x54   : > { %1709 = vrot.lane.b32.xlu1 %v7650_v46, %s7446_s24  ;;  %9950 = vst [vmem:[#allocation16_spill] sm:$0xff] %v7904_v0  ;;  %v7923_v46 = vld [vmem:[%s7553_s17 + $0xf8] sm:$0xf] }
  0x55   : > { %1429 = vrot.lane.b32.xlu0 %v7225_v2, %s7446_s24  ;;  %v7907_v2 = vld [vmem:[%s7553_s17 + $0xd0] sm:$0xf]  ;;  %9954 = vst [vmem:[#allocation20_spill] sm:$0xff] %v7923_v46 }
  0x56   : > { %9951 = vst [vmem:[#allocation17_spill] sm:$0xff] %v7907_v2 }
  0x58   : > { %1431 = vrot.lane.b32.xlu1 %v7228_v22, %s7446_s24  ;;  %6561 = vmatmul.mubr.msk.bf16.gmra.mxu1 %vm407_vm0, %v5714_v37  ;;  %v7234_v22 = vld [vmem:[%s7553_s17 + $0x70] ss:$8 sps:$4 sm:$0xff]  }
  0x59   : > { %1711 = vrot.lane.b32.xlu0 %v7656_v50, %s7446_s24  ;;  %6564 = vmatprep.mubr.msk.bf16.mxu1 %vm407_vm0, %v5715_v39  ;;  %v7912_v37 = vld [vmem:[%s7553_s17 + $0xd8] sm:$0xf]  ;;  %v7916_v50 = vld [vmem:[%s7553_s17 + $0xf0] sm:$0xf]  ;;  %v5716_v39 = vcombine.low %v7892_v55, %v7895_v59 }
  0x5a   : > { %6595 = vmatmul.mubr.msk.bf16.gmra.mxu0 %vm407_vm0, %v5781_v40  ;;  %9952 = vst [vmem:[#allocation18_spill] sm:$0xff] %v7912_v37  ;;  %9953 = vst [vmem:[#allocation19_spill] sm:$0xff] %v7916_v50  ;;  %v7238_v40 = vld [vmem:[%s7553_s17 + $0x10] ss:$8 sps:$4 sm:$0xff]   ;;  %v5717_v34 = vcombine.low %v7907_v2, %v7912_v37  ;;  %v5784_v13 = vcombine.low %v7916_v50, %v7923_v46  ;;  %v7946_v37 = vld [vmem:[%s7553_s17 + $0x100] sm:$0xf] }
  0x5b   : > { %6598 = vmatprep.mubr.msk.bf16.mxu0 %vm407_vm0, %v5782_v42  ;;  %v5783_v42 = vcombine.low %v7901_v60, %v7904_v0  ;;  %9957 = vst [vmem:[#allocation23_spill] sm:$0xff] %v7946_v37  ;;  %v7949_v2 = vld [vmem:[%s7553_s17 + $0x108] sm:$0xf]  ;;  %v7952_v46 = vld [vmem:[%s7553_s17 + $0xf0] sm:$0xf] }
  0x5c   : > { %1713 = vrot.lane.b32.xlu1 %v7690_v62, %s7446_s24  ;;  %v7239_v62 = vld [vmem:[%s7553_s17 + $0x20] ss:$8 sps:$4 sm:$0xff]   ;;  %9958 = vst [vmem:[#allocation24_spill] sm:$0xff] %v7949_v2  ;;  %9959 = vst [vmem:[#allocation25_spill] sm:$0xff] %v7952_v46  ;;  %v7967_v50 = vld [vmem:[%s7553_s17 + $0x118] sm:$0xf] }
  0x5d   : > { %2083 = vrot.lane.b32.xlu0 %v7232_v45, %s7446_s24  ;;  %v7941_v45 = vld [vmem:[%s7553_s17 + $0xe8] sm:$0xf]  ;;  %9962 = vst [vmem:[#allocation28_spill] sm:$0xff] %v7967_v50  ;;  %v7978_v60 = vld [vmem:[%s7553_s17 + $0x100] sm:$0xf] }
  0x5e   : > { %9956 = vst [vmem:[#allocation22_spill] sm:$0xff] %v7941_v45  ;;  %v7248_v0 = vld [vmem:[%s7553_s17 + $0xa0] ss:$8 sps:$4 sm:$0xff]  }
  0x60   : > { %2085 = vrot.lane.b32.xlu1 %v7234_v22, %s7446_s24  ;;  %6565 = vmatmul.mubr.msk.bf16.gmra.mxu1 %vm407_vm0, %v5716_v39  ;;  %v7242_v22 = vld [vmem:[%s7553_s17 + $0x90] ss:$8 sps:$4 sm:$0xff]  }
  0x61   : > { %2483 = vrot.lane.b32.xlu0 %v7238_v40, %s7447_s10  ;;  %6568 = vmatprep.mubr.msk.bf16.mxu1 %vm407_vm0, %v5717_v34  ;;  %v7957_v39 = vld [vmem:[%s7553_s17 + $0xf8] sm:$0xf]  ;;  %v7961_v40 = vld [vmem:[%s7553_s17 + $0x110] sm:$0xf]  ;;  %v5718_v34 = vcombine.low %v7934_v24, %v7941_v45  ;;  %v7981_v45 = vld [vmem:[%s7553_s17 + $0x108] sm:$0xf] }
  0x62   : > { %6599 = vmatmul.mubr.msk.bf16.gmra.mxu0 %vm407_vm0, %v5783_v42  ;;  %9960 = vst [vmem:[#allocation26_spill] sm:$0xff] %v7957_v39  ;;  %9961 = vst [vmem:[#allocation27_spill] sm:$0xff] %v7961_v40  ;;  %v7246_v42 = vld [vmem:[%s7553_s17 + $0x30] ss:$8 sps:$4 sm:$0xff]   ;;  %v5719_v7 = vcombine.low %v7952_v46, %v7957_v39  ;;  %v7995_v46 = vld [vmem:[%s7553_s17 + $0x120] sm:$0xf] }
  0x63   : > { %6602 = vmatprep.mubr.msk.bf16.mxu0 %vm407_vm0, %v5784_v13  ;;  %v5785_v13 = vcombine.low %v7946_v37, %v7949_v2  ;;  %v7990_v39 = vld [vmem:[%s9871_s1 + $0x30] sm:$0xff]   ;;  %v7998_v2 = vld [vmem:[%s7553_s17 + $0x128] sm:$0xf] }
  0x64   : > { %2485 = vrot.lane.b32.xlu1 %v7239_v62, %s7447_s10  ;;  %v7247_v62 = vld [vmem:[%s7553_s17 + $0x40] ss:$8 sps:$4 sm:$0xff]   ;;  %9963 = vst [vmem:[#allocation29_spill] sm:$0xff] %v7998_v2  ;;  %6716 = vmatprep.subr.bf16.mxu0 %v7990_v39 }
  0x65   : > { %2087 = vrot.lane.b32.xlu0 %v7240_v29, %s7446_s24  ;;  %v5786_v29 = vcombine.low %v7961_v40, %v7967_v50  ;;  %v8006_v50 = vld [vmem:[%s7553_s17 + $0x118] sm:$0xf]  ;;  %v7255_v24 = vld [vmem:[%s7553_s17 + $0x60] ss:$8 sps:$4 sm:$0xff]  }
  0x66   : > { %9965 = vst [vmem:[#allocation31_spill] sm:$0xff] %v8006_v50  ;;  %v8017_v40 = vld [vmem:[%s7553_s17 + $0x138] sm:$0xf] }
  0x67   : > { %9967 = vst [vmem:[#allocation33_spill] sm:$0xff] %v8017_v40 }
  0x68   : > { %2089 = vrot.lane.b32.xlu1 %v7242_v22, %s7446_s24  ;;  %6569 = vmatmul.mubr.msk.bf16.gmra.mxu1 %vm407_vm0, %v5718_v34  ;;  %v8001_v22 = vld [vmem:[%s7553_s17 + $0x110] sm:$0xf] }
  0x69   : > { %2487 = vrot.lane.b32.xlu0 %v7246_v42, %s7447_s10  ;;  %6572 = vmatprep.mubr.msk.bf16.mxu1 %vm407_vm0, %v5719_v7  ;;  %9964 = vst [vmem:[#allocation30_spill] sm:$0xff] %v8001_v22  ;;  %v7250_v34 = vld [vmem:[%s7553_s17 + $0xb0] ss:$8 sps:$4 sm:$0xff]   ;;  %v5720_v7 = vcombine.low %v7978_v60, %v7981_v45  ;;  %v5721_v37 = vcombine.low %v8001_v22, %v8006_v50  ;;  %v8037_v50 = vld [vmem:[%s7553_s17 + $0x128] sm:$0xf] }
  0x6a   : > { %6603 = vmatmul.mubr.msk.bf16.gmra.mxu0 %vm407_vm0, %v5785_v13  ;;  %v8011_v42 = vld [vmem:[%s7553_s17 + $0x130] sm:$0xf]  ;;  %9969 = vst [vmem:[#allocation35_spill] sm:$0xff] %v8037_v50  ;;  %v8041_v22 = vld [vmem:[%s7553_s17 + $0x140] sm:$0xf] }
  0x6b   : > { %6606 = vmatprep.mubr.msk.bf16.mxu0 %vm407_vm0, %v5786_v29  ;;  %9966 = vst [vmem:[#allocation32_spill] sm:$0xff] %v8011_v42  ;;  %v7254_v13 = vld [vmem:[%s7553_s17 + $0x50] ss:$8 sps:$4 sm:$0xff]   ;;  %v5787_v29 = vcombine.low %v7995_v46, %v7998_v2  ;;  %9970 = vst [vmem:[#allocation36_spill] sm:$0xff] %v8041_v22 }
  0x6c   : > { %2489 = vrot.lane.b32.xlu1 %v7247_v62, %s7447_s10  ;;  %v5788_v62 = vcombine.low %v8011_v42, %v8017_v40  ;;  %v7277_v40 = vld [vmem:[%s7553_s17 + $0x140] ss:$8 sps:$4 sm:$0xff]   ;;  %v4526_v42 = vunpack.c.l.bf16 %v7679_v58  ;;  %v4528_v58 = vunpack.c.l.bf16 %v7713_v5 }
  0x6d   : > { %2091 = vrot.lane.b32.xlu0 %v7248_v0, %s7446_s24  ;;  %v8032_v0 = vld [vmem:[%s7553_s17 + $0x120] sm:$0xf] }
  0x6e   : > { %9968 = vst [vmem:[#allocation34_spill] sm:$0xff] %v8032_v0 }
  0x70   : > { %2093 = vrot.lane.b32.xlu1 %v7250_v34, %s7446_s24  ;;  %6573 = vmatmul.mubr.msk.bf16.gmra.mxu1 %vm407_vm0, %v5720_v7  ;;  %v8045_v34 = vld [vmem:[%s7553_s17 + $0x148] sm:$0xf]  ;;  %v7258_v7 = vld [vmem:[%s7553_s17 + $0xd0] ss:$8 sps:$4 sm:$0xff]  }
  0x71   : > { %2491 = vrot.lane.b32.xlu0 %v7254_v13, %s7447_s10  ;;  %6576 = vmatprep.mubr.msk.bf16.mxu1 %vm407_vm0, %v5721_v37  ;;  %9971 = vst [vmem:[#allocation37_spill] sm:$0xff] %v8045_v34  ;;  %v5722_v37 = vcombine.low %v8032_v0, %v8037_v50  ;;  %v7262_v13 = vld [vmem:[%s7553_s17 + $0x70] ss:$8 sps:$4 sm:$0xff]  }
  0x72   : > { %6607 = vmatmul.mubr.msk.bf16.gmra.mxu0 %vm407_vm0, %v5787_v29  ;;  %v5789_v29 = vcombine.low %v8041_v22, %v8045_v34  ;;  %v7266_v34 = vld [vmem:[%s7553_s17 + $0x90] ss:$8 sps:$4 sm:$0xff]   ;;  %v7275_v22 = vld [vmem:[%s7553_s17 + $0xe0] ss:$8 sps:$4 sm:$0xff]  }
  0x73   : > { %6610 = vmatprep.mubr.msk.bf16.mxu0 %vm407_vm0, %v5788_v62  ;;  %v7263_v62 = vld [vmem:[%s7553_s17 + $0x80] ss:$8 sps:$4 sm:$0xff]   ;;  %v7339_v0 = vld [vmem:[%s7553_s17 + $0x58] sm:$0xf] }
  0x74   : > { %2493 = vrot.lane.b32.xlu1 %v7255_v24, %s7447_s10  ;;  %v7264_v24 = vld [vmem:[%s7553_s17 + $0xe0] ss:$8 sps:$4 sm:$0xff]  }
  0x75   : > { %2095 = vrot.lane.b32.xlu0 %v7256_v18, %s7446_s24  ;;  %v7265_v18 = vld [vmem:[%s7553_s17 + $0xf0] ss:$8 sps:$4 sm:$0xff]  }
  0x78   : > { %2097 = vrot.lane.b32.xlu1 %v7258_v7, %s7446_s24  ;;  %6577 = vmatmul.mubr.msk.bf16.gmra.mxu1 %vm407_vm0, %v5722_v37  ;;  %v7267_v7 = vld [vmem:[%s7553_s17 + $0xa0] ss:$8 sps:$4 sm:$0xff]  }
  0x79   : > { %2495 = vrot.lane.b32.xlu0 %v7262_v13, %s7447_s10  ;;  %v7268_v37 = vld [vmem:[%s7553_s17 + $0x100] ss:$8 sps:$4 sm:$0xff]   ;;  %v7269_v13 = vld [vmem:[%s7553_s17 + $0x110] ss:$8 sps:$4 sm:$0xff]  }
  0x7a   : > { %6611 = vmatmul.mubr.msk.bf16.gmra.mxu0 %vm407_vm0, %v5789_v29  ;;  %v7270_v29 = vld [vmem:[%s7553_s17 + $0xb0] ss:$8 sps:$4 sm:$0xff]  }
  0x7c   : > { %2497 = vrot.lane.b32.xlu1 %v7263_v62, %s7447_s10  ;;  %v7271_v62 = vld [vmem:[%s7553_s17 + $0xc0] ss:$8 sps:$4 sm:$0xff]  }
  0x7d   : > { %2099 = vrot.lane.b32.xlu0 %v7264_v24, %s7446_s24  ;;  %v7272_v24 = vld [vmem:[%s7553_s17 + $0x120] ss:$8 sps:$4 sm:$0xff]  }
  0x80   : > { %2101 = vrot.lane.b32.xlu1 %v7265_v18, %s7446_s24  ;;  %v7273_v18 = vld [vmem:[%s7553_s17 + $0x130] ss:$8 sps:$4 sm:$0xff]  }
  0x81   : > { %2499 = vrot.lane.b32.xlu0 %v7266_v34, %s7447_s10  ;;  %v7274_v34 = vld [vmem:[%s7553_s17 + $0xd0] ss:$8 sps:$4 sm:$0xff]  }
  0x84   : > { %2501 = vrot.lane.b32.xlu1 %v7267_v7, %s7447_s10 }
  0x85   : > { %2103 = vrot.lane.b32.xlu0 %v7268_v37, %s7446_s24  ;;  %v8088_v37 = vld [vmem:[%s9871_s1 + $0x38] sm:$0xff]  }
  0x86   : > { %9972 = vst [vmem:[#allocation38_spill] sm:$0xff] %v8088_v37 }
  0x88   : > { %2105 = vrot.lane.b32.xlu1 %v7269_v13, %s7446_s24 }
  0x89   : > { %2503 = vrot.lane.b32.xlu0 %v7270_v29, %s7447_s10  ;;  %v7279_v29 = vld [vmem:[%s7553_s17 + $0x150] ss:$8 sps:$4 sm:$0xff]  }
  0x8c   : > { %2505 = vrot.lane.b32.xlu1 %v7271_v62, %s7447_s10 }
  0x8d   : > { %2107 = vrot.lane.b32.xlu0 %v7272_v24, %s7446_s24  ;;  %v7280_v24 = vld [vmem:[%s7553_s17 + $0xf0] ss:$8 sps:$4 sm:$0xff]  }
  0x8e   : > { %v1402_v7 = vpop.permute.xlu0 %1401 }
  0x8f   : > { %6616 = vmatprep.mubr.msk.bf16.mxu1 %vm407_vm0, %v1402_v7 }
  0x90   : > { %2109 = vrot.lane.b32.xlu1 %v7273_v18, %s7446_s24 }
  0x91   : > { %2507 = vrot.lane.b32.xlu0 %v7274_v34, %s7447_s10  ;;  %v8102_v34 = vld [vmem:[%s9871_s1 + $0x40] sm:$0xff]  }
  0x92   : > { %v1684_v13 = vpop.permute.xlu1 %1683 }
  0x93   : > { %6650 = vmatprep.mubr.msk.bf16.mxu0 %vm407_vm0, %v1684_v13  ;;  %v1404_v62 = vpop.permute.xlu0 %1403  ;;  %v7337_v13 = vld [vmem:[%s7553_s17 + $0x48] sm:$0xf] }
  0x94   : > { %2509 = vrot.lane.b32.xlu1 %v7275_v22, %s7447_s10  ;;  %6617 = vmatmul.mubr.msk.bf16.vlgmr.msra.gmra.mxu1 %vm407_vm0, %v1404_v62  ;;  %v4558_v62 = vunpack.c.l.bf16 %v7337_v13 }
  0x95   : > { %6683 = vmatpush3.bf16.msra.mxu1 %v7751_v23  ;;  %2111 = vrot.lane.b32.xlu0 %v7277_v40, %s7446_s24  ;;  %v7281_v23 = vld [vmem:[%s7553_s17 + $0x100] ss:$8 sps:$4 sm:$0xff]  }
  0x96   : > { %v1686_v18 = vpop.permute.xlu1 %1685  ;;  %6750 = vmatprep.subr.bf16.mxu1 %v8088_v37  ;;  %v7336_v40 = vld [vmem:[%s7553_s17 + $0x40] sm:$0xf]  ;;  %v4525_v37 = vunpack.c.l.bf16 %v7673_v56  ;;  %v4527_v56 = vunpack.c.l.bf16 %v7710_v4 }
  0x97   : > { %6651 = vmatmul.mubr.msk.bf16.vlgmr.msra.gmra.mxu0 %vm407_vm0, %v1686_v18  ;;  %v1406_v22 = vpop.permute.xlu0 %1405  ;;  %v4557_v7 = vunpack.c.l.bf16 %v7336_v40  ;;  %v7338_v18 = vld [vmem:[%s7553_s17 + $0x50] sm:$0xf]  ;;  %v4590_v40 = vunpack.c.l.bf16 %v7693_v63 }
  0x98   : > { %2113 = vrot.lane.b32.xlu1 %v7279_v29, %s7446_s24  ;;  %6717 = vmatpush3.bf16.msra.mxu0 %v7990_v39  ;;  %v4559_v50 = vunpack.c.l.bf16 %v7338_v18  ;;  %v4560_v29 = vunpack.c.l.bf16 %v7339_v0  ;;  %v4589_v39 = vunpack.c.l.bf16 %v7686_v61  ;;  %v7282_v0 = vld [vmem:[%s7553_s17 + $0x70] ss:$8 sps:$4 sm:$0xff]  }
  0x99   : > { %2511 = vrot.lane.b32.xlu0 %v7280_v24, %s7447_s10  ;;  %6620 = vmatprep.mubr.msk.bf16.mxu1 %vm407_vm0, %v1406_v22  ;;  %v4621_v61 = vmax.f32 %v4525_v37, %v4557_v7  ;;  %v4622_v24 = vmax.f32 %v4526_v42, %v4558_v62  ;;  %v4591_v22 = vunpack.c.l.bf16 %v7726_v10  ;;  %v7341_v42 = vld [vmem:[%s7553_s17 + $0x68] sm:$0xf]  ;;  %v7342_v62 = vld [vmem:[%s7553_s17 + $0x70] sm:$0xf] }
  0x9a   : > { %v1408_v2 = vpop.permute.xlu1 %1407  ;;  %6784 = vmatprep.subr.bf16.mxu0 %v8102_v34  ;;  %v4623_v4 = vmax.f32 %v4527_v56, %v4559_v50  ;;  %v4562_v7 = vunpack.c.l.bf16 %v7341_v42  ;;  %v7283_v10 = vld [vmem:[%s7553_s17 + $0x80] ss:$8 sps:$4 sm:$0xff]   ;;  %v7343_v56 = vld [vmem:[%s7553_s17 + $0x78] sm:$0xf] }
  0x9b   : > { %v1688_v13 = vpop.permute.xlu0 %1687  ;;  %v8130_v18 = vmax.f32 %v4621_v61, %v4589_v39  ;;  %v4529_v39 = vunpack.c.l.bf16 %v7719_v8  ;;  %v4531_v61 = vunpack.c.l.bf16 %v7760_v26  ;;  %v4593_v8 = vunpack.c.l.bf16 %v7736_v17  ;;  %v7284_v26 = vld [vmem:[%s7553_s17 + $0x90] ss:$8 sps:$4 sm:$0xff]  }
  0x9c   : > { %2513 = vrot.lane.b32.xlu1 %v7281_v23, %s7447_s10  ;;  %6621 = vmatmul.mubr.msk.bf16.gmra.mxu1 %vm407_vm0, %v1408_v2  ;;  %v4592_v2 = vunpack.c.l.bf16 %v7729_v14  ;;  %v4624_v23 = vmax.f32 %v4528_v58, %v4560_v29  ;;  %v8140_v50 = vmax.f32 %v4623_v4, %v4591_v22  ;;  %v4563_v29 = vunpack.c.l.bf16 %v7342_v62  ;;  %v10007_v22 = vld [vmem:[#allocation11_spill] sm:$0xff] }
  0x9d   : > { %6654 = vmatprep.mubr.msk.bf16.mxu0 %vm407_vm0, %v1688_v13  ;;  %2765 = vrot.lane.b32.xlu0 %v7570_v12, %s7447_s10  ;;  %v8132_v13 = vmax.f32 %v4622_v24, %v4590_v40  ;;  %v7340_v12 = vld [vmem:[%s7553_s17 + $0x60] sm:$0xf]  ;;  %v4530_v40 = vunpack.c.l.bf16 %v7722_v9  ;;  %v4564_v58 = vunpack.c.l.bf16 %v7343_v56  ;;  %v4532_v24 = vunpack.c.l.bf16 %v7763_v27  ;;  %v7345_v56 = vld [vmem:[%s7553_s17 + $0x88] sm:$0xf] }
  0x9e   : > { %v1690_v63 = vpop.permute.xlu1 %1689  ;;  %v4561_v37 = vunpack.c.l.bf16 %v7340_v12  ;;  %v8142_v14 = vmax.f32 %v4624_v23, %v4592_v2  ;;  %v4594_v9 = vunpack.c.l.bf16 %v7739_v19  ;;  %v4596_v4 = vunpack.c.l.bf16 %v7778_v33 }
  0x9f   : > { %6655 = vmatmul.mubr.msk.bf16.gmra.mxu0 %vm407_vm0, %v1690_v63  ;;  %v1410_v5 = vpop.permute.xlu0 %1409  ;;  %v4626_v19 = vmax.f32 %v4530_v40, %v4562_v7  ;;  %v4628_v23 = vmax.f32 %v4532_v24, %v4564_v58  ;;  %v4533_v58 = vunpack.c.l.bf16 %v7766_v28  ;;  %v4597_v28 = vunpack.c.l.bf16 %v7787_v11 }
  0xa0   : > { %2767 = vrot.lane.b32.xlu1 %v7578_v16, %s7447_s10  ;;  %6624 = vmatprep.mubr.msk.bf16.mxu1 %vm407_vm0, %v1410_v5  ;;  %v4625_v17 = vmax.f32 %v4529_v39, %v4561_v37  ;;  %v7285_v37 = vld [vmem:[%s7553_s17 + $0xa0] ss:$8 sps:$4 sm:$0xff]   ;;  %v7346_v39 = vld [vmem:[%s7553_s17 + $0x90] sm:$0xf] }
  0xa1   : > { %3165 = vrot.lane.b32.xlu0 %v7282_v0, %s7447_s10  ;;  %v4595_v0 = vunpack.c.l.bf16 %v7775_v32  ;;  %v4627_v32 = vmax.f32 %v4531_v61, %v4563_v29  ;;  %v8168_v42 = vmax.f32 %v4626_v19, %v4594_v9  ;;  %v8178_v29 = vmax.f32 %v4628_v23, %v4596_v4 }
  0xa2   : > { %v1412_v63 = vpop.permute.xlu1 %1411  ;;  %v8166_v5 = vmax.f32 %v4625_v17, %v4593_v8  ;;  %v4567_v40 = vunpack.c.l.bf16 %v7346_v39  ;;  %v4534_v61 = vunpack.c.l.bf16 %v7770_v31  ;;  %v7347_v8 = vld [vmem:[%s7553_s17 + $0x98] sm:$0xf]  ;;  %v4598_v31 = vunpack.c.l.bf16 %v7790_v38  ;;  %v7365_v17 = vld [vmem:[%s7553_s17 + $0x128] sm:$0xf] }
  0xa3   : > { %v1692_v2 = vpop.permute.xlu0 %1691  ;;  %v8176_v7 = vmax.f32 %v4627_v32, %v4595_v0  ;;  %v4568_v9 = vunpack.c.l.bf16 %v7347_v8  ;;  %v4536_v0 = vunpack.c.l.bf16 %v7810_v44  ;;  %v4537_v8 = vunpack.c.l.bf16 %v7818_v48 }
  0xa4   : > { %3167 = vrot.lane.b32.xlu1 %v7283_v10, %s7447_s10  ;;  %6625 = vmatmul.mubr.msk.bf16.gmra.mxu1 %vm407_vm0, %v1412_v63  ;;  %v7344_v10 = vld [vmem:[%s7553_s17 + $0x80] sm:$0xf]  ;;  %v4566_v63 = vunpack.c.l.bf16 %v7345_v56  ;;  %v4601_v48 = vunpack.c.l.bf16 %v7828_v54  ;;  %v4586_v24 = vunpack.c.l.bf16 %v7365_v17 }
  0xa5   : > { %6658 = vmatprep.mubr.msk.bf16.mxu0 %vm407_vm0, %v1692_v2  ;;  %2769 = vrot.lane.b32.xlu0 %v7613_v30, %s7447_s10  ;;  %v4565_v62 = vunpack.c.l.bf16 %v7344_v10  ;;  %v4535_v2 = vunpack.c.l.bf16 %v7807_v43  ;;  %v7286_v43 = vld [vmem:[%s7553_s17 + $0xb0] ss:$8 sps:$4 sm:$0xff]   ;;  %v4632_v32 = vmax.f32 %v4536_v0, %v4568_v9  ;;  %v7348_v10 = vld [vmem:[%s7553_s17 + $0xa0] sm:$0xf]  ;;  %v4538_v9 = vunpack.c.l.bf16 %v7821_v49 }
  0xa6   : > { %v1694_v27 = vpop.permute.xlu1 %1693  ;;  %v4630_v38 = vmax.f32 %v4534_v61, %v4566_v63  ;;  %v4569_v56 = vunpack.c.l.bf16 %v7348_v10  ;;  %v7351_v0 = vld [vmem:[%s7553_s17 + $0xb8] sm:$0xf]  ;;  %v4602_v49 = vunpack.c.l.bf16 %v7835_v57  ;;  %v7353_v10 = vld [vmem:[%s7553_s17 + $0xc8] sm:$0xf] }
  0xa7   : > { %6659 = vmatmul.mubr.msk.bf16.gmra.mxu0 %vm407_vm0, %v1694_v27  ;;  %v1414_v33 = vpop.permute.xlu0 %1413  ;;  %v4600_v27 = vunpack.c.l.bf16 %v7825_v53  ;;  %v4629_v11 = vmax.f32 %v4533_v58, %v4565_v62  ;;  %v7287_v62 = vld [vmem:[%s7553_s17 + $0xc0] ss:$8 sps:$4 sm:$0xff]   ;;  %v7350_v58 = vld [vmem:[%s7553_s17 + $0xb0] sm:$0xf] }
  0xa8   : > { %2771 = vrot.lane.b32.xlu1 %v7624_v35, %s7447_s10  ;;  %6628 = vmatprep.mubr.msk.bf16.mxu1 %vm407_vm0, %v1414_v33  ;;  %v8204_v33 = vmax.f32 %v4630_v38, %v4598_v31  ;;  %v4571_v61 = vunpack.c.l.bf16 %v7350_v58  ;;  %v4540_v31 = vunpack.c.l.bf16 %v7851_v6  ;;  %v4633_v54 = vmax.f32 %v4537_v8, %v4569_v56  ;;  %v7289_v56 = vld [vmem:[%s7553_s17 + $0xe0] ss:$8 sps:$4 sm:$0xff]   ;;  %v7354_v58 = vld [vmem:[%s7553_s17 + $0xd0] sm:$0xf] }
  0xa9   : > { %3169 = vrot.lane.b32.xlu0 %v7284_v26, %s7447_s10  ;;  %v4599_v26 = vunpack.c.l.bf16 %v7815_v47  ;;  %v4631_v47 = vmax.f32 %v4535_v2, %v4567_v40  ;;  %v8202_v23 = vmax.f32 %v4629_v11, %v4597_v28  ;;  %v8214_v40 = vmax.f32 %v4632_v32, %v4600_v27  ;;  %v7352_v32 = vld [vmem:[%s7553_s17 + $0xc0] sm:$0xf] }
  0xaa   : > { %v1416_v4 = vpop.permute.xlu1 %1415  ;;  %v4539_v28 = vunpack.c.l.bf16 %v7848_v3  ;;  %v4604_v11 = vunpack.c.l.bf16 %v7860_v20  ;;  %v7288_v3 = vld [vmem:[%s7553_s17 + $0xd0] ss:$8 sps:$4 sm:$0xff]   ;;  %v4541_v8 = vunpack.c.l.bf16 %v7863_v21  ;;  %v4605_v21 = vunpack.c.l.bf16 %v7872_v36  ;;  %v9996_v2 = vld [vmem:[#allocation9_spill] sm:$0xff] }
  0xab   : > { %v1696_v19 = vpop.permute.xlu0 %1695  ;;  %v8212_v63 = vmax.f32 %v4631_v47, %v4599_v26 }
  0xac   : > { %3171 = vrot.lane.b32.xlu1 %v7285_v37, %s7447_s10  ;;  %6629 = vmatmul.mubr.msk.bf16.gmra.mxu1 %vm407_vm0, %v1416_v4  ;;  %v7349_v37 = vld [vmem:[%s7553_s17 + $0xa8] sm:$0xf]  ;;  %v4572_v4 = vunpack.c.l.bf16 %v7351_v0 }
  0xad   : > { %6662 = vmatprep.mubr.msk.bf16.mxu0 %vm407_vm0, %v1696_v19  ;;  %2773 = vrot.lane.b32.xlu0 %v7638_v41, %s7447_s10  ;;  %v4570_v39 = vunpack.c.l.bf16 %v7349_v37  ;;  %v4574_v37 = vunpack.c.l.bf16 %v7353_v10  ;;  %v7361_v0 = vld [vmem:[%s7553_s17 + $0x108] sm:$0xf] }
  0xae   : > { %v1698_v44 = vpop.permute.xlu1 %1697  ;;  %v4636_v38 = vmax.f32 %v4540_v31, %v4572_v4  ;;  %v7355_v4 = vld [vmem:[%s7553_s17 + $0xd8] sm:$0xf]  ;;  %v4543_v31 = vunpack.c.l.bf16 %v7892_v55  ;;  %v9979_v55 = vld [vmem:[#allocation5_spill] sm:$0xff]  ;;  %v4582_v26 = vunpack.c.l.bf16 %v7361_v0 }
  0xaf   : > { %6663 = vmatmul.mubr.msk.bf16.gmra.mxu0 %vm407_vm0, %v1698_v44  ;;  %v1418_v53 = vpop.permute.xlu0 %1417  ;;  %v4634_v57 = vmax.f32 %v4538_v9, %v4570_v39  ;;  %v8238_v44 = vmax.f32 %v4633_v54, %v4601_v48  ;;  %v4542_v9 = vunpack.c.l.bf16 %v7868_v25  ;;  %v9978_v54 = vld [vmem:[#allocation16_spill] sm:$0xff] }
  0xb0   : > { %2775 = vrot.lane.b32.xlu1 %v7658_v51, %s7447_s10  ;;  %6632 = vmatprep.mubr.msk.bf16.mxu1 %vm407_vm0, %v1418_v53  ;;  %v4573_v53 = vunpack.c.l.bf16 %v7352_v32 }
  0xb1   : > { %3173 = vrot.lane.b32.xlu0 %v7286_v43, %s7447_s10  ;;  %v4603_v43 = vunpack.c.l.bf16 %v7857_v15  ;;  %v4635_v15 = vmax.f32 %v4539_v28, %v4571_v61  ;;  %9973 = vst [vmem:[#allocation39_spill] sm:$0xff] %v8238_v44  ;;  %v8240_v47 = vmax.f32 %v4634_v57, %v4602_v49  ;;  %v4575_v61 = vunpack.c.l.bf16 %v7354_v58  ;;  %v7356_v58 = vld [vmem:[%s7553_s17 + $0xe0] sm:$0xf] }
  0xb2   : > { %v1420_v19 = vpop.permute.xlu1 %1419  ;;  %v4576_v28 = vunpack.c.l.bf16 %v7355_v4  ;;  %v4608_v57 = vunpack.c.l.bf16 %v9978_v54  ;;  %v4637_v36 = vmax.f32 %v4541_v8, %v4573_v53  ;;  %v4577_v4 = vunpack.c.l.bf16 %v7356_v58  ;;  %v7291_v53 = vld [vmem:[%s7553_s17 + $0x100] ss:$8 sps:$4 sm:$0xff]   ;;  %v7358_v8 = vld [vmem:[%s7553_s17 + $0xf0] sm:$0xf]  ;;  %v9990_v58 = vld [vmem:[#allocation20_spill] sm:$0xff] }
  0xb3   : > { %v1700_v27 = vpop.permute.xlu0 %1699  ;;  %v8248_v39 = vmax.f32 %v4635_v15, %v4603_v43 }
  0xb4   : > { %3175 = vrot.lane.b32.xlu1 %v7287_v62, %s7447_s10  ;;  %6633 = vmatmul.mubr.msk.bf16.gmra.mxu1 %vm407_vm0, %v1420_v19  ;;  %v8250_v62 = vmax.f32 %v4636_v38, %v4604_v11  ;;  %v4544_v19 = vunpack.c.l.bf16 %v7895_v59  ;;  %v9977_v11 = vld [vmem:[#allocation15_spill] sm:$0xff]  ;;  %v4639_v38 = vmax.f32 %v4543_v31, %v4575_v61  ;;  %v8274_v10 = vmax.f32 %v4637_v36, %v4605_v21  ;;  %v9987_v36 = vld [vmem:[#allocation21_spill] sm:$0xff] }
  0xb5   : > { %6666 = vmatprep.mubr.msk.bf16.mxu0 %vm407_vm0, %v1700_v27  ;;  %2777 = vrot.lane.b32.xlu0 %v7660_v52, %s7447_s10  ;;  %9974 = vst [vmem:[#allocation40_spill] sm:$0xff] %v8248_v39  ;;  %v9976_v27 = vld [vmem:[#allocation14_spill] sm:$0xff]  ;;  %v7290_v59 = vld [vmem:[%s7553_s17 + $0xf0] ss:$8 sps:$4 sm:$0xff]  }
  0xb6   : > { %v1702_v6 = vpop.permute.xlu1 %1701  ;;  %9975 = vst [vmem:[#allocation41_spill] sm:$0xff] %v8250_v62  ;;  %v4606_v25 = vunpack.c.l.bf16 %v9976_v27  ;;  %9980 = vst [vmem:[#allocation14_spill] sm:$0xff] %v8274_v10 }
  0xb7   : > { %6667 = vmatmul.mubr.msk.bf16.gmra.mxu0 %vm407_vm0, %v1702_v6  ;;  %v1422_v20 = vpop.permute.xlu0 %1421  ;;  %v4638_v6 = vmax.f32 %v4542_v9, %v4574_v37  ;;  %v4579_v9 = vunpack.c.l.bf16 %v7358_v8 }
  0xb8   : > { %2779 = vrot.lane.b32.xlu1 %v7698_v1, %s7447_s10  ;;  %6636 = vmatprep.mubr.msk.bf16.mxu1 %vm407_vm0, %v1422_v20  ;;  %v4640_v20 = vmax.f32 %v4544_v19, %v4576_v28  ;;  %v9985_v28 = vld [vmem:[#allocation17_spill] sm:$0xff]  ;;  %v9986_v19 = vld [vmem:[#allocation18_spill] sm:$0xff] }
  0xb9   : > { %3177 = vrot.lane.b32.xlu0 %v7288_v3, %s7447_s10  ;;  %v4607_v3 = vunpack.c.l.bf16 %v9977_v11  ;;  %v4545_v31 = vunpack.c.l.bf16 %v9985_v28  ;;  %v4546_v21 = vunpack.c.l.bf16 %v9986_v19  ;;  %v7359_v11 = vld [vmem:[%s7553_s17 + $0xf8] sm:$0xf] }
  0xba   : > { %v1424_v48 = vpop.permute.xlu1 %1423  ;;  %v8286_v61 = vmax.f32 %v4640_v20, %v4608_v57  ;;  %v4580_v54 = vunpack.c.l.bf16 %v7359_v11  ;;  %v9989_v20 = vld [vmem:[#allocation19_spill] sm:$0xff]  ;;  %v9992_v19 = vld [vmem:[#allocation24_spill] sm:$0xff] }
  0xbb   : > { %v1704_v43 = vpop.permute.xlu0 %1703  ;;  %v8284_v37 = vmax.f32 %v4639_v38, %v4607_v3  ;;  %v9988_v3 = vld [vmem:[#allocation22_spill] sm:$0xff]  ;;  %v9993_v11 = vld [vmem:[#allocation8_spill] sm:$0xff] }
  0xbc   : > { %3179 = vrot.lane.b32.xlu1 %v7289_v56, %s7447_s10  ;;  %6637 = vmatmul.mubr.msk.bf16.gmra.mxu1 %vm407_vm0, %v1424_v48  ;;  %v8276_v56 = vmax.f32 %v4638_v6, %v4606_v25  ;;  %v7357_v48 = vld [vmem:[%s7553_s17 + $0xe8] sm:$0xf]  ;;  %9984 = vst [vmem:[#allocation5_spill] sm:$0xff] %v8286_v61  ;;  %v4547_v6 = vunpack.c.l.bf16 %v9987_v36  ;;  %v4612_v25 = vunpack.c.l.bf16 %v9992_v19  ;;  %v7292_v36 = vld [vmem:[%s7553_s17 + $0x110] ss:$8 sps:$4 sm:$0xff]  }
  0xbd   : > { %6670 = vmatprep.mubr.msk.bf16.mxu0 %vm407_vm0, %v1704_v43  ;;  %2781 = vrot.lane.b32.xlu0 %v9979_v55, %s7447_s10  ;;  %v4578_v27 = vunpack.c.l.bf16 %v7357_v48  ;;  %v9982_v43 = vld [vmem:[#allocation7_spill] sm:$0xff]  ;;  %9983 = vst [vmem:[#allocation16_spill] sm:$0xff] %v8284_v37  ;;  %v4610_v48 = vunpack.c.l.bf16 %v9990_v58 }
  0xbe   : > { %v1706_v15 = vpop.permute.xlu1 %1705  ;;  %9981 = vst [vmem:[#allocation15_spill] sm:$0xff] %v8276_v56 }
  0xbf   : > { %6671 = vmatmul.mubr.msk.bf16.gmra.mxu0 %vm407_vm0, %v1706_v15  ;;  %v1426_v32 = vpop.permute.xlu0 %1425  ;;  %v4548_v15 = vunpack.c.l.bf16 %v9988_v3  ;;  %v4641_v3 = vmax.f32 %v4545_v31, %v4577_v4  ;;  %v7293_v4 = vld [vmem:[%s7553_s17 + $0x120] ss:$8 sps:$4 sm:$0xff]   ;;  %v7362_v31 = vld [vmem:[%s7553_s17 + $0x110] sm:$0xf] }
  0xc0   : > { %2783 = vrot.lane.b32.xlu1 %v9982_v43, %s7447_s10  ;;  %6640 = vmatprep.mubr.msk.bf16.mxu1 %vm407_vm0, %v1426_v32  ;;  %v4609_v32 = vunpack.c.l.bf16 %v9989_v20  ;;  %v4642_v20 = vmax.f32 %v4546_v21, %v4578_v27  ;;  %v4583_v21 = vunpack.c.l.bf16 %v7362_v31 }
  0xc1   : > { %3181 = vrot.lane.b32.xlu0 %v7290_v59, %s7447_s10  ;;  %v9991_v59 = vld [vmem:[#allocation23_spill] sm:$0xff]  ;;  %v4644_v38 = vmax.f32 %v4548_v15, %v4580_v54  ;;  %v9999_v54 = vld [vmem:[#allocation25_spill] sm:$0xff]  ;;  %v10000_v15 = vld [vmem:[#allocation26_spill] sm:$0xff] }
  0xc2   : > { %v1428_v57 = vpop.permute.xlu1 %1427  ;;  %v4611_v28 = vunpack.c.l.bf16 %v9991_v59  ;;  %v4643_v59 = vmax.f32 %v4547_v6, %v4579_v9  ;;  %v8312_v49 = vmax.f32 %v4642_v20, %v4610_v48  ;;  %v4549_v6 = vunpack.c.l.bf16 %v9999_v54  ;;  %v7363_v48 = vld [vmem:[%s7553_s17 + $0x118] sm:$0xf]  ;;  %v10003_v54 = vld [vmem:[#allocation29_spill] sm:$0xff] }
  0xc3   : > { %v1708_v8 = vpop.permute.xlu0 %1707  ;;  %v8322_v9 = vmax.f32 %v4644_v38, %v4612_v25  ;;  %v4551_v20 = vunpack.c.l.bf16 %v7978_v60  ;;  %v10004_v60 = vld [vmem:[#allocation10_spill] sm:$0xff] }
  0xc4   : > { %3183 = vrot.lane.b32.xlu1 %v7291_v53, %s7447_s10  ;;  %6641 = vmatmul.mubr.msk.bf16.gmra.mxu1 %vm407_vm0, %v1428_v57  ;;  %v8310_v53 = vmax.f32 %v4641_v3, %v4609_v32  ;;  %9995 = vst [vmem:[#allocation17_spill] sm:$0xff] %v8312_v49  ;;  %v7360_v57 = vld [vmem:[%s7553_s17 + $0x100] sm:$0xf]  ;;  %v8320_v27 = vmax.f32 %v4643_v59, %v4611_v28  ;;  %v4550_v32 = vunpack.c.l.bf16 %v10000_v15  ;;  %v4584_v3 = vunpack.c.l.bf16 %v7363_v48 }
  0xc5   : > { %6674 = vmatprep.mubr.msk.bf16.mxu0 %vm407_vm0, %v1708_v8  ;;  %2785 = vrot.lane.b32.xlu0 %v9993_v11, %s7447_s10  ;;  %v4581_v8 = vunpack.c.l.bf16 %v7360_v57  ;;  %9998 = vst [vmem:[#allocation21_spill] sm:$0xff] %v8322_v9  ;;  %v4552_v28 = vunpack.c.l.bf16 %v7981_v45  ;;  %v4616_v15 = vunpack.c.l.bf16 %v10003_v54  ;;  %v7294_v45 = vld [vmem:[%s7553_s17 + $0x130] ss:$8 sps:$4 sm:$0xff]  }
  0xc6   : > { %v1710_v58 = vpop.permute.xlu1 %1709  ;;  %9994 = vst [vmem:[#allocation7_spill] sm:$0xff] %v8310_v53  ;;  %9997 = vst [vmem:[#allocation18_spill] sm:$0xff] %v8320_v27 }
  0xc7   : > { %6675 = vmatmul.mubr.msk.bf16.gmra.mxu0 %vm407_vm0, %v1710_v58  ;;  %v1430_v19 = vpop.permute.xlu0 %1429  ;;  %v10001_v58 = vld [vmem:[#allocation27_spill] sm:$0xff]  ;;  %v4645_v48 = vmax.f32 %v4549_v6, %v4581_v8  ;;  %v4648_v38 = vmax.f32 %v4552_v28, %v4584_v3  ;;  %v10010_v3 = vld [vmem:[#allocation30_spill] sm:$0xff] }
  0xc8   : > { %2787 = vrot.lane.b32.xlu1 %v9996_v2, %s7447_s10  ;;  %6644 = vmatprep.mubr.msk.bf16.mxu1 %vm407_vm0, %v1430_v19  ;;  %v4613_v59 = vunpack.c.l.bf16 %v10001_v58  ;;  %v10002_v19 = vld [vmem:[#allocation28_spill] sm:$0xff]  ;;  %v4646_v58 = vmax.f32 %v4550_v32, %v4582_v26  ;;  %v7295_v26 = vld [vmem:[%s7553_s17 + $0x140] ss:$8 sps:$4 sm:$0xff]   ;;  %v7366_v6 = vld [vmem:[%s7553_s17 + $0x130] sm:$0xf] }
  0xc9   : > { %3185 = vrot.lane.b32.xlu0 %v7292_v36, %s7447_s10  ;;  %v4614_v57 = vunpack.c.l.bf16 %v10002_v19  ;;  %v4615_v36 = vunpack.c.l.bf16 %v7995_v46  ;;  %v4647_v46 = vmax.f32 %v4551_v20, %v4583_v21  ;;  %v8358_v21 = vmax.f32 %v4648_v38, %v4616_v15  ;;  %v10011_v28 = vld [vmem:[#allocation31_spill] sm:$0xff]  ;;  %v8372_v38 = vld [vmem:[%s9871_s1 + $0x48] sm:$0xff]  }
  0xca   : > { %v1432_v25 = vpop.permute.xlu1 %1431  ;;  %v4587_v32 = vunpack.c.l.bf16 %v7366_v6  ;;  %v4553_v20 = vunpack.c.l.bf16 %v10010_v3  ;;  %v10015_v6 = vld [vmem:[#allocation33_spill] sm:$0xff] }
  0xcb   : > { %v1712_v31 = vpop.permute.xlu0 %1711  ;;  %v8348_v0 = vmax.f32 %v4646_v58, %v4614_v57  ;;  %v8356_v8 = vmax.f32 %v4647_v46, %v4615_v36  ;;  %10009 = vst [vmem:[#allocation23_spill] sm:$0xff] %v8358_v21  ;;  %v7367_v57 = vld [vmem:[%s7553_s17 + $0x138] sm:$0xf]  ;;  %v10012_v58 = vld [vmem:[#allocation34_spill] sm:$0xff]  ;;  %v4618_v3 = vunpack.c.l.bf16 %v10015_v6 }
  0xcc   : > { %3187 = vrot.lane.b32.xlu1 %v7293_v4, %s7447_s10  ;;  %6645 = vmatmul.mubr.msk.bf16.gmra.mxu1 %vm407_vm0, %v1432_v25  ;;  %v8346_v4 = vmax.f32 %v4645_v48, %v4613_v59  ;;  %v7364_v25 = vld [vmem:[%s7553_s17 + $0x120] sm:$0xf]  ;;  %v4554_v59 = vunpack.c.l.bf16 %v10011_v28  ;;  %v4588_v48 = vunpack.c.l.bf16 %v7367_v57  ;;  %v10016_v57 = vld [vmem:[#allocation36_spill] sm:$0xff] }
  0xcd   : > { %6678 = vmatprep.mubr.msk.bf16.mxu0 %vm407_vm0, %v1712_v31  ;;  %2789 = vrot.lane.b32.xlu0 %v10004_v60, %s7447_s10  ;;  %10006 = vst [vmem:[#allocation19_spill] sm:$0xff] %v8348_v0  ;;  %v4585_v31 = vunpack.c.l.bf16 %v7364_v25  ;;  %10008 = vst [vmem:[#allocation20_spill] sm:$0xff] %v8356_v8  ;;  %v4619_v17 = vunpack.c.l.bf16 %v10016_v57  ;;  %v10019_v57 = vld [vmem:[#allocation12_spill] sm:$0xff] }
  0xce   : > { %v1714_v19 = vpop.permute.xlu1 %1713  ;;  %10005 = vst [vmem:[#allocation22_spill] sm:$0xff] %v8346_v4  ;;  %v4650_v15 = vmax.f32 %v4554_v59, %v4586_v24  ;;  %v7299_v24 = vld [vmem:[%s7553_s17 + $0x160] ss:$8 sps:$4 sm:$0xff]  }
  0xcf   : > { %6679 = vmatmul.mubr.msk.bf16.gmra.mxu0 %vm407_vm0, %v1714_v19  ;;  %v2084_v54 = vpop.permute.xlu0 %2083  ;;  %v4555_v19 = vunpack.c.l.bf16 %v10012_v58  ;;  %v10017_v58 = vld [vmem:[#allocation37_spill] sm:$0xff]  ;;  %v4649_v6 = vmax.f32 %v4553_v20, %v4585_v31 }
  0xd0   : > { %2791 = vrot.lane.b32.xlu1 %v10007_v22, %s7447_s10  ;;  %6684 = vmatprep.mubr.msk.bf16.mxu1 %vm407_vm0, %v2084_v54  ;;  %v10013_v54 = vld [vmem:[#allocation35_spill] sm:$0xff]  ;;  %v4620_v12 = vunpack.c.l.bf16 %v10017_v58  ;;  %v8396_v21 = vmax.f32 %v4650_v15, %v4618_v3  ;;  %v10022_v31 = vld [vmem:[#allocation13_spill] sm:$0xff] }
  0xd1   : > { %3189 = vrot.lane.b32.xlu0 %v7294_v45, %s7447_s10  ;;  %v4556_v36 = vunpack.c.l.bf16 %v10013_v54  ;;  %v10014_v45 = vld [vmem:[#allocation32_spill] sm:$0xff]  ;;  %v10018_v54 = vld [vmem:[#allocation38_spill] sm:$0xff] }
  0xd2   : > { %v2086_v46 = vpop.permute.xlu1 %2085  ;;  %v4617_v25 = vunpack.c.l.bf16 %v10014_v45  ;;  %v8387_v45 = vld [vmem:[%s9871_s1 + $0x50] sm:$0xff]   ;;  %10021 = vst [vmem:[#allocation8_spill] sm:$0xff] %v8396_v21 }
  0xd3   : > { %v2484_v28 = vpop.permute.xlu0 %2483  ;;  %v7298_v58 = vld [vmem:[%s7553_s17 + $0x150] ss:$8 sps:$4 sm:$0xff]  }
  0xd4   : > { %3191 = vrot.lane.b32.xlu1 %v7295_v26, %s7447_s10  ;;  %6685 = vmatmul.mubr.msk.bf16.vlgmr.msra.gmra.mxu1 %vm407_vm0, %v2086_v46  ;;  %v4651_v26 = vmax.f32 %v4555_v19, %v4587_v32  ;;  %v4652_v46 = vmax.f32 %v4556_v36, %v4588_v48  ;;  %v7300_v48 = vld [vmem:[%s7553_s17] ss:$8 sps:$4 sm:$0xff]  }
  0xd5   : > { %6718 = vmatprep.mubr.msk.bf16.mxu0 %vm407_vm0, %v2484_v28  ;;  %6751 = vmatpush3.bf16.msra.mxu1 %v10018_v54  ;;  %v8394_v54 = vmax.f32 %v4649_v6, %v4617_v25  ;;  %v10025_v6 = vld [vmem:[#allocation6_spill] sm:$0xff] }
  0xd6   : > { %v2486_v8 = vpop.permute.xlu1 %2485  ;;  %2793 = vrot.lane.b32.xlu0 %v10019_v57, %s7447_s10  ;;  %6818 = vmatprep.subr.bf16.mxu1 %v8372_v38  ;;  %v8402_v20 = vmax.f32 %v4651_v26, %v4619_v17  ;;  %v8404_v59 = vmax.f32 %v4652_v46, %v4620_v12  ;;  %v7301_v12 = vld [vmem:[%s7553_s17 + $0x10] ss:$8 sps:$4 sm:$0xff]  }
  0xd7   : > { %6719 = vmatmul.mubr.msk.bf16.vlgmr.msra.gmra.mxu0 %vm407_vm0, %v2486_v8  ;;  %v2088_v28 = vpop.permute.xlu0 %2087  ;;  %10020 = vst [vmem:[#allocation24_spill] sm:$0xff] %v8394_v54 }
  0xd8   : > { %2795 = vrot.lane.b32.xlu1 %v10022_v31, %s7447_s10  ;;  %6785 = vmatpush3.bf16.msra.mxu0 %v8102_v34  ;;  %10023 = vst [vmem:[#allocation9_spill] sm:$0xff] %v8402_v20  ;;  %10024 = vst [vmem:[#allocation25_spill] sm:$0xff] %v8404_v59 }
  0xd9   : > { %6688 = vmatprep.mubr.msk.bf16.mxu1 %vm407_vm0, %v2088_v28  ;;  %6852 = vmatprep.subr.bf16.mxu0 %v8387_v45 }
  0xda   : > { %v2090_v32 = vpop.permute.xlu1 %2089  ;;  %3193 = vrot.lane.b32.xlu0 %v7298_v58, %s7447_s10  ;;  %v7302_v58 = vld [vmem:[%s7553_s17 + $0x20] ss:$8 sps:$4 sm:$0xff]  }
  0xdb   : > { %v2488_v34 = vpop.permute.xlu0 %2487 }
  0xdc   : > { %3195 = vrot.lane.b32.xlu1 %v7299_v24, %s7447_s10  ;;  %6689 = vmatmul.mubr.msk.bf16.gmra.mxu1 %vm407_vm0, %v2090_v32  ;;  %v7303_v24 = vld [vmem:[%s7553_s17 + $0x30] ss:$8 sps:$4 sm:$0xff]   ;;  %s9815_s10 = scalar_lea.hbm %s9875_s5, %s6290_s29 }
  0xdd   : > { %6722 = vmatprep.mubr.msk.bf16.mxu0 %vm407_vm0, %v2488_v34 }
  0xde   : > { %v2490_v17 = vpop.permute.xlu1 %2489  ;;  %3564 = vrot.lane.b32.xlu0 %v7300_v48, %s7448_s7 }
  0xdf   : > { %6723 = vmatmul.mubr.msk.bf16.gmra.mxu0 %vm407_vm0, %v2490_v17  ;;  %v2092_v36 = vpop.permute.xlu0 %2091 }
  0xe0   : > { %v8420_v15 = vpop.f32.mrf.mxu1  ;;  %3566 = vrot.lane.b32.xlu1 %v7301_v12, %s7448_s7  ;;  %6692 = vmatprep.mubr.msk.bf16.mxu1 %vm407_vm0, %v2092_v36 }
  0xe2   : > { %v8424_v25 = vpop.f32.mrf.mxu1  ;;  %v2094_v3 = vpop.permute.xlu1 %2093  ;;  %3846 = vrot.lane.b32.xlu0 %v10025_v6, %s7448_s7 }
  0xe3   : > { %v8429_v26 = vpop.f32.mrf.mxu0  ;;  %v2492_v46 = vpop.permute.xlu0 %2491 }
  0xe4   : > { %v8431_v28 = vpop.f32.mrf.mxu1  ;;  %3848 = vrot.lane.b32.xlu1 %v7578_v16, %s7448_s7  ;;  %6693 = vmatmul.mubr.msk.bf16.gmra.mxu1 %vm407_vm0, %v2094_v3 }
  0xe5   : > { %v8437_v32 = vpop.f32.mrf.mxu0  ;;  %6726 = vmatprep.mubr.msk.bf16.mxu0 %vm407_vm0, %v2492_v46 }
  0xe6   : > { %v8440_v48 = vpop.f32.mrf.mxu1  ;;  %v2494_v34 = vpop.permute.xlu1 %2493  ;;  %3568 = vrot.lane.b32.xlu0 %v7302_v58, %s7448_s7  ;;  %v7304_v58 = vld [vmem:[%s7553_s17 + $0x40] ss:$8 sps:$4 sm:$0xff]  }
  0xe7   : > { %v8443_v12 = vpop.f32.mrf.mxu0  ;;  %6727 = vmatmul.mubr.msk.bf16.gmra.mxu0 %vm407_vm0, %v2494_v34  ;;  %v2096_v17 = vpop.permute.xlu0 %2095 }
  0xe8   : > { %v8446_v16 = vpop.f32.mrf.mxu1  ;;  %3570 = vrot.lane.b32.xlu1 %v7303_v24, %s7448_s7  ;;  %6696 = vmatprep.mubr.msk.bf16.mxu1 %vm407_vm0, %v2096_v17  ;;  %v7305_v24 = vld [vmem:[%s7553_s17 + $0x50] ss:$8 sps:$4 sm:$0xff]  }
  0xe9   : > { %v8450_v36 = vpop.f32.mrf.mxu0 }
  0xea   : > { %v8452_v3 = vpop.f32.mrf.mxu1  ;;  %v2098_v6 = vpop.permute.xlu1 %2097  ;;  %3850 = vrot.lane.b32.xlu0 %v7613_v30, %s7448_s7 }
  0xeb   : > { %v8457_v46 = vpop.f32.mrf.mxu0  ;;  %v2496_v19 = vpop.permute.xlu0 %2495 }
  0xec   : > { %v8459_v34 = vpop.f32.mrf.mxu1  ;;  %3852 = vrot.lane.b32.xlu1 %v7624_v35, %s7448_s7  ;;  %6697 = vmatmul.mubr.msk.bf16.gmra.mxu1 %vm407_vm0, %v2098_v6 }
  0xed   : > { %v8465_v17 = vpop.f32.mrf.mxu0  ;;  %6730 = vmatprep.mubr.msk.bf16.mxu0 %vm407_vm0, %v2496_v19 }
  0xee   : > { %v8468_v8 = vpop.f32.mrf.mxu1  ;;  %v2498_v30 = vpop.permute.xlu1 %2497  ;;  %3572 = vrot.lane.b32.xlu0 %v7304_v58, %s7448_s7  ;;  %v7306_v58 = vld [vmem:[%s7553_s17 + $0x60] ss:$8 sps:$4 sm:$0xff]  }
  0xef   : > { %v8471_v20 = vpop.f32.mrf.mxu0  ;;  %6731 = vmatmul.mubr.msk.bf16.gmra.mxu0 %vm407_vm0, %v2498_v30  ;;  %v2100_v59 = vpop.permute.xlu0 %2099 }
  0xf0   : > { %v8474_v35 = vpop.f32.mrf.mxu1  ;;  %3574 = vrot.lane.b32.xlu1 %v7305_v24, %s7448_s7  ;;  %6700 = vmatprep.mubr.msk.bf16.mxu1 %vm407_vm0, %v2100_v59  ;;  %v7307_v59 = vld [vmem:[%s7553_s17 + $0x70] ss:$8 sps:$4 sm:$0xff]  }
  0xf1   : > { %v8478_v6 = vpop.f32.mrf.mxu0 }
  0xf2   : > { %v8480_v19 = vpop.f32.mrf.mxu1  ;;  %v2102_v54 = vpop.permute.xlu1 %2101  ;;  %3854 = vrot.lane.b32.xlu0 %v7638_v41, %s7448_s7 }
  0xf3   : > { %v8485_v21 = vpop.f32.mrf.mxu0  ;;  %v2500_v4 = vpop.permute.xlu0 %2499 }
  0xf4   : > { %v8487_v30 = vpop.f32.mrf.mxu1  ;;  %3856 = vrot.lane.b32.xlu1 %v7658_v51, %s7448_s7  ;;  %6701 = vmatmul.mubr.msk.bf16.gmra.mxu1 %vm407_vm0, %v2102_v54 }
  0xf5   : > { %v8493_v24 = vpop.f32.mrf.mxu0  ;;  %6734 = vmatprep.mubr.msk.bf16.mxu0 %vm407_vm0, %v2500_v4 }
  0xf6   : > { %v8496_v0 = vpop.f32.mrf.mxu1  ;;  %v2502_v41 = vpop.permute.xlu1 %2501  ;;  %3576 = vrot.lane.b32.xlu0 %v7306_v58, %s7448_s7  ;;  %v7308_v58 = vld [vmem:[%s7553_s17 + $0x80] ss:$8 sps:$4 sm:$0xff]  }
  0xf7   : > { %v8499_v27 = vpop.f32.mrf.mxu0  ;;  %6735 = vmatmul.mubr.msk.bf16.gmra.mxu0 %vm407_vm0, %v2502_v41  ;;  %v2104_v9 = vpop.permute.xlu0 %2103 }
  0xf8   : > { %v8502_v51 = vpop.f32.mrf.mxu1  ;;  %3578 = vrot.lane.b32.xlu1 %v7307_v59, %s7448_s7  ;;  %6704 = vmatprep.mubr.msk.bf16.mxu1 %vm407_vm0, %v2104_v9  ;;  %v7309_v9 = vld [vmem:[%s7553_s17 + $0x90] ss:$8 sps:$4 sm:$0xff]  }
  0xf9   : > { %v8506_v54 = vpop.f32.mrf.mxu0 }
  0xfa   : > { %v8508_v4 = vpop.f32.mrf.mxu1  ;;  %v2106_v53 = vpop.permute.xlu1 %2105  ;;  %3858 = vrot.lane.b32.xlu0 %v7660_v52, %s7448_s7 }
  0xfb   : > { %10026 = vst [vmem:[#allocation26_spill] sm:$0xff] %v8508_v4  ;;  %v8513_v49 = vpop.f32.mrf.mxu0  ;;  %v2504_v37 = vpop.permute.xlu0 %2503 }
  0xfc   : > { %v8515_v41 = vpop.f32.mrf.mxu1  ;;  %3860 = vrot.lane.b32.xlu1 %v7698_v1, %s7448_s7  ;;  %6705 = vmatmul.mubr.msk.bf16.gmra.mxu1 %vm407_vm0, %v2106_v53 }
  0xfd   : > { %10027 = vst [vmem:[#allocation27_spill] sm:$0xff] %v8515_v41  ;;  %v8521_v59 = vpop.f32.mrf.mxu0  ;;  %6738 = vmatprep.mubr.msk.bf16.mxu0 %vm407_vm0, %v2504_v37 }
  0xfe   : > { %v8524_v61 = vpop.f32.mrf.mxu1  ;;  %v2506_v52 = vpop.permute.xlu1 %2505  ;;  %3580 = vrot.lane.b32.xlu0 %v7308_v58, %s7448_s7  ;;  %v7310_v58 = vld [vmem:[%s7553_s17 + $0xa0] ss:$8 sps:$4 sm:$0xff]  }
  0xff   : > { %10028 = vst [vmem:[#allocation28_spill] sm:$0xff] %v8524_v61  ;;  %v8527_v10 = vpop.f32.mrf.mxu0  ;;  %6739 = vmatmul.mubr.msk.bf16.gmra.mxu0 %vm407_vm0, %v2506_v52  ;;  %v2108_v56 = vpop.permute.xlu0 %2107 }
 0x100   : > { %3582 = vrot.lane.b32.xlu1 %v7309_v9, %s7448_s7  ;;  %v6550_v1 = vpop.f32.mrf.mxu1  ;;  %6708 = vmatprep.mubr.msk.bf16.mxu1 %vm407_vm0, %v2108_v56  ;;  %v7311_v9 = vld [vmem:[%s7553_s17 + $0xb0] ss:$8 sps:$4 sm:$0xff]  }
 0x101   : > { %v8532_v53 = vpop.f32.mrf.mxu0  ;;  %v794_v37 = vadd.f32 %v6550_v1, %v8429_v26 }
 0x102   : > { %v2110_v41 = vpop.permute.xlu1 %2109  ;;  %v785_v61 = vpop.f32.mrf.mxu1  ;;  %3862 = vrot.lane.b32.xlu0 %v9979_v55, %s7448_s7 }
 0x103   : > { %v786_v39 = vadd.f32 %v785_v61, %v8437_v32  ;;  %v6584_v52 = vpop.f32.mrf.mxu0  ;;  %v2508_v62 = vpop.permute.xlu0 %2507 }
 0x104   : > { %v8539_v4 = vadd.f32 %v6584_v52, %v794_v37  ;;  %3864 = vrot.lane.b32.xlu1 %v9982_v43, %s7448_s7  ;;  %v6551_v56 = vpop.f32.mrf.mxu1  ;;  %6709 = vmatmul.mubr.msk.bf16.gmra.mxu1 %vm407_vm0, %v2110_v41 }
 0x105   : > { %v797_v26 = vadd.f32 %v6551_v56, %v8443_v12  ;;  %v1121_v1 = vpop.f32.mrf.mxu0  ;;  %6742 = vmatprep.mubr.msk.bf16.mxu0 %vm407_vm0, %v2508_v62 }
 0x106   : > { %v8547_v55 = vadd.f32 %v1121_v1, %v786_v39  ;;  %v2510_v44 = vpop.permute.xlu1 %2509  ;;  %v788_v61 = vpop.f32.mrf.mxu1  ;;  %3584 = vrot.lane.b32.xlu0 %v7310_v58, %s7448_s7 }
 0x107   : > { %v789_v32 = vadd.f32 %v788_v61, %v8450_v36  ;;  %v6585_v37 = vpop.f32.mrf.mxu0  ;;  %6743 = vmatmul.mubr.msk.bf16.gmra.mxu0 %vm407_vm0, %v2510_v44  ;;  %v2112_v43 = vpop.permute.xlu0 %2111  ;;  %v7312_v44 = vld [vmem:[%s7553_s17 + $0xc0] ss:$8 sps:$4 sm:$0xff]  }
 0x108   : > { %v8552_v41 = vadd.f32 %v6585_v37, %v797_v26  ;;  %3586 = vrot.lane.b32.xlu1 %v7311_v9, %s7448_s7  ;;  %v6554_v12 = vpop.f32.mrf.mxu1  ;;  %6712 = vmatprep.mubr.msk.bf16.mxu1 %vm407_vm0, %v2112_v43 }
 0x109   : > { %v810_v39 = vadd.f32 %v6554_v12, %v8457_v46  ;;  %v1124_v62 = vpop.f32.mrf.mxu0  ;;  %v7313_v46 = vld [vmem:[%s7553_s17 + $0xd0] ss:$8 sps:$4 sm:$0xff]  }
 0x10a   : > { %v8557_v52 = vadd.f32 %v1124_v62, %v789_v32  ;;  %v2114_v58 = vpop.permute.xlu1 %2113  ;;  %v801_v56 = vpop.f32.mrf.mxu1  ;;  %3866 = vrot.lane.b32.xlu0 %v9993_v11, %s7448_s7 }
 0x10b   : > { %v802_v36 = vadd.f32 %v801_v56, %v8465_v17  ;;  %v6588_v26 = vpop.f32.mrf.mxu0  ;;  %v2512_v1 = vpop.permute.xlu0 %2511 }
 0x10c   : > { %v8563_v9 = vadd.f32 %v6588_v26, %v810_v39  ;;  %3868 = vrot.lane.b32.xlu1 %v9996_v2, %s7448_s7  ;;  %v6555_v61 = vpop.f32.mrf.mxu1  ;;  %6713 = vmatmul.mubr.msk.bf16.gmra.mxu1 %vm407_vm0, %v2114_v58 }
 0x10d   : > { %v813_v32 = vadd.f32 %v6555_v61, %v8471_v20  ;;  %v1137_v37 = vpop.f32.mrf.mxu0  ;;  %6746 = vmatprep.mubr.msk.bf16.mxu0 %vm407_vm0, %v2512_v1  ;;  %v8589_v1 = vld [vmem:[%s9871_s1 + $0x58] sm:$0xff]  }
 0x10e   : > { %v8571_v11 = vadd.f32 %v1137_v37, %v802_v36  ;;  %v2514_v43 = vpop.permute.xlu1 %2513  ;;  %v804_v17 = vpop.f32.mrf.mxu1  ;;  %3588 = vrot.lane.b32.xlu0 %v7312_v44, %s7448_s7 }
 0x10f   : > { %v805_v12 = vadd.f32 %v804_v17, %v8478_v6  ;;  %v6589_v39 = vpop.f32.mrf.mxu0  ;;  %6747 = vmatmul.mubr.msk.bf16.gmra.mxu0 %vm407_vm0, %v2514_v43  ;;  %v2766_v2 = vpop.permute.xlu0 %2765  ;;  %v7315_v6 = vld [vmem:[%s7553_s17 + $0xe0] ss:$8 sps:$4 sm:$0xff]   ;;  %v7317_v43 = vld [vmem:[%s7553_s17 + $0xf0] ss:$8 sps:$4 sm:$0xff]  }
 0x110   : > { %v8576_v62 = vadd.f32 %v6589_v39, %v813_v32  ;;  %3590 = vrot.lane.b32.xlu1 %v7313_v46, %s7448_s7  ;;  %v6558_v20 = vpop.f32.mrf.mxu1  ;;  %6752 = vmatprep.mubr.msk.bf16.mxu1 %vm407_vm0, %v2766_v2 }
 0x111   : > { %v826_v58 = vadd.f32 %v6558_v20, %v8485_v21  ;;  %v1140_v56 = vpop.f32.mrf.mxu0 }
 0x112   : > { %v8581_v36 = vadd.f32 %v1140_v56, %v805_v12  ;;  %v2768_v44 = vpop.permute.xlu1 %2767  ;;  %v817_v26 = vpop.f32.mrf.mxu1  ;;  %3870 = vrot.lane.b32.xlu0 %v10004_v60, %s7448_s7 }
 0x113   : > { %v818_v61 = vadd.f32 %v817_v26, %v8493_v24  ;;  %v6592_v46 = vpop.f32.mrf.mxu0  ;;  %v3166_v32 = vpop.permute.xlu0 %3165  ;;  %v8604_v24 = vld [vmem:[%s9872_s2] sm:$0xff]  }
 0x114   : > { %v8592_v37 = vadd.f32 %v6592_v46, %v826_v58  ;;  %3872 = vrot.lane.b32.xlu1 %v10007_v22, %s7448_s7  ;;  %v6559_v21 = vpop.f32.mrf.mxu1  ;;  %6753 = vmatmul.mubr.msk.bf16.vlgmr.msra.gmra.mxu1 %vm407_vm0, %v2768_v44 }
 0x115   : > { %v829_v60 = vadd.f32 %v6559_v21, %v8499_v27  ;;  %v1153_v17 = vpop.f32.mrf.mxu0  ;;  %6786 = vmatprep.mubr.msk.bf16.mxu0 %vm407_vm0, %v3166_v32  ;;  %6819 = vmatpush3.bf16.msra.mxu1 %v8372_v38 }
 0x116   : > { %v8606_v12 = vadd.f32 %v1153_v17, %v818_v61  ;;  %v3168_v39 = vpop.permute.xlu1 %3167  ;;  %v820_v22 = vpop.f32.mrf.mxu1  ;;  %3592 = vrot.lane.b32.xlu0 %v7315_v6, %s7448_s7  ;;  %6886 = vmatprep.subr.bf16.mxu1 %v8589_v1  ;;  %v7318_v61 = vld [vmem:[%s7553_s17 + $0x80] ss:$8 sps:$4 sm:$0xff]  }
 0x117   : > { %v821_v27 = vadd.f32 %v820_v22, %v8506_v54  ;;  %v6593_v2 = vpop.f32.mrf.mxu0  ;;  %6787 = vmatmul.mubr.msk.bf16.vlgmr.msra.gmra.mxu0 %vm407_vm0, %v3168_v39  ;;  %v2770_v38 = vpop.permute.xlu0 %2769 }
 0x118   : > { %v8612_v20 = vadd.f32 %v6593_v2, %v829_v60  ;;  %3594 = vrot.lane.b32.xlu1 %v7317_v43, %s7448_s7  ;;  %v6562_v58 = vpop.f32.mrf.mxu1  ;;  %6853 = vmatpush3.bf16.msra.mxu0 %v8387_v45  ;;  %v7319_v43 = vld [vmem:[%s7553_s17 + $0x90] ss:$8 sps:$4 sm:$0xff]  }
 0x119   : > { %v842_v56 = vadd.f32 %v6562_v58, %v8513_v49  ;;  %v1156_v44 = vpop.f32.mrf.mxu0  ;;  %6756 = vmatprep.mubr.msk.bf16.mxu1 %vm407_vm0, %v2770_v38  ;;  %6920 = vmatprep.subr.bf16.mxu0 %v8604_v24 }
 0x11a   : > { %v8619_v54 = vadd.f32 %v1156_v44, %v821_v27  ;;  %v2772_v26 = vpop.permute.xlu1 %2771  ;;  %v833_v6 = vpop.f32.mrf.mxu1  ;;  %3874 = vrot.lane.b32.xlu0 %v10019_v57, %s7448_s7 }
 0x11b   : > { %v834_v46 = vadd.f32 %v833_v6, %v8521_v59  ;;  %v6596_v32 = vpop.f32.mrf.mxu0  ;;  %v3170_v45 = vpop.permute.xlu0 %3169  ;;  %v7320_v6 = vld [vmem:[%s7553_s17 + $0xa0] ss:$8 sps:$4 sm:$0xff]  }
 0x11c   : > { %v8625_v21 = vadd.f32 %v6596_v32, %v842_v56  ;;  %3876 = vrot.lane.b32.xlu1 %v10022_v31, %s7448_s7  ;;  %v6563_v49 = vpop.f32.mrf.mxu1  ;;  %6757 = vmatmul.mubr.msk.bf16.gmra.mxu1 %vm407_vm0, %v2772_v26 }
 0x11d   : > { %v845_v60 = vadd.f32 %v6563_v49, %v8527_v10  ;;  %v1169_v17 = vpop.f32.mrf.mxu0  ;;  %6790 = vmatprep.mubr.msk.bf16.mxu0 %vm407_vm0, %v3170_v45 }
 0x11e   : > { %v8633_v57 = vadd.f32 %v1169_v17, %v834_v46  ;;  %v3172_v39 = vpop.permute.xlu1 %3171  ;;  %v836_v59 = vpop.f32.mrf.mxu1  ;;  %4246 = vrot.lane.b32.xlu0 %v7318_v61, %s7448_s7 }
 0x11f   : > { %v837_v22 = vadd.f32 %v836_v59, %v8532_v53  ;;  %v6597_v27 = vpop.f32.mrf.mxu0  ;;  %6791 = vmatmul.mubr.msk.bf16.gmra.mxu0 %vm407_vm0, %v3172_v39  ;;  %v2774_v31 = vpop.permute.xlu0 %2773  ;;  %v10029_v53 = vpack.c.bf16 %v8132_v13, %v8130_v18 }
 0x120   : > { %v8638_v2 = vadd.f32 %v6597_v27, %v845_v60  ;;  %4248 = vrot.lane.b32.xlu1 %v7319_v43, %s7448_s7  ;;  %v6566_v10 = vpop.f32.mrf.mxu1  ;;  %6760 = vmatprep.mubr.msk.bf16.mxu1 %vm407_vm0, %v2774_v31  ;;  %v7321_v43 = vld [vmem:[%s7553_s17 + $0xb0] ss:$8 sps:$4 sm:$0xff]  }
 0x121   : > { %v858_v38 = vadd.f32 %v6566_v10, %v8420_v15  ;;  %v1172_v58 = vpop.f32.mrf.mxu0  ;;  %v10030_v15 = vpack.c.bf16 %v8142_v14, %v8140_v50 }
 0x122   : > { %v8643_v56 = vadd.f32 %v1172_v58, %v837_v22  ;;  %v2776_v44 = vpop.permute.xlu1 %2775  ;;  %v849_v26 = vpop.f32.mrf.mxu1  ;;  %4719 = vrot.lane.b32.xlu0 %v10029_v53, %s7449_s12  ;;  %v7322_v58 = vld [vmem:[%s7553_s17 + $0xc0] ss:$8 sps:$4 sm:$0xff]  }
 0x123   : > { %v850_v61 = vadd.f32 %v849_v26, %v8424_v25  ;;  %v6600_v46 = vpop.f32.mrf.mxu0  ;;  %v3174_v32 = vpop.permute.xlu0 %3173 }
 0x124   : > { %v8651_v45 = vadd.f32 %v6600_v46, %v858_v38  ;;  %4721 = vrot.lane.b32.xlu1 %v10030_v15, %s7449_s12  ;;  %v6567_v49 = vpop.f32.mrf.mxu1  ;;  %6761 = vmatmul.mubr.msk.bf16.gmra.mxu1 %vm407_vm0, %v2776_v44  ;;  %v7323_v46 = vld [vmem:[%s7553_s17 + $0xd0] ss:$8 sps:$4 sm:$0xff]  }
 0x125   : > { %v1185_v60 = vpop.f32.mrf.mxu0  ;;  %v861_v18 = vadd.f32 %v6567_v49, %v8431_v28  ;;  %6794 = vmatprep.mubr.msk.bf16.mxu0 %vm407_vm0, %v3174_v32 }
 0x126   : > { %v8661_v13 = vadd.f32 %v1185_v60, %v850_v61  ;;  %v3176_v25 = vpop.permute.xlu1 %3175  ;;  %v852_v17 = vpop.f32.mrf.mxu1  ;;  %4250 = vrot.lane.b32.xlu0 %v7320_v6, %s7448_s7 }
 0x127   : > { %v853_v39 = vadd.f32 %v852_v17, %v8440_v48  ;;  %v6601_v50 = vpop.f32.mrf.mxu0  ;;  %6795 = vmatmul.mubr.msk.bf16.gmra.mxu0 %vm407_vm0, %v3176_v25  ;;  %v2778_v14 = vpop.permute.xlu0 %2777  ;;  %v10031_v48 = vpack.c.bf16 %v8168_v42, %v8166_v5 }
 0x128   : > { %v8666_v59 = vadd.f32 %v6601_v50, %v861_v18  ;;  %4252 = vrot.lane.b32.xlu1 %v7321_v43, %s7448_s7  ;;  %v6570_v28 = vpop.f32.mrf.mxu1  ;;  %6764 = vmatprep.mubr.msk.bf16.mxu1 %vm407_vm0, %v2778_v14  ;;  %v7324_v50 = vld [vmem:[%s7553_s17 + $0xe0] ss:$8 sps:$4 sm:$0xff]  }
 0x129   : > { %v1188_v22 = vpop.f32.mrf.mxu0  ;;  %v874_v27 = vadd.f32 %v6570_v28, %v8446_v16  ;;  %v10032_v16 = vpack.c.bf16 %v8178_v29, %v8176_v7 }
 0x12a   : > { %v8671_v31 = vadd.f32 %v1188_v22, %v853_v39  ;;  %v2780_v10 = vpop.permute.xlu1 %2779  ;;  %v865_v38 = vpop.f32.mrf.mxu1  ;;  %4723 = vrot.lane.b32.xlu0 %v10031_v48, %s7449_s12 }
 0x12b   : > { %v866_v44 = vadd.f32 %v865_v38, %v8452_v3  ;;  %v6604_v26 = vpop.f32.mrf.mxu0  ;;  %v3178_v53 = vpop.permute.xlu0 %3177  ;;  %v7325_v38 = vld [vmem:[%s7553_s17 + $0xf0] ss:$8 sps:$4 sm:$0xff]  }
 0x12c   : > { %v8679_v6 = vadd.f32 %v6604_v26, %v874_v27  ;;  %4725 = vrot.lane.b32.xlu1 %v10032_v16, %s7449_s12  ;;  %v6571_v61 = vpop.f32.mrf.mxu1  ;;  %6765 = vmatmul.mubr.msk.bf16.gmra.mxu1 %vm407_vm0, %v2780_v10 }
 0x12d   : > { %v1201_v32 = vpop.f32.mrf.mxu0  ;;  %v877_v5 = vadd.f32 %v6571_v61, %v8459_v34  ;;  %6798 = vmatprep.mubr.msk.bf16.mxu0 %vm407_vm0, %v3178_v53 }
 0x12e   : > { %v8689_v42 = vadd.f32 %v1201_v32, %v866_v44  ;;  %v3180_v3 = vpop.permute.xlu1 %3179  ;;  %v868_v15 = vpop.f32.mrf.mxu1  ;;  %4254 = vrot.lane.b32.xlu0 %v7322_v58, %s7448_s7 }
 0x12f   : > { %v869_v49 = vadd.f32 %v868_v15, %v8468_v8  ;;  %v6605_v7 = vpop.f32.mrf.mxu0  ;;  %6799 = vmatmul.mubr.msk.bf16.gmra.mxu0 %vm407_vm0, %v3180_v3  ;;  %v2782_v29 = vpop.permute.xlu0 %2781  ;;  %v10033_v8 = vpack.c.bf16 %v8204_v33, %v8202_v23  ;;  %v7326_v3 = vld [vmem:[%s7553_s17 + $0x100] ss:$8 sps:$4 sm:$0xff]  }
 0x130   : > { %v8694_v43 = vadd.f32 %v6605_v7, %v877_v5  ;;  %4256 = vrot.lane.b32.xlu1 %v7323_v46, %s7448_s7  ;;  %v6574_v34 = vpop.f32.mrf.mxu1  ;;  %6768 = vmatprep.mubr.msk.bf16.mxu1 %vm407_vm0, %v2782_v29  ;;  %v10037_v15 = vld [vmem:[#allocation26_spill] sm:$0xff] }
 0x131   : > { %v1204_v60 = vpop.f32.mrf.mxu0  ;;  %v890_v18 = vadd.f32 %v6574_v34, %v8474_v35  ;;  %v10034_v35 = vpack.c.bf16 %v8214_v40, %v8212_v63 }
 0x132   : > { %v8699_v25 = vadd.f32 %v1204_v60, %v869_v49  ;;  %v2784_v17 = vpop.permute.xlu1 %2783  ;;  %v881_v39 = vpop.f32.mrf.mxu1  ;;  %4727 = vrot.lane.b32.xlu0 %v10033_v8, %s7449_s12  ;;  %v10038_v60 = vld [vmem:[#allocation41_spill] sm:$0xff] }
 0x133   : > { %v882_v14 = vadd.f32 %v881_v39, %v8480_v19  ;;  %v6608_v28 = vpop.f32.mrf.mxu0  ;;  %v3182_v22 = vpop.permute.xlu0 %3181  ;;  %v7327_v39 = vld [vmem:[%s7553_s17 + $0x110] ss:$8 sps:$4 sm:$0xff]  }
 0x134   : > { %v8707_v27 = vadd.f32 %v6608_v28, %v890_v18  ;;  %4729 = vrot.lane.b32.xlu1 %v10034_v35, %s7449_s12  ;;  %v6575_v10 = vpop.f32.mrf.mxu1  ;;  %6769 = vmatmul.mubr.msk.bf16.gmra.mxu1 %vm407_vm0, %v2784_v17  ;;  %v10039_v18 = vld [vmem:[#allocation40_spill] sm:$0xff] }
 0x135   : > { %v1217_v48 = vpop.f32.mrf.mxu0  ;;  %v893_v23 = vadd.f32 %v6575_v10, %v8487_v30  ;;  %6802 = vmatprep.mubr.msk.bf16.mxu0 %vm407_vm0, %v3182_v22  ;;  %v10042_v35 = vld [vmem:[#allocation28_spill] sm:$0xff] }
 0x136   : > { %v8717_v33 = vadd.f32 %v1217_v48, %v882_v14  ;;  %v3184_v19 = vpop.permute.xlu1 %3183  ;;  %v884_v58 = vpop.f32.mrf.mxu1  ;;  %4258 = vrot.lane.b32.xlu0 %v7324_v50, %s7448_s7  ;;  %v10041_v50 = vld [vmem:[#allocation27_spill] sm:$0xff] }
 0x137   : > { %v885_v44 = vadd.f32 %v884_v58, %v8496_v0  ;;  %v6609_v63 = vpop.f32.mrf.mxu0  ;;  %6803 = vmatmul.mubr.msk.bf16.gmra.mxu0 %vm407_vm0, %v3184_v19  ;;  %v2786_v40 = vpop.permute.xlu0 %2785  ;;  %v10035_v0 = vld [vmem:[#allocation39_spill] sm:$0xff] }
 0x138   : > { %v8722_v26 = vadd.f32 %v6609_v63, %v893_v23  ;;  %4260 = vrot.lane.b32.xlu1 %v7325_v38, %s7448_s7  ;;  %v6578_v30 = vpop.f32.mrf.mxu1  ;;  %6772 = vmatprep.mubr.msk.bf16.mxu1 %vm407_vm0, %v2786_v40  ;;  %v10036_v5 = vpack.c.bf16 %v8240_v47, %v10035_v0  ;;  %v10043_v63 = vld [vmem:[#allocation15_spill] sm:$0xff]  ;;  %v10044_v40 = vld [vmem:[#allocation14_spill] sm:$0xff] }
 0x139   : > { %v1220_v53 = vpop.f32.mrf.mxu0  ;;  %v906_v16 = vadd.f32 %v6578_v30, %v8502_v51  ;;  %v10040_v51 = vpack.c.bf16 %v10038_v60, %v10039_v18  ;;  %v10045_v30 = vpack.c.bf16 %v10043_v63, %v10044_v40  ;;  %v7330_v18 = vld [vmem:[%s7553_s17 + $0x140] ss:$8 sps:$4 sm:$0xff]  }
 0x13a   : > { %v8727_v61 = vadd.f32 %v1220_v53, %v885_v44  ;;  %v2788_v46 = vpop.permute.xlu1 %2787  ;;  %v897_v32 = vpop.f32.mrf.mxu1  ;;  %4731 = vrot.lane.b32.xlu0 %v10036_v5, %s7449_s12  ;;  %v7328_v53 = vld [vmem:[%s7553_s17 + $0x120] ss:$8 sps:$4 sm:$0xff]   ;;  %v7329_v5 = vld [vmem:[%s7553_s17 + $0x130] ss:$8 sps:$4 sm:$0xff]  }
 0x13b   : > { %v898_v49 = vadd.f32 %v897_v32, %v10037_v15  ;;  %v6612_v7 = vpop.f32.mrf.mxu0  ;;  %v3186_v29 = vpop.permute.xlu0 %3185  ;;  %v10047_v32 = vld [vmem:[#allocation16_spill] sm:$0xff] }
 0x13c   : > { %v8735_v34 = vadd.f32 %v6612_v7, %v906_v16  ;;  %4733 = vrot.lane.b32.xlu1 %v10040_v51, %s7449_s12  ;;  %v6579_v17 = vpop.f32.mrf.mxu1  ;;  %6773 = vmatmul.mubr.msk.bf16.gmra.mxu1 %vm407_vm0, %v2788_v46  ;;  %v10046_v46 = vld [vmem:[#allocation5_spill] sm:$0xff] }
 0x13d   : > { %v1233_v8 = vpop.f32.mrf.mxu0  ;;  %v909_v47 = vadd.f32 %v6579_v17, %v10041_v50  ;;  %6806 = vmatprep.mubr.msk.bf16.mxu0 %vm407_vm0, %v3186_v29  ;;  %v10048_v0 = vpack.c.bf16 %v10046_v46, %v10047_v32  ;;  %v10049_v7 = vld [vmem:[#allocation17_spill] sm:$0xff]  ;;  %v10050_v29 = vld [vmem:[#allocation7_spill] sm:$0xff]  ;;  %v10053_v17 = vld [vmem:[#allocation18_spill] sm:$0xff] }
 0x13e   : > { %v8745_v14 = vadd.f32 %v1233_v8, %v898_v49  ;;  %v3188_v28 = vpop.permute.xlu1 %3187  ;;  %v900_v22 = vpop.f32.mrf.mxu1  ;;  %4262 = vrot.lane.b32.xlu0 %v7326_v3, %s7448_s7  ;;  %v10051_v60 = vpack.c.bf16 %v10049_v7, %v10050_v29  ;;  %v10052_v51 = vld [vmem:[#allocation21_spill] sm:$0xff]  ;;  %v7331_v50 = vld [vmem:[%s7553_s17 + $0x150] ss:$8 sps:$4 sm:$0xff]  }
 0x13f   : > { %v901_v10 = vadd.f32 %v900_v22, %v10042_v35  ;;  %v6613_v38 = vpop.f32.mrf.mxu0  ;;  %6807 = vmatmul.mubr.msk.bf16.gmra.mxu0 %vm407_vm0, %v3188_v28  ;;  %v2790_v48 = vpop.permute.xlu0 %2789  ;;  %v10055_v35 = vld [vmem:[#allocation19_spill] sm:$0xff]  ;;  %v10061_v29 = vld [vmem:[#allocation8_spill] sm:$0xff] }
 0x140   : > { %v8750_v23 = vadd.f32 %v6613_v38, %v909_v47  ;;  %4264 = vrot.lane.b32.xlu1 %v7327_v39, %s7448_s7  ;;  %6776 = vmatprep.mubr.msk.bf16.mxu1 %vm407_vm0, %v2790_v48  ;;  %v10054_v39 = vpack.c.bf16 %v10052_v51, %v10053_v17  ;;  %v7334_v48 = vld [vmem:[%s7553_s17 + $0x160] ss:$8 sps:$4 sm:$0xff]  }
 0x141   : > { %v1236_v19 = vpop.f32.mrf.mxu0 }
 0x142   : > { %v8754_v58 = vadd.f32 %v1236_v19, %v901_v10  ;;  %v2792_v44 = vpop.permute.xlu1 %2791  ;;  %4735 = vrot.lane.b32.xlu0 %v10045_v30, %s7449_s12  ;;  %v10056_v10 = vld [vmem:[#allocation22_spill] sm:$0xff]  ;;  %v10058_v19 = vld [vmem:[#allocation23_spill] sm:$0xff] }
 0x143   : > { %v3190_v16 = vpop.permute.xlu0 %3189  ;;  %v10057_v38 = vpack.c.bf16 %v10055_v35, %v10056_v10 }
 0x144   : > { %4737 = vrot.lane.b32.xlu1 %v10048_v0, %s7449_s12  ;;  %6777 = vmatmul.mubr.msk.bf16.gmra.mxu1 %vm407_vm0, %v2792_v44  ;;  %v10059_v44 = vld [vmem:[#allocation20_spill] sm:$0xff] }
 0x145   : > { %6810 = vmatprep.mubr.msk.bf16.mxu0 %vm407_vm0, %v3190_v16  ;;  %v10060_v63 = vpack.c.bf16 %v10058_v19, %v10059_v44 }
 0x146   : > { %v3192_v3 = vpop.permute.xlu1 %3191  ;;  %4266 = vrot.lane.b32.xlu0 %v7328_v53, %s7448_s7  ;;  %v7335_v53 = vld [vmem:[%s7553_s17 + $0x170] ss:$8 sps:$4 sm:$0xff]  }
 0x147   : > { %6811 = vmatmul.mubr.msk.bf16.gmra.mxu0 %vm407_vm0, %v3192_v3 }
 0x148   : > { %4268 = vrot.lane.b32.xlu1 %v7329_v5, %s7448_s7  ;;  %v2794_v15 = vpop.permute.xlu0 %2793 }
 0x149   : > { %6780 = vmatprep.mubr.msk.bf16.mxu1 %vm407_vm0, %v2794_v15 }
 0x14a   : > { %v2796_v49 = vpop.permute.xlu1 %2795  ;;  %4739 = vrot.lane.b32.xlu0 %v10051_v60, %s7449_s12  ;;  %v10062_v60 = vld [vmem:[#allocation24_spill] sm:$0xff] }
 0x14c   : > { %4741 = vrot.lane.b32.xlu1 %v10054_v39, %s7449_s12  ;;  %v3194_v8 = vpop.permute.xlu0 %3193  ;;  %6781 = vmatmul.mubr.msk.bf16.gmra.mxu1 %vm407_vm0, %v2796_v49 }
 0x14d   : > { %6814 = vmatprep.mubr.msk.bf16.mxu0 %vm407_vm0, %v3194_v8  ;;  %v10064_v8 = vld [vmem:[#allocation25_spill] sm:$0xff] }
 0x14e   : > { %v3196_v47 = vpop.permute.xlu1 %3195  ;;  %4270 = vrot.lane.b32.xlu0 %v7330_v18, %s7448_s7  ;;  %v10063_v18 = vpack.c.bf16 %v10061_v29, %v10062_v60  ;;  %v6254_v29 = vld [vmem:[%s7553_s17 + $0x48] sm:$0xff] }
 0x14f   : > { %6815 = vmatmul.mubr.msk.bf16.gmra.mxu0 %vm407_vm0, %v3196_v47 }
 0x150   : > { %4272 = vrot.lane.b32.xlu1 %v7331_v50, %s7448_s7  ;;  %v3565_v28 = vpop.permute.xlu0 %3564  ;;  %v10065_v50 = vld [vmem:[#allocation9_spill] sm:$0xff] }
 0x151   : > { %6820 = vmatprep.mubr.msk.bf16.mxu1 %vm407_vm0, %v3565_v28 }
 0x152   : > { %v3567_v22 = vpop.permute.xlu1 %3566  ;;  %4743 = vrot.lane.b32.xlu0 %v10057_v38, %s7449_s12 }
 0x154   : > { %4745 = vrot.lane.b32.xlu1 %v10060_v63, %s7449_s12  ;;  %v3847_v40 = vpop.permute.xlu0 %3846  ;;  %v6618_v30 = vpop.f32.mrf.mxu1  ;;  %6821 = vmatmul.mubr.msk.bf16.vlgmr.msra.gmra.mxu1 %vm407_vm0, %v3567_v22 }
 0x155   : > { %v1650_v16 = vadd.f32 %v6618_v30, %v8539_v4  ;;  %6854 = vmatprep.mubr.msk.bf16.mxu0 %vm407_vm0, %v3847_v40  ;;  %6887 = vmatpush3.bf16.msra.mxu1 %v8589_v1  ;;  %v6253_v30 = vld [vmem:[%s7553_s17 + $0x40] sm:$0xff] }
 0x156   : > { %v3849_v46 = vpop.permute.xlu1 %3848  ;;  %4274 = vrot.lane.b32.xlu0 %v7334_v48, %s7448_s7  ;;  %v1521_v32 = vpop.f32.mrf.mxu1 }
 0x157   : > { %v6652_v0 = vpop.f32.mrf.mxu0  ;;  %6855 = vmatmul.mubr.msk.bf16.vlgmr.msra.gmra.mxu0 %vm407_vm0, %v3849_v46  ;;  %v1648_v5 = vadd.f32 %v1521_v32, %v8547_v55  ;;  %v5109_v46 = vunpack.c.h.bf16 %v6253_v30 }
 0x158   : > { %v8805_v3 = vadd.f32 %v6652_v0, %v1650_v16  ;;  %6921 = vmatpush3.bf16.msra.mxu0 %v8604_v24  ;;  %4276 = vrot.lane.b32.xlu1 %v7335_v53, %s7448_s7  ;;  %v3569_v4 = vpop.permute.xlu0 %3568  ;;  %v6619_v15 = vpop.f32.mrf.mxu1  ;;  %v5108_v16 = vunpack.c.l.bf16 %v6253_v30  ;;  %s5510_s7 = sshll.u32 %s9539_s27, 4  ;;  %s9817_s7 = int_to_ptr.vmem [resolvable:$true] %s5510_s7 }
 0x159   : > { %v1803_v49 = vpop.f32.mrf.mxu0  ;;  %v1651_v1 = vadd.f32 %v6619_v15, %v8552_v41  ;;  %6824 = vmatprep.mubr.msk.bf16.mxu1 %vm407_vm0, %v3569_v4  ;;  %v10066_v41 = vpack.c.bf16 %v10064_v8, %v10065_v50  ;;  %s7368_s11 = scalar_lea.vmem %s9817_s7, 4096 }
 0x15a   : > { %v3571_v7 = vpop.permute.xlu1 %3570  ;;  %4747 = vrot.lane.b32.xlu0 %v10063_v18, %s7449_s12  ;;  %v1524_v55 = vpop.f32.mrf.mxu1  ;;  %v8815_v51 = vadd.f32 %v1803_v49, %v1648_v5  ;;  %v7019_v15 = vpack.i.bf16 %v5109_v46, %v5108_v16  ;;  %p7369_p12 = scmp.ne.s32.totalorder %s9817_s7, %s7368_s11 }
 0x15b   : > { %v6653_v17 = vpop.f32.mrf.mxu0  ;;  %v1649_v24 = vadd.f32 %v1524_v55, %v8557_v52  ;;  %v5110_v55 = vunpack.c.l.bf16 %v6254_v29 }
 0x15c   : > { %v8818_v39 = vadd.f32 %v6653_v17, %v1651_v1  ;;  %4749 = vrot.lane.b32.xlu1 %v10066_v41, %s7449_s12  ;;  %v3851_v47 = vpop.permute.xlu0 %3850  ;;  %v6622_v28 = vpop.f32.mrf.mxu1  ;;  %6825 = vmatmul.mubr.msk.bf16.gmra.mxu1 %vm407_vm0, %v3571_v7  ;;  %p7370_p13 = pnand %p7369_p12, %p7524_p4  ;;  %s7451_s12 = smov [#allocation2]  }
 0x15d   : > { %v1806_v22 = vpop.f32.mrf.mxu0  ;;  %v1654_v35 = vadd.f32 %v6622_v28, %v8563_v9  ;;  %6858 = vmatprep.mubr.msk.bf16.mxu0 %vm407_vm0, %v3851_v47 }
 0x15e   : > { %v3853_v10 = vpop.permute.xlu1 %3852  ;;  %v1537_v38 = vpop.f32.mrf.mxu1  ;;  %v8827_v52 = vadd.f32 %v1806_v22, %v1649_v24  ;;  %7020 = vrot.lane.b32.xlu0 %v7019_v15, %s7450_s13  ;;  %p7371_p0 = pneg %p7370_p13 }
 0x15f   : > { %v6656_v48 = vpop.f32.mrf.mxu0  ;;  %6859 = vmatmul.mubr.msk.bf16.gmra.mxu0 %vm407_vm0, %v3853_v10  ;;  %v1652_v19 = vadd.f32 %v1537_v38, %v8571_v11 }
 0x160   : > { %v8831_v44 = vadd.f32 %v6656_v48, %v1654_v35  ;;  %v3573_v63 = vpop.permute.xlu0 %3572  ;;  %v6623_v40 = vpop.f32.mrf.mxu1  ;;  %v6256_v48 = vld [vmem:[%s7553_s17 + $0x58] sm:$0xff] }
 0x161   : > { %v1819_v53 = vpop.f32.mrf.mxu0  ;;  %v1655_v9 = vadd.f32 %v6623_v40, %v8576_v62  ;;  %6828 = vmatprep.mubr.msk.bf16.mxu1 %vm407_vm0, %v3573_v63  ;;  %v6255_v62 = vld [vmem:[%s7553_s17 + $0x50] sm:$0xff]  ;;  %v5114_v30 = vunpack.c.l.bf16 %v6256_v48 }
 0x162   : > { %v8836_v32 = vadd.f32 %v1819_v53, %v1652_v19  ;;  %v3575_v0 = vpop.permute.xlu1 %3574  ;;  %v1540_v5 = vpop.f32.mrf.mxu1  ;;  %v5112_v17 = vunpack.c.l.bf16 %v6255_v62  ;;  %v5113_v41 = vunpack.c.h.bf16 %v6255_v62  ;;  %v6257_v19 = vld [vmem:[%s7553_s17 + $0x60] sm:$0xff]  ;;  %v5115_v53 = vunpack.c.h.bf16 %v6256_v48  ;;  %v6259_v62 = vld [vmem:[%s7553_s17 + $0x70] sm:$0xff]  ;;  %v6260_v48 = vld [vmem:[%s7553_s17 + $0x78] sm:$0xff] }
 0x163   : > { %v6657_v4 = vpop.f32.mrf.mxu0  ;;  %v1653_v11 = vadd.f32 %v1540_v5, %v8581_v36  ;;  %v5111_v36 = vunpack.c.h.bf16 %v6254_v29  ;;  %v6258_v29 = vld [vmem:[%s7553_s17 + $0x68] sm:$0xff] }
 0x164   : > { %v8839_v49 = vadd.f32 %v6657_v4, %v1655_v9  ;;  %v3855_v1 = vpop.permute.xlu0 %3854  ;;  %v6626_v7 = vpop.f32.mrf.mxu1  ;;  %6829 = vmatmul.mubr.msk.bf16.gmra.mxu1 %vm407_vm0, %v3575_v0  ;;  %v7029_v38 = vpack.i.bf16 %v5113_v41, %v5112_v17  ;;  %v5117_v0 = vunpack.c.h.bf16 %v6257_v19  ;;  %v5121_v41 = vunpack.c.h.bf16 %v6259_v62 }
 0x165   : > { %v1822_v60 = vpop.f32.mrf.mxu0  ;;  %v1658_v18 = vadd.f32 %v6626_v7, %v8592_v37  ;;  %6862 = vmatprep.mubr.msk.bf16.mxu0 %vm407_vm0, %v3855_v1  ;;  %v7024_v28 = vpack.i.bf16 %v5111_v36, %v5110_v55  ;;  %v5118_v55 = vunpack.c.l.bf16 %v6258_v29  ;;  %v5120_v36 = vunpack.c.l.bf16 %v6259_v62  ;;  %v6263_v62 = vld [vmem:[%s7553_s17 + $0x90] sm:$0xff] }
 0x166   : > { %v8847_v24 = vadd.f32 %v1822_v60, %v1653_v11  ;;  %v3857_v8 = vpop.permute.xlu1 %3856  ;;  %v1553_v50 = vpop.f32.mrf.mxu1  ;;  %7030 = vrot.lane.b32.xlu0 %v7029_v38, %s7450_s13 }
 0x167   : > { %v6660_v47 = vpop.f32.mrf.mxu0  ;;  %6863 = vmatmul.mubr.msk.bf16.gmra.mxu0 %vm407_vm0, %v3857_v8  ;;  %v1656_v37 = vadd.f32 %v1553_v50, %v8606_v12  ;;  %7025 = vrot.lane.b32.xlu1 %v7024_v28, %s7450_s13  ;;  %v5116_v12 = vunpack.c.l.bf16 %v6257_v19  ;;  %v7049_v38 = vpack.i.bf16 %v5121_v41, %v5120_v36  ;;  %v6261_v19 = vld [vmem:[%s7553_s17 + $0x80] sm:$0xff]  ;;  %v5129_v41 = vunpack.c.h.bf16 %v6263_v62 }
 0x168   : > { %v8851_v22 = vadd.f32 %v6660_v47, %v1658_v18  ;;  %v3577_v35 = vpop.permute.xlu0 %3576  ;;  %v6627_v10 = vpop.f32.mrf.mxu1 }
 0x169   : > { %v1835_v63 = vpop.f32.mrf.mxu0  ;;  %v1659_v40 = vadd.f32 %v6627_v10, %v8612_v20  ;;  %6832 = vmatprep.mubr.msk.bf16.mxu1 %vm407_vm0, %v3577_v35  ;;  %v7034_v20 = vpack.i.bf16 %v5115_v53, %v5114_v30  ;;  %v7039_v7 = vpack.i.bf16 %v5117_v0, %v5116_v12  ;;  %v5122_v30 = vunpack.c.l.bf16 %v6260_v48 }
 0x16a   : > { %v8858_v9 = vadd.f32 %v1835_v63, %v1656_v37  ;;  %v3579_v16 = vpop.permute.xlu1 %3578  ;;  %v1556_v46 = vpop.f32.mrf.mxu1  ;;  %v5123_v53 = vunpack.c.h.bf16 %v6260_v48  ;;  %v5125_v0 = vunpack.c.h.bf16 %v6261_v19  ;;  %v6264_v48 = vld [vmem:[%s7553_s17 + $0x98] sm:$0xff] }
 0x16b   : > { %v6661_v5 = vpop.f32.mrf.mxu0  ;;  %v1657_v4 = vadd.f32 %v1556_v46, %v8619_v54  ;;  %7035 = vrot.lane.b32.xlu1 %v7034_v20, %s7450_s13  ;;  %v5119_v54 = vunpack.c.h.bf16 %v6258_v29  ;;  %7040 = vrot.lane.b32.xlu0 %v7039_v7, %s7450_s13  ;;  %v6262_v29 = vld [vmem:[%s7553_s17 + $0x88] sm:$0xff] }
 0x16c   : > { %v8862_v11 = vadd.f32 %v6661_v5, %v1659_v40  ;;  %v3859_v15 = vpop.permute.xlu0 %3858  ;;  %v6630_v1 = vpop.f32.mrf.mxu1  ;;  %6833 = vmatmul.mubr.msk.bf16.gmra.mxu1 %vm407_vm0, %v3579_v16 }
 0x16d   : > { %v1838_v60 = vpop.f32.mrf.mxu0  ;;  %v1662_v18 = vadd.f32 %v6630_v1, %v8625_v21  ;;  %6866 = vmatprep.mubr.msk.bf16.mxu0 %vm407_vm0, %v3859_v15  ;;  %v7044_v37 = vpack.i.bf16 %v5119_v54, %v5118_v55  ;;  %v5126_v55 = vunpack.c.l.bf16 %v6262_v29  ;;  %v5128_v54 = vunpack.c.l.bf16 %v6263_v62  ;;  %v6267_v62 = vld [vmem:[%s7553_s17 + $0xb0] sm:$0xff] }
 0x16e   : > { %v8870_v17 = vadd.f32 %v1838_v60, %v1657_v4  ;;  %v3861_v8 = vpop.permute.xlu1 %3860  ;;  %v1569_v50 = vpop.f32.mrf.mxu1 }
 0x16f   : > { %v6664_v47 = vpop.f32.mrf.mxu0  ;;  %6867 = vmatmul.mubr.msk.bf16.gmra.mxu0 %vm407_vm0, %v3861_v8  ;;  %v1660_v21 = vadd.f32 %v1569_v50, %v8633_v57  ;;  %7045 = vrot.lane.b32.xlu1 %v7044_v37, %s7450_s13  ;;  %v5124_v57 = vunpack.c.l.bf16 %v6261_v19  ;;  %v6265_v19 = vld [vmem:[%s7553_s17 + $0xa0] sm:$0xff] }
 0x170   : > { %v8875_v28 = vadd.f32 %v6664_v47, %v1662_v18  ;;  %v3581_v35 = vpop.permute.xlu0 %3580  ;;  %v6631_v10 = vpop.f32.mrf.mxu1  ;;  %7050 = vrot.lane.b32.xlu0 %v7049_v38, %s7450_s13  ;;  %v7069_v38 = vpack.i.bf16 %v5129_v41, %v5128_v54  ;;  %v5137_v41 = vunpack.c.h.bf16 %v6267_v62 }
 0x171   : > { %v1851_v63 = vpop.f32.mrf.mxu0  ;;  %v1663_v40 = vadd.f32 %v6631_v10, %v8638_v2  ;;  %6836 = vmatprep.mubr.msk.bf16.mxu1 %vm407_vm0, %v3581_v35  ;;  %v7054_v2 = vpack.i.bf16 %v5123_v53, %v5122_v30  ;;  %v7059_v7 = vpack.i.bf16 %v5125_v0, %v5124_v57  ;;  %v5130_v30 = vunpack.c.l.bf16 %v6264_v48 }
 0x172   : > { %v8882_v12 = vadd.f32 %v1851_v63, %v1660_v21  ;;  %v3583_v16 = vpop.permute.xlu1 %3582  ;;  %v1572_v46 = vpop.f32.mrf.mxu1  ;;  %v5131_v53 = vunpack.c.h.bf16 %v6264_v48  ;;  %v5133_v0 = vunpack.c.h.bf16 %v6265_v19  ;;  %v6268_v48 = vld [vmem:[%s7553_s17 + $0xb8] sm:$0xff] }
 0x173   : > { %v6665_v5 = vpop.f32.mrf.mxu0  ;;  %v1661_v4 = vadd.f32 %v1572_v46, %v8643_v56  ;;  %7055 = vrot.lane.b32.xlu1 %v7054_v2, %s7450_s13  ;;  %v5127_v56 = vunpack.c.h.bf16 %v6262_v29  ;;  %v6266_v29 = vld [vmem:[%s7553_s17 + $0xa8] sm:$0xff] }
 0x174   : > { %v8886_v20 = vadd.f32 %v6665_v5, %v1663_v40  ;;  %v3863_v15 = vpop.permute.xlu0 %3862  ;;  %v6634_v1 = vpop.f32.mrf.mxu1  ;;  %6837 = vmatmul.mubr.msk.bf16.gmra.mxu1 %vm407_vm0, %v3583_v16  ;;  %7060 = vrot.lane.b32.xlu0 %v7059_v7, %s7450_s13 }
 0x175   : > { %v1854_v60 = vpop.f32.mrf.mxu0  ;;  %v1666_v18 = vadd.f32 %v6634_v1, %v8651_v45  ;;  %6870 = vmatprep.mubr.msk.bf16.mxu0 %vm407_vm0, %v3863_v15  ;;  %v7064_v21 = vpack.i.bf16 %v5127_v56, %v5126_v55  ;;  %v5134_v55 = vunpack.c.l.bf16 %v6266_v29  ;;  %v5136_v56 = vunpack.c.l.bf16 %v6267_v62  ;;  %v6271_v62 = vld [vmem:[%s7553_s17 + $0xd0] sm:$0xff] }
 0x176   : > { %v8894_v36 = vadd.f32 %v1854_v60, %v1661_v4  ;;  %v3865_v8 = vpop.permute.xlu1 %3864  ;;  %v1585_v50 = vpop.f32.mrf.mxu1 }
 0x177   : > { %v6668_v47 = vpop.f32.mrf.mxu0  ;;  %6871 = vmatmul.mubr.msk.bf16.gmra.mxu0 %vm407_vm0, %v3865_v8  ;;  %v1664_v45 = vadd.f32 %v1585_v50, %v8661_v13  ;;  %7065 = vrot.lane.b32.xlu1 %v7064_v21, %s7450_s13  ;;  %v5132_v13 = vunpack.c.l.bf16 %v6265_v19  ;;  %v6269_v19 = vld [vmem:[%s7553_s17 + $0xc0] sm:$0xff] }
 0x178   : > { %v8899_v37 = vadd.f32 %v6668_v47, %v1666_v18  ;;  %v3585_v35 = vpop.permute.xlu0 %3584  ;;  %v6635_v10 = vpop.f32.mrf.mxu1  ;;  %7070 = vrot.lane.b32.xlu0 %v7069_v38, %s7450_s13  ;;  %v7089_v38 = vpack.i.bf16 %v5137_v41, %v5136_v56  ;;  %v5145_v41 = vunpack.c.h.bf16 %v6271_v62 }
 0x179   : > { %v1867_v63 = vpop.f32.mrf.mxu0  ;;  %v1667_v40 = vadd.f32 %v6635_v10, %v8666_v59  ;;  %6840 = vmatprep.mubr.msk.bf16.mxu1 %vm407_vm0, %v3585_v35  ;;  %v7074_v59 = vpack.i.bf16 %v5131_v53, %v5130_v30  ;;  %v7079_v7 = vpack.i.bf16 %v5133_v0, %v5132_v13  ;;  %v5138_v30 = vunpack.c.l.bf16 %v6268_v48 }
 0x17a   : > { %v8906_v57 = vadd.f32 %v1867_v63, %v1664_v45  ;;  %v3587_v16 = vpop.permute.xlu1 %3586  ;;  %v1588_v46 = vpop.f32.mrf.mxu1  ;;  %v5139_v53 = vunpack.c.h.bf16 %v6268_v48  ;;  %v5141_v0 = vunpack.c.h.bf16 %v6269_v19  ;;  %v6272_v48 = vld [vmem:[%s7553_s17 + $0xd8] sm:$0xff] }
 0x17b   : > { %v6669_v5 = vpop.f32.mrf.mxu0  ;;  %v1665_v4 = vadd.f32 %v1588_v46, %v8671_v31  ;;  %7075 = vrot.lane.b32.xlu1 %v7074_v59, %s7450_s13  ;;  %v5135_v31 = vunpack.c.h.bf16 %v6266_v29  ;;  %v6270_v29 = vld [vmem:[%s7553_s17 + $0xc8] sm:$0xff] }
 0x17c   : > { %v8910_v2 = vadd.f32 %v6669_v5, %v1667_v40  ;;  %v3867_v15 = vpop.permute.xlu0 %3866  ;;  %v6638_v1 = vpop.f32.mrf.mxu1  ;;  %6841 = vmatmul.mubr.msk.bf16.gmra.mxu1 %vm407_vm0, %v3587_v16  ;;  %7080 = vrot.lane.b32.xlu0 %v7079_v7, %s7450_s13 }
 0x17d   : > { %v1870_v60 = vpop.f32.mrf.mxu0  ;;  %v1670_v18 = vadd.f32 %v6638_v1, %v8679_v6  ;;  %6874 = vmatprep.mubr.msk.bf16.mxu0 %vm407_vm0, %v3867_v15  ;;  %v7084_v45 = vpack.i.bf16 %v5135_v31, %v5134_v55  ;;  %v5142_v55 = vunpack.c.l.bf16 %v6270_v29  ;;  %v5144_v31 = vunpack.c.l.bf16 %v6271_v62  ;;  %v6275_v62 = vld [vmem:[%s7553_s17 + $0xf0] sm:$0xff] }
 0x17e   : > { %v8918_v54 = vadd.f32 %v1870_v60, %v1665_v4  ;;  %v3869_v8 = vpop.permute.xlu1 %3868  ;;  %v1601_v50 = vpop.f32.mrf.mxu1 }
 0x17f   : > { %v6672_v47 = vpop.f32.mrf.mxu0  ;;  %6875 = vmatmul.mubr.msk.bf16.gmra.mxu0 %vm407_vm0, %v3869_v8  ;;  %v1668_v6 = vadd.f32 %v1601_v50, %v8689_v42  ;;  %7085 = vrot.lane.b32.xlu1 %v7084_v45, %s7450_s13  ;;  %v5140_v42 = vunpack.c.l.bf16 %v6269_v19  ;;  %v6273_v19 = vld [vmem:[%s7553_s17 + $0xe0] sm:$0xff] }
 0x180   : > { %v8923_v21 = vadd.f32 %v6672_v47, %v1670_v18  ;;  %v3589_v35 = vpop.permute.xlu0 %3588  ;;  %v6639_v10 = vpop.f32.mrf.mxu1  ;;  %7090 = vrot.lane.b32.xlu0 %v7089_v38, %s7450_s13  ;;  %v7109_v38 = vpack.i.bf16 %v5145_v41, %v5144_v31  ;;  %v5153_v41 = vunpack.c.h.bf16 %v6275_v62 }
 0x181   : > { %v1883_v63 = vpop.f32.mrf.mxu0  ;;  %v1671_v40 = vadd.f32 %v6639_v10, %v8694_v43  ;;  %6844 = vmatprep.mubr.msk.bf16.mxu1 %vm407_vm0, %v3589_v35  ;;  %v7094_v43 = vpack.i.bf16 %v5139_v53, %v5138_v30  ;;  %v7099_v7 = vpack.i.bf16 %v5141_v0, %v5140_v42  ;;  %v5146_v30 = vunpack.c.l.bf16 %v6272_v48 }
 0x182   : > { %v8930_v13 = vadd.f32 %v1883_v63, %v1668_v6  ;;  %v3591_v16 = vpop.permute.xlu1 %3590  ;;  %v1604_v46 = vpop.f32.mrf.mxu1  ;;  %v5147_v53 = vunpack.c.h.bf16 %v6272_v48  ;;  %v5149_v0 = vunpack.c.h.bf16 %v6273_v19  ;;  %v6276_v48 = vld [vmem:[%s7553_s17 + $0xf8] sm:$0xff] }
 0x183   : > { %v6673_v5 = vpop.f32.mrf.mxu0  ;;  %v1669_v4 = vadd.f32 %v1604_v46, %v8699_v25  ;;  %7095 = vrot.lane.b32.xlu1 %v7094_v43, %s7450_s13  ;;  %v5143_v25 = vunpack.c.h.bf16 %v6270_v29  ;;  %v6274_v29 = vld [vmem:[%s7553_s17 + $0xe8] sm:$0xff] }
 0x184   : > { %v8934_v59 = vadd.f32 %v6673_v5, %v1671_v40  ;;  %v3871_v15 = vpop.permute.xlu0 %3870  ;;  %v6642_v1 = vpop.f32.mrf.mxu1  ;;  %6845 = vmatmul.mubr.msk.bf16.gmra.mxu1 %vm407_vm0, %v3591_v16  ;;  %7100 = vrot.lane.b32.xlu0 %v7099_v7, %s7450_s13 }
 0x185   : > { %v1886_v60 = vpop.f32.mrf.mxu0  ;;  %v1674_v18 = vadd.f32 %v6642_v1, %v8707_v27  ;;  %6878 = vmatprep.mubr.msk.bf16.mxu0 %vm407_vm0, %v3871_v15  ;;  %v7104_v6 = vpack.i.bf16 %v5143_v25, %v5142_v55  ;;  %v5150_v55 = vunpack.c.l.bf16 %v6274_v29  ;;  %v5152_v25 = vunpack.c.l.bf16 %v6275_v62  ;;  %v6279_v62 = vld [vmem:[%s7553_s17 + $0x110] sm:$0xff] }
 0x186   : > { %v8942_v56 = vadd.f32 %v1886_v60, %v1669_v4  ;;  %v3873_v8 = vpop.permute.xlu1 %3872  ;;  %v1617_v50 = vpop.f32.mrf.mxu1 }
 0x187   : > { %v6676_v47 = vpop.f32.mrf.mxu0  ;;  %6879 = vmatmul.mubr.msk.bf16.gmra.mxu0 %vm407_vm0, %v3873_v8  ;;  %v1672_v27 = vadd.f32 %v1617_v50, %v8717_v33  ;;  %7105 = vrot.lane.b32.xlu1 %v7104_v6, %s7450_s13  ;;  %v5148_v33 = vunpack.c.l.bf16 %v6273_v19  ;;  %v6277_v19 = vld [vmem:[%s7553_s17 + $0x100] sm:$0xff] }
 0x188   : > { %v8947_v45 = vadd.f32 %v6676_v47, %v1674_v18  ;;  %v3593_v35 = vpop.permute.xlu0 %3592  ;;  %v6643_v10 = vpop.f32.mrf.mxu1  ;;  %7110 = vrot.lane.b32.xlu0 %v7109_v38, %s7450_s13  ;;  %v7129_v38 = vpack.i.bf16 %v5153_v41, %v5152_v25  ;;  %v5161_v41 = vunpack.c.h.bf16 %v6279_v62 }
 0x189   : > { %v1899_v63 = vpop.f32.mrf.mxu0  ;;  %v1675_v40 = vadd.f32 %v6643_v10, %v8722_v26  ;;  %6848 = vmatprep.mubr.msk.bf16.mxu1 %vm407_vm0, %v3593_v35  ;;  %v7114_v26 = vpack.i.bf16 %v5147_v53, %v5146_v30  ;;  %v7119_v7 = vpack.i.bf16 %v5149_v0, %v5148_v33  ;;  %v5154_v30 = vunpack.c.l.bf16 %v6276_v48 }
 0x18a   : > { %v8954_v42 = vadd.f32 %v1899_v63, %v1672_v27  ;;  %v3595_v16 = vpop.permute.xlu1 %3594  ;;  %v1620_v46 = vpop.f32.mrf.mxu1  ;;  %v5155_v53 = vunpack.c.h.bf16 %v6276_v48  ;;  %v5157_v0 = vunpack.c.h.bf16 %v6277_v19  ;;  %v6280_v48 = vld [vmem:[%s7553_s17 + $0x118] sm:$0xff] }
 0x18b   : > { %v6677_v5 = vpop.f32.mrf.mxu0  ;;  %v1673_v4 = vadd.f32 %v1620_v46, %v8727_v61  ;;  %7115 = vrot.lane.b32.xlu1 %v7114_v26, %s7450_s13  ;;  %v5151_v61 = vunpack.c.h.bf16 %v6274_v29  ;;  %v6278_v29 = vld [vmem:[%s7553_s17 + $0x108] sm:$0xff] }
 0x18c   : > { %v8958_v43 = vadd.f32 %v6677_v5, %v1675_v40  ;;  %v3875_v15 = vpop.permute.xlu0 %3874  ;;  %v6646_v1 = vpop.f32.mrf.mxu1  ;;  %6849 = vmatmul.mubr.msk.bf16.gmra.mxu1 %vm407_vm0, %v3595_v16  ;;  %7120 = vrot.lane.b32.xlu0 %v7119_v7, %s7450_s13 }
 0x18d   : > { %v1902_v60 = vpop.f32.mrf.mxu0  ;;  %v1678_v18 = vadd.f32 %v6646_v1, %v8735_v34  ;;  %6882 = vmatprep.mubr.msk.bf16.mxu0 %vm407_vm0, %v3875_v15  ;;  %v7124_v27 = vpack.i.bf16 %v5151_v61, %v5150_v55  ;;  %v5158_v55 = vunpack.c.l.bf16 %v6278_v29  ;;  %v5160_v61 = vunpack.c.l.bf16 %v6279_v62  ;;  %v6283_v62 = vld [vmem:[%s7553_s17 + $0x130] sm:$0xff] }
 0x18e   : > { %v8966_v31 = vadd.f32 %v1902_v60, %v1673_v4  ;;  %v3877_v8 = vpop.permute.xlu1 %3876  ;;  %v1633_v50 = vpop.f32.mrf.mxu1 }
 0x18f   : > { %v6680_v47 = vpop.f32.mrf.mxu0  ;;  %6883 = vmatmul.mubr.msk.bf16.gmra.mxu0 %vm407_vm0, %v3877_v8  ;;  %v1676_v34 = vadd.f32 %v1633_v50, %v8745_v14  ;;  %7125 = vrot.lane.b32.xlu1 %v7124_v27, %s7450_s13  ;;  %v5156_v14 = vunpack.c.l.bf16 %v6277_v19  ;;  %v6281_v19 = vld [vmem:[%s7553_s17 + $0x120] sm:$0xff] }
 0x190   : > { %v8971_v6 = vadd.f32 %v6680_v47, %v1678_v18  ;;  %v4247_v35 = vpop.permute.xlu0 %4246  ;;  %v6647_v10 = vpop.f32.mrf.mxu1  ;;  %7130 = vrot.lane.b32.xlu0 %v7129_v38, %s7450_s13  ;;  %v7149_v38 = vpack.i.bf16 %v5161_v41, %v5160_v61  ;;  %v5169_v41 = vunpack.c.h.bf16 %v6283_v62 }
 0x191   : > { %v1915_v63 = vpop.f32.mrf.mxu0  ;;  %v1679_v40 = vadd.f32 %v6647_v10, %v8750_v23  ;;  %6888 = vmatprep.mubr.msk.bf16.mxu1 %vm407_vm0, %v4247_v35  ;;  %v7134_v23 = vpack.i.bf16 %v5155_v53, %v5154_v30  ;;  %v7139_v7 = vpack.i.bf16 %v5157_v0, %v5156_v14  ;;  %v5162_v30 = vunpack.c.l.bf16 %v6280_v48 }
 0x192   : > { %v8978_v33 = vadd.f32 %v1915_v63, %v1676_v34  ;;  %v4249_v16 = vpop.permute.xlu1 %4248  ;;  %v1636_v46 = vpop.f32.mrf.mxu1  ;;  %v5163_v53 = vunpack.c.h.bf16 %v6280_v48  ;;  %v5165_v0 = vunpack.c.h.bf16 %v6281_v19  ;;  %v6284_v48 = vld [vmem:[%s7553_s17 + $0x138] sm:$0xff] }
 0x193   : > { %v6681_v5 = vpop.f32.mrf.mxu0  ;;  %v1677_v4 = vadd.f32 %v1636_v46, %v8754_v58  ;;  %7135 = vrot.lane.b32.xlu1 %v7134_v23, %s7450_s13  ;;  %v5159_v58 = vunpack.c.h.bf16 %v6278_v29  ;;  %v6282_v29 = vld [vmem:[%s7553_s17 + $0x128] sm:$0xff] }
 0x194   : > { %v8982_v26 = vadd.f32 %v6681_v5, %v1679_v40  ;;  %v4720_v15 = vpop.permute.xlu0 %4719  ;;  %v6686_v1 = vpop.f32.mrf.mxu1  ;;  %6889 = vmatmul.mubr.msk.bf16.vlgmr.msra.gmra.mxu1 %vm407_vm0, %v4249_v16  ;;  %7140 = vrot.lane.b32.xlu0 %v7139_v7, %s7450_s13 }
 0x195   : > { %v1918_v60 = vpop.f32.mrf.mxu0  ;;  %v2332_v18 = vadd.f32 %v6686_v1, %v8805_v3  ;;  %6922 = vmatprep.mubr.msk.bf16.mxu0 %vm407_vm0, %v4720_v15  ;;  %v7144_v34 = vpack.i.bf16 %v5159_v58, %v5158_v55  ;;  %v5166_v55 = vunpack.c.l.bf16 %v6282_v29  ;;  %v5168_v58 = vunpack.c.l.bf16 %v6283_v62 }
 0x196   : > { %v8990_v25 = vadd.f32 %v1918_v60, %v1677_v4  ;;  %v4722_v8 = vpop.permute.xlu1 %4721  ;;  %v2203_v50 = vpop.f32.mrf.mxu1 }
 0x197   : > { %v6720_v47 = vpop.f32.mrf.mxu0  ;;  %6923 = vmatmul.mubr.msk.bf16.vlgmr.msra.gmra.mxu0 %vm407_vm0, %v4722_v8  ;;  %v2330_v3 = vadd.f32 %v2203_v50, %v8815_v51  ;;  %7145 = vrot.lane.b32.xlu1 %v7144_v34, %s7450_s13  ;;  %v5164_v51 = vunpack.c.l.bf16 %v6281_v19 }
 0x198   : > { %v8995_v27 = vadd.f32 %v6720_v47, %v2332_v18  ;;  %v4251_v35 = vpop.permute.xlu0 %4250  ;;  %v6687_v10 = vpop.f32.mrf.mxu1  ;;  %7150 = vrot.lane.b32.xlu0 %v7149_v38, %s7450_s13  ;;  %v7169_v38 = vpack.i.bf16 %v5169_v41, %v5168_v58 }
 0x199   : > { %v2603_v63 = vpop.f32.mrf.mxu0  ;;  %v2333_v40 = vadd.f32 %v6687_v10, %v8818_v39  ;;  %6892 = vmatprep.mubr.msk.bf16.mxu1 %vm407_vm0, %v4251_v35  ;;  %v7154_v39 = vpack.i.bf16 %v5163_v53, %v5162_v30  ;;  %v7159_v7 = vpack.i.bf16 %v5165_v0, %v5164_v51  ;;  %v5171_v30 = vunpack.c.h.bf16 %v6284_v48 }
 0x19a   : > { %v9002_v14 = vadd.f32 %v2603_v63, %v2330_v3  ;;  %v4253_v16 = vpop.permute.xlu1 %4252  ;;  %v2206_v46 = vpop.f32.mrf.mxu1 }
 0x19b   : > { %v6721_v5 = vpop.f32.mrf.mxu0  ;;  %v2331_v4 = vadd.f32 %v2206_v46, %v8827_v52  ;;  %7155 = vrot.lane.b32.xlu1 %v7154_v39, %s7450_s13  ;;  %v5167_v52 = vunpack.c.h.bf16 %v6282_v29 }
 0x19c   : > { %v9006_v23 = vadd.f32 %v6721_v5, %v2333_v40  ;;  %v4724_v15 = vpop.permute.xlu0 %4723  ;;  %v6690_v1 = vpop.f32.mrf.mxu1  ;;  %6893 = vmatmul.mubr.msk.bf16.gmra.mxu1 %vm407_vm0, %v4253_v16  ;;  %7160 = vrot.lane.b32.xlu0 %v7159_v7, %s7450_s13  ;;  %v5170_v40 = vunpack.c.l.bf16 %v6284_v48 }
 0x19d   : > { %v2606_v60 = vpop.f32.mrf.mxu0  ;;  %v2336_v18 = vadd.f32 %v6690_v1, %v8831_v44  ;;  %6926 = vmatprep.mubr.msk.bf16.mxu0 %vm407_vm0, %v4724_v15  ;;  %v7164_v3 = vpack.i.bf16 %v5167_v52, %v5166_v55 }
 0x19e   : > { %v9014_v61 = vadd.f32 %v2606_v60, %v2331_v4  ;;  %v4726_v8 = vpop.permute.xlu1 %4725  ;;  %v2219_v50 = vpop.f32.mrf.mxu1  ;;  %v7174_v0 = vpack.i.bf16 %v5171_v30, %v5170_v40 }
 0x19f   : > { %v6724_v47 = vpop.f32.mrf.mxu0  ;;  %6927 = vmatmul.mubr.msk.bf16.gmra.mxu0 %vm407_vm0, %v4726_v8  ;;  %v2334_v44 = vadd.f32 %v2219_v50, %v8836_v32  ;;  %7165 = vrot.lane.b32.xlu1 %v7164_v3, %s7450_s13 }
 0x1a0   : > { %v9019_v34 = vadd.f32 %v6724_v47, %v2336_v18  ;;  %v4255_v35 = vpop.permute.xlu0 %4254  ;;  %v6691_v10 = vpop.f32.mrf.mxu1  ;;  %7170 = vrot.lane.b32.xlu0 %v7169_v38, %s7450_s13 }
 0x1a1   : > { %v2619_v19 = vpop.f32.mrf.mxu0  ;;  %v2337_v63 = vadd.f32 %v6691_v10, %v8839_v49  ;;  %6896 = vmatprep.mubr.msk.bf16.mxu1 %vm407_vm0, %v4255_v35 }
 0x1a2   : > { %v9025_v53 = vadd.f32 %v2619_v19, %v2334_v44  ;;  %v4257_v51 = vpop.permute.xlu1 %4256  ;;  %v2222_v32 = vpop.f32.mrf.mxu1 }
 0x1a3   : > { %v6725_v16 = vpop.f32.mrf.mxu0  ;;  %v2335_v46 = vadd.f32 %v2222_v32, %v8847_v24  ;;  %7175 = vrot.lane.b32.xlu1 %v7174_v0, %s7450_s13  ;;  %s7372_s13 = sshll.u32 %s7451_s12, 4  ;;  %s7373_s13 = int_to_ptr.vmem [resolvable:$false] %s7372_s13 }
 0x1a4   : > { %v9029_v5 = vadd.f32 %v6725_v16, %v2337_v63  ;;  %v4728_v4 = vpop.permute.xlu0 %4727  ;;  %v6694_v49 = vpop.f32.mrf.mxu1  ;;  %6897 = vmatmul.mubr.msk.bf16.gmra.mxu1 %vm407_vm0, %v4257_v51  ;;  %s7374_s17 = scalar_lea.vmem %s7373_s13, 8192  ;;  %p7375_p1 = scmp.lt.s32.totalorder %s9817_s7, %s7373_s13 }
 0x1a5   : > { %v2622_v39 = vpop.f32.mrf.mxu0  ;;  %v2340_v15 = vadd.f32 %v6694_v49, %v8851_v22  ;;  %6930 = vmatprep.mubr.msk.bf16.mxu0 %vm407_vm0, %v4728_v4  ;;  %p7376_p2 = scmp.lt.s32.totalorder %s7374_s17, %s7368_s11 }
 0x1a6   : > { %v9035_v1 = vadd.f32 %v2622_v39, %v2335_v46  ;;  %v4730_v7 = vpop.permute.xlu1 %4729  ;;  %v2235_v29 = vpop.f32.mrf.mxu1 }
 0x1a7   : > { %v6728_v62 = vpop.f32.mrf.mxu0  ;;  %6931 = vmatmul.mubr.msk.bf16.gmra.mxu0 %vm407_vm0, %v4730_v7  ;;  %v2338_v24 = vadd.f32 %v2235_v29, %v8858_v9  ;;  %p7377_p3 = por %p7376_p2, %p7375_p1 }
 0x1a8   : > { %v9039_v60 = vadd.f32 %v6728_v62, %v2340_v15  ;;  %v4259_v18 = vpop.permute.xlu0 %4258  ;;  %v6695_v55 = vpop.f32.mrf.mxu1 }
 0x1a9   : > { %v2635_v52 = vpop.f32.mrf.mxu0  ;;  %v2341_v22 = vadd.f32 %v6695_v55, %v8862_v11  ;;  %6900 = vmatprep.mubr.msk.bf16.mxu1 %vm407_vm0, %v4259_v18  ;;  %p7378_p5 = pnand %p7377_p3, %p7371_p0 }
 0x1aa   : > { %v9043_v58 = vadd.f32 %v2635_v52, %v2338_v24  ;;  %v4261_v8 = vpop.permute.xlu1 %4260  ;;  %v2238_v50 = vpop.f32.mrf.mxu1 }
 0x1ab   : > { %v6729_v41 = vpop.f32.mrf.mxu0  ;;  %v2339_v47 = vadd.f32 %v2238_v50, %v8870_v17 }
 0x1ac   : > { %v9046_v44 = vadd.f32 %v6729_v41, %v2341_v22  ;;  %v4732_v3 = vpop.permute.xlu0 %4731  ;;  %v6698_v9 = vpop.f32.mrf.mxu1  ;;  %6901 = vmatmul.mubr.msk.bf16.gmra.mxu1 %vm407_vm0, %v4261_v8 }
 0x1ad   : > { %v2638_v35 = vpop.f32.mrf.mxu0  ;;  %v2344_v10 = vadd.f32 %v6698_v9, %v8875_v28  ;;  %6934 = vmatprep.mubr.msk.bf16.mxu0 %vm407_vm0, %v4732_v3 }
 0x1ae   : > { %v9051_v11 = vadd.f32 %v2638_v35, %v2339_v47  ;;  %v4734_v38 = vpop.permute.xlu1 %4733  ;;  %v2251_v48 = vpop.f32.mrf.mxu1 }
 0x1af   : > { %v6732_v19 = vpop.f32.mrf.mxu0  ;;  %6935 = vmatmul.mubr.msk.bf16.gmra.mxu0 %vm407_vm0, %v4734_v38  ;;  %v2342_v17 = vadd.f32 %v2251_v48, %v8882_v12 }
 0x1b0   : > { %v9055_v63 = vadd.f32 %v6732_v19, %v2344_v10  ;;  %v4263_v40 = vpop.permute.xlu0 %4262  ;;  %v6699_v30 = vpop.f32.mrf.mxu1 }
 0x1b1   : > { %v2651_v51 = vpop.f32.mrf.mxu0  ;;  %v2345_v32 = vadd.f32 %v6699_v30, %v8886_v20  ;;  %6904 = vmatprep.mubr.msk.bf16.mxu1 %vm407_vm0, %v4263_v40 }
 0x1b2   : > { %v9059_v28 = vadd.f32 %v2651_v51, %v2342_v17  ;;  %v4265_v16 = vpop.permute.xlu1 %4264  ;;  %v2254_v46 = vpop.f32.mrf.mxu1 }
 0x1b3   : > { %v6733_v0 = vpop.f32.mrf.mxu0  ;;  %v2343_v4 = vadd.f32 %v2254_v46, %v8894_v36 }
 0x1b4   : > { %v9062_v49 = vadd.f32 %v6733_v0, %v2345_v32  ;;  %v4736_v39 = vpop.permute.xlu0 %4735  ;;  %v6702_v12 = vpop.f32.mrf.mxu1  ;;  %6905 = vmatmul.mubr.msk.bf16.gmra.mxu1 %vm407_vm0, %v4265_v16 }
 0x1b5   : > { %v2654_v15 = vpop.f32.mrf.mxu0  ;;  %v2348_v7 = vadd.f32 %v6702_v12, %v8899_v37  ;;  %6938 = vmatprep.mubr.msk.bf16.mxu0 %vm407_vm0, %v4736_v39 }
 0x1b6   : > { %v9067_v20 = vadd.f32 %v2654_v15, %v2343_v4  ;;  %v4738_v29 = vpop.permute.xlu1 %4737  ;;  %v2267_v62 = vpop.f32.mrf.mxu1 }
 0x1b7   : > { %v6736_v24 = vpop.f32.mrf.mxu0  ;;  %6939 = vmatmul.mubr.msk.bf16.gmra.mxu0 %vm407_vm0, %v4738_v29  ;;  %v2346_v36 = vadd.f32 %v2267_v62, %v8906_v57 }
 0x1b8   : > { %v9071_v18 = vadd.f32 %v6736_v24, %v2348_v7  ;;  %v4267_v55 = vpop.permute.xlu0 %4266  ;;  %v6703_v52 = vpop.f32.mrf.mxu1 }
 0x1b9   : > { %v2667_v22 = vpop.f32.mrf.mxu0  ;;  %v2349_v8 = vadd.f32 %v6703_v52, %v8910_v2  ;;  %6908 = vmatprep.mubr.msk.bf16.mxu1 %vm407_vm0, %v4267_v55 }
 0x1ba   : > { %v9075_v37 = vadd.f32 %v2667_v22, %v2346_v36  ;;  %v4269_v50 = vpop.permute.xlu1 %4268  ;;  %v2270_v41 = vpop.f32.mrf.mxu1 }
 0x1bb   : > { %v6737_v47 = vpop.f32.mrf.mxu0  ;;  %v2347_v3 = vadd.f32 %v2270_v41, %v8918_v54 }
 0x1bc   : > { %v9078_v9 = vadd.f32 %v6737_v47, %v2349_v8  ;;  %v4740_v35 = vpop.permute.xlu0 %4739  ;;  %v6706_v57 = vpop.f32.mrf.mxu1  ;;  %6909 = vmatmul.mubr.msk.bf16.gmra.mxu1 %vm407_vm0, %v4269_v50 }
 0x1bd   : > { %v2670_v10 = vpop.f32.mrf.mxu0  ;;  %v2352_v38 = vadd.f32 %v6706_v57, %v8923_v21  ;;  %6942 = vmatprep.mubr.msk.bf16.mxu0 %vm407_vm0, %v4740_v35 }
 0x1be   : > { %v9083_v2 = vadd.f32 %v2670_v10, %v2347_v3  ;;  %v4742_v48 = vpop.permute.xlu1 %4741  ;;  %v2283_v19 = vpop.f32.mrf.mxu1 }
 0x1bf   : > { %v6740_v17 = vpop.f32.mrf.mxu0  ;;  %6943 = vmatmul.mubr.msk.bf16.gmra.mxu0 %vm407_vm0, %v4742_v48  ;;  %v2350_v54 = vadd.f32 %v2283_v19, %v8930_v13 }
 0x1c0   : > { %v9087_v40 = vadd.f32 %v6740_v17, %v2352_v38  ;;  %v4271_v30 = vpop.permute.xlu0 %4270  ;;  %v6707_v51 = vpop.f32.mrf.mxu1 }
 0x1c1   : > { %v2683_v32 = vpop.f32.mrf.mxu0  ;;  %v2353_v16 = vadd.f32 %v6707_v51, %v8934_v59  ;;  %6912 = vmatprep.mubr.msk.bf16.mxu1 %vm407_vm0, %v4271_v30 }
 0x1c2   : > { %v9091_v21 = vadd.f32 %v2683_v32, %v2350_v54  ;;  %v4273_v46 = vpop.permute.xlu1 %4272  ;;  %v2286_v0 = vpop.f32.mrf.mxu1 }
 0x1c3   : > { %v6741_v4 = vpop.f32.mrf.mxu0  ;;  %v2351_v39 = vadd.f32 %v2286_v0, %v8942_v56 }
 0x1c4   : > { %v9094_v12 = vadd.f32 %v6741_v4, %v2353_v16  ;;  %v4744_v15 = vpop.permute.xlu0 %4743  ;;  %v6710_v13 = vpop.f32.mrf.mxu1  ;;  %6913 = vmatmul.mubr.msk.bf16.gmra.mxu1 %vm407_vm0, %v4273_v46 }
 0x1c5   : > { %v2686_v7 = vpop.f32.mrf.mxu0  ;;  %v2356_v29 = vadd.f32 %v6710_v13, %v8947_v45  ;;  %6946 = vmatprep.mubr.msk.bf16.mxu0 %vm407_vm0, %v4744_v15 }
 0x1c6   : > { %v9099_v59 = vadd.f32 %v2686_v7, %v2351_v39  ;;  %v4746_v62 = vpop.permute.xlu1 %4745  ;;  %v2299_v24 = vpop.f32.mrf.mxu1 }
 0x1c7   : > { %v6744_v36 = vpop.f32.mrf.mxu0  ;;  %6947 = vmatmul.mubr.msk.bf16.gmra.mxu0 %vm407_vm0, %v4746_v62  ;;  %v2354_v56 = vadd.f32 %v2299_v24, %v8954_v42 }
 0x1c8   : > { %v9103_v55 = vadd.f32 %v6744_v36, %v2356_v29  ;;  %v4275_v52 = vpop.permute.xlu0 %4274  ;;  %v6711_v22 = vpop.f32.mrf.mxu1 }
 0x1c9   : > { %v2699_v8 = vpop.f32.mrf.mxu0  ;;  %v2357_v50 = vadd.f32 %v6711_v22, %v8958_v43  ;;  %6916 = vmatprep.mubr.msk.bf16.mxu1 %vm407_vm0, %v4275_v52 }
 0x1ca   : > { %v9107_v45 = vadd.f32 %v2699_v8, %v2354_v56  ;;  %v4277_v41 = vpop.permute.xlu1 %4276  ;;  %v2302_v47 = vpop.f32.mrf.mxu1 }
 0x1cb   : > { %v6745_v3 = vpop.f32.mrf.mxu0  ;;  %v2355_v35 = vadd.f32 %v2302_v47, %v8966_v31 }
 0x1cc   : > { %v9110_v57 = vadd.f32 %v6745_v3, %v2357_v50  ;;  %v4748_v10 = vpop.permute.xlu0 %4747  ;;  %v6714_v42 = vpop.f32.mrf.mxu1  ;;  %6917 = vmatmul.mubr.msk.bf16.gmra.mxu1 %vm407_vm0, %v4277_v41 }
 0x1cd   : > { %v2702_v38 = vpop.f32.mrf.mxu0  ;;  %v2360_v48 = vadd.f32 %v6714_v42, %v8971_v6  ;;  %6950 = vmatprep.mubr.msk.bf16.mxu0 %vm407_vm0, %v4748_v10 }
 0x1ce   : > { %v9115_v43 = vadd.f32 %v2702_v38, %v2355_v35  ;;  %v4750_v19 = vpop.permute.xlu1 %4749  ;;  %v2315_v17 = vpop.f32.mrf.mxu1 }
 0x1cf   : > { %v6748_v54 = vpop.f32.mrf.mxu0  ;;  %6951 = vmatmul.mubr.msk.bf16.gmra.mxu0 %vm407_vm0, %v4750_v19  ;;  %v2358_v31 = vadd.f32 %v2315_v17, %v8978_v33 }
 0x1d0   : > { %v9119_v30 = vadd.f32 %v6748_v54, %v2360_v48  ;;  %v6715_v51 = vpop.f32.mrf.mxu1 }
 0x1d1   : > { %v2715_v32 = vpop.f32.mrf.mxu0  ;;  %v2361_v16 = vadd.f32 %v6715_v51, %v8982_v26 }
 0x1d2   : > { %v9122_v46 = vadd.f32 %v2715_v32, %v2358_v31  ;;  %v2318_v6 = vpop.f32.mrf.mxu1 }
 0x1d3   : > { %v6749_v0 = vpop.f32.mrf.mxu0  ;;  %v2359_v4 = vadd.f32 %v2318_v6, %v8990_v25 }
 0x1d4   : > { %v9125_v39 = vadd.f32 %v6749_v0, %v2361_v16  ;;  %v6754_v15 = vpop.f32.mrf.mxu1 }
 0x1d5   : > { %v2718_v13 = vpop.f32.mrf.mxu0  ;;  %v3014_v7 = vadd.f32 %v6754_v15, %v8995_v27 }
 0x1d6   : > { %v9128_v29 = vadd.f32 %v2718_v13, %v2359_v4  ;;  %v2885_v33 = vpop.f32.mrf.mxu1 }
 0x1d7   : > { %v6788_v62 = vpop.f32.mrf.mxu0  ;;  %v3012_v24 = vadd.f32 %v2885_v33, %v9002_v14 }
 0x1d8   : > { %v9131_v36 = vadd.f32 %v6788_v62, %v3014_v7  ;;  %v6755_v26 = vpop.f32.mrf.mxu1 }
 0x1d9   : > { %v3285_v56 = vpop.f32.mrf.mxu0  ;;  %v3015_v52 = vadd.f32 %v6755_v26, %v9006_v23 }
 0x1da   : > { %v9134_v22 = vadd.f32 %v3285_v56, %v3012_v24  ;;  %v2888_v25 = vpop.f32.mrf.mxu1 }
 0x1db   : > { %v6789_v8 = vpop.f32.mrf.mxu0  ;;  %v3013_v50 = vadd.f32 %v2888_v25, %v9014_v61 }
 0x1dc   : > { %v9137_v41 = vadd.f32 %v6789_v8, %v3015_v52  ;;  %v6758_v27 = vpop.f32.mrf.mxu1 }
 0x1dd   : > { %v3288_v47 = vpop.f32.mrf.mxu0  ;;  %v3018_v3 = vadd.f32 %v6758_v27, %v9019_v34 }
 0x1de   : > { %v9140_v35 = vadd.f32 %v3288_v47, %v3013_v50  ;;  %v2901_v14 = vpop.f32.mrf.mxu1 }
 0x1df   : > { %v6792_v10 = vpop.f32.mrf.mxu0  ;;  %v3016_v42 = vadd.f32 %v2901_v14, %v9025_v53 }
 0x1e0   : > { %v9143_v38 = vadd.f32 %v6792_v10, %v3018_v3  ;;  %v6759_v23 = vpop.f32.mrf.mxu1 }
 0x1e1   : > { %v3301_v48 = vpop.f32.mrf.mxu0  ;;  %v3019_v19 = vadd.f32 %v6759_v23, %v9029_v5 }
 0x1e2   : > { %v9146_v17 = vadd.f32 %v3301_v48, %v3016_v42  ;;  %v2904_v61 = vpop.f32.mrf.mxu1 }
 0x1e3   : > { %v6793_v54 = vpop.f32.mrf.mxu0  ;;  %v3017_v31 = vadd.f32 %v2904_v61, %v9035_v1 }
 0x1e4   : > { %v9149_v51 = vadd.f32 %v6793_v54, %v3019_v19  ;;  %v6762_v34 = vpop.f32.mrf.mxu1 }
 0x1e5   : > { %v3304_v32 = vpop.f32.mrf.mxu0  ;;  %v3022_v16 = vadd.f32 %v6762_v34, %v9039_v60 }
 0x1e6   : > { %v9152_v6 = vadd.f32 %v3304_v32, %v3017_v31  ;;  %v2917_v53 = vpop.f32.mrf.mxu1 }
 0x1e7   : > { %v6796_v0 = vpop.f32.mrf.mxu0  ;;  %v3020_v4 = vadd.f32 %v2917_v53, %v9043_v58 }
 0x1e8   : > { %v9155_v15 = vadd.f32 %v6796_v0, %v3022_v16  ;;  %v6763_v5 = vpop.f32.mrf.mxu1 }
 0x1e9   : > { %v3317_v13 = vpop.f32.mrf.mxu0  ;;  %v3023_v7 = vadd.f32 %v6763_v5, %v9046_v44 }
 0x1ea   : > { %v9158_v33 = vadd.f32 %v3317_v13, %v3020_v4  ;;  %v2920_v1 = vpop.f32.mrf.mxu1 }
 0x1eb   : > { %v6797_v62 = vpop.f32.mrf.mxu0  ;;  %v3021_v24 = vadd.f32 %v2920_v1, %v9051_v11 }
 0x1ec   : > { %v9161_v26 = vadd.f32 %v6797_v62, %v3023_v7  ;;  %v6766_v60 = vpop.f32.mrf.mxu1 }
 0x1ed   : > { %v3320_v56 = vpop.f32.mrf.mxu0  ;;  %v3026_v52 = vadd.f32 %v6766_v60, %v9055_v63 }
 0x1ee   : > { %10067 = vst [vmem:[#allocation29_spill] sm:$0xff] %v9161_v26  ;;  %v9164_v25 = vadd.f32 %v3320_v56, %v3021_v24  ;;  %v2933_v58 = vpop.f32.mrf.mxu1 }
 0x1ef   : > { %v6800_v8 = vpop.f32.mrf.mxu0  ;;  %v3024_v50 = vadd.f32 %v2933_v58, %v9059_v28 }
 0x1f0   : > { %10068 = vst [vmem:[#allocation10_spill] sm:$0xff] %v9164_v25  ;;  %v9167_v27 = vadd.f32 %v6800_v8, %v3026_v52  ;;  %v6767_v44 = vpop.f32.mrf.mxu1 }
 0x1f1   : > { %v3333_v47 = vpop.f32.mrf.mxu0  ;;  %v3027_v3 = vadd.f32 %v6767_v44, %v9062_v49 }
 0x1f2   : > { %10069 = vst [vmem:[#allocation11_spill] sm:$0xff] %v9167_v27  ;;  %v9170_v14 = vadd.f32 %v3333_v47, %v3024_v50  ;;  %v2936_v11 = vpop.f32.mrf.mxu1 }
 0x1f3   : > { %v6801_v10 = vpop.f32.mrf.mxu0  ;;  %v3025_v42 = vadd.f32 %v2936_v11, %v9067_v20 }
 0x1f4   : > { %10070 = vst [vmem:[#allocation30_spill] sm:$0xff] %v9170_v14  ;;  %v9173_v23 = vadd.f32 %v6801_v10, %v3027_v3  ;;  %v6770_v63 = vpop.f32.mrf.mxu1 }
 0x1f5   : > { %v3336_v48 = vpop.f32.mrf.mxu0  ;;  %v3030_v19 = vadd.f32 %v6770_v63, %v9071_v18 }
 0x1f6   : > { %10071 = vst [vmem:[#allocation31_spill] sm:$0xff] %v9173_v23  ;;  %v9176_v61 = vadd.f32 %v3336_v48, %v3025_v42  ;;  %v2949_v28 = vpop.f32.mrf.mxu1 }
 0x1f7   : > { %v6804_v54 = vpop.f32.mrf.mxu0  ;;  %v3028_v31 = vadd.f32 %v2949_v28, %v9075_v37 }
 0x1f8   : > { %10072 = vst [vmem:[#allocation34_spill] sm:$0xff] %v9176_v61  ;;  %v9179_v34 = vadd.f32 %v6804_v54, %v3030_v19  ;;  %v6771_v49 = vpop.f32.mrf.mxu1 }
 0x1f9   : > { %v3349_v32 = vpop.f32.mrf.mxu0  ;;  %v3031_v16 = vadd.f32 %v6771_v49, %v9078_v9 }
 0x1fa   : > { %10073 = vst [vmem:[#allocation35_spill] sm:$0xff] %v9179_v34  ;;  %v9182_v53 = vadd.f32 %v3349_v32, %v3028_v31  ;;  %v2952_v20 = vpop.f32.mrf.mxu1 }
 0x1fb   : > { %v6805_v0 = vpop.f32.mrf.mxu0  ;;  %v3029_v4 = vadd.f32 %v2952_v20, %v9083_v2 }
 0x1fc   : > { %10074 = vst [vmem:[#allocation32_spill] sm:$0xff] %v9182_v53  ;;  %v9185_v5 = vadd.f32 %v6805_v0, %v3031_v16  ;;  %v6774_v18 = vpop.f32.mrf.mxu1 }
 0x1fd   : > { %v3352_v13 = vpop.f32.mrf.mxu0  ;;  %v3034_v7 = vadd.f32 %v6774_v18, %v9087_v40 }
 0x1fe   : > { %10075 = vst [vmem:[#allocation33_spill] sm:$0xff] %v9185_v5  ;;  %v9188_v1 = vadd.f32 %v3352_v13, %v3029_v4  ;;  %v2965_v37 = vpop.f32.mrf.mxu1 }
 0x1ff   : > { %v6808_v62 = vpop.f32.mrf.mxu0  ;;  %v3032_v24 = vadd.f32 %v2965_v37, %v9091_v21 }
 0x200   : > { %10076 = vst [vmem:[#allocation36_spill] sm:$0xff] %v9188_v1  ;;  %v9191_v60 = vadd.f32 %v6808_v62, %v3034_v7  ;;  %v6775_v9 = vpop.f32.mrf.mxu1 }
 0x201   : > { %v3365_v56 = vpop.f32.mrf.mxu0  ;;  %v3035_v52 = vadd.f32 %v6775_v9, %v9094_v12 }
 0x202   : > { %10077 = vst [vmem:[#allocation37_spill] sm:$0xff] %v9191_v60  ;;  %v9194_v58 = vadd.f32 %v3365_v56, %v3032_v24  ;;  %v2968_v2 = vpop.f32.mrf.mxu1 }
 0x203   : > { %v6809_v8 = vpop.f32.mrf.mxu0  ;;  %v3033_v50 = vadd.f32 %v2968_v2, %v9099_v59 }
 0x204   : > { %10078 = vst [vmem:[#allocation38_spill] sm:$0xff] %v9194_v58  ;;  %v9197_v44 = vadd.f32 %v6809_v8, %v3035_v52  ;;  %v6778_v40 = vpop.f32.mrf.mxu1 }
 0x205   : > { %v3368_v47 = vpop.f32.mrf.mxu0  ;;  %v3038_v3 = vadd.f32 %v6778_v40, %v9103_v55  ;;  %v9237_v40 = vpop.permute.xlu0 %7020 }
 0x206   : > { %10079 = vst [vmem:[#allocation12_spill] sm:$0xff] %v9197_v44  ;;  %v9200_v11 = vadd.f32 %v3368_v47, %v3033_v50  ;;  %v2981_v21 = vpop.f32.mrf.mxu1 }
 0x207   : > { %v6812_v10 = vpop.f32.mrf.mxu0  ;;  %v3036_v42 = vadd.f32 %v2981_v21, %v9107_v45 }
 0x208   : > { %10080 = vst [vmem:[#allocation13_spill] sm:$0xff] %v9200_v11  ;;  %v9203_v63 = vadd.f32 %v6812_v10, %v3038_v3  ;;  %v6779_v12 = vpop.f32.mrf.mxu1 }
 0x209   : > { %v3381_v48 = vpop.f32.mrf.mxu0  ;;  %v3039_v19 = vadd.f32 %v6779_v12, %v9110_v57 }
 0x20a   : > { %10081 = vst [vmem:[#allocation6_spill] sm:$0xff] %v9203_v63  ;;  %v9206_v28 = vadd.f32 %v3381_v48, %v3036_v42  ;;  %v2984_v59 = vpop.f32.mrf.mxu1  ;;  %v9249_v42 = vpop.permute.xlu1 %7025 }
 0x20b   : > { %v6813_v54 = vpop.f32.mrf.mxu0  ;;  %v3037_v31 = vadd.f32 %v2984_v59, %v9115_v43  ;;  %v9253_v48 = vpop.permute.xlu0 %7030 }
 0x20c   : > { %10082 = vst [vmem:[#allocation39_spill] sm:$0xff] %v9206_v28  ;;  %v9209_v49 = vadd.f32 %v6813_v54, %v3039_v19  ;;  %v6782_v55 = vpop.f32.mrf.mxu1 }
 0x20d   : > { %v3384_v32 = vpop.f32.mrf.mxu0  ;;  %v3042_v16 = vadd.f32 %v6782_v55, %v9119_v30 }
 0x20e   : > { %10083 = vst [vmem:[#allocation26_spill] sm:$0xff] %v9209_v49  ;;  %v9212_v20 = vadd.f32 %v3384_v32, %v3037_v31  ;;  %v2997_v45 = vpop.f32.mrf.mxu1  ;;  %v9265_v32 = vpop.permute.xlu1 %7035 }
 0x20f   : > { %v6816_v0 = vpop.f32.mrf.mxu0  ;;  %v3040_v4 = vadd.f32 %v2997_v45, %v9122_v46  ;;  %v9269_v45 = vpop.permute.xlu0 %7040 }
 0x210   : > { %10084 = vst [vmem:[#allocation41_spill] sm:$0xff] %v9212_v20  ;;  %v9215_v18 = vadd.f32 %v6816_v0, %v3042_v16  ;;  %v6783_v57 = vpop.f32.mrf.mxu1 }
 0x211   : > { %v3397_v13 = vpop.f32.mrf.mxu0  ;;  %v3043_v7 = vadd.f32 %v6783_v57, %v9125_v39 }
 0x212   : > { %10085 = vst [vmem:[#allocation40_spill] sm:$0xff] %v9215_v18  ;;  %v9218_v37 = vadd.f32 %v3397_v13, %v3040_v4  ;;  %v3000_v43 = vpop.f32.mrf.mxu1 }
 0x213   : > { %v6817_v62 = vpop.f32.mrf.mxu0  ;;  %v3041_v24 = vadd.f32 %v3000_v43, %v9128_v29  ;;  %v9281_v43 = vpop.permute.xlu1 %7045 }
 0x214   : > { %10086 = vst [vmem:[#allocation27_spill] sm:$0xff] %v9218_v37  ;;  %v9221_v9 = vadd.f32 %v6817_v62, %v3043_v7  ;;  %v9223_v30 = vpop.f32.mrf.mxu1 }
 0x215   : > { %v3400_v56 = vpop.f32.mrf.mxu0 }
 0x216   : > { %10087 = vst [vmem:[#allocation28_spill] sm:$0xff] %v9221_v9  ;;  %v9225_v52 = vadd.f32 %v3400_v56, %v3041_v24  ;;  %v9227_v46 = vpop.f32.mrf.mxu1  ;;  %v9285_v24 = vpop.permute.xlu0 %7050 }
 0x217   : > { %v9229_v2 = vpop.f32.mrf.mxu0  ;;  %v9297_v20 = vpop.permute.xlu1 %7055 }
 0x218   : > { %10088 = vst [vmem:[#allocation15_spill] sm:$0xff] %v9225_v52  ;;  %v9231_v8 = vpop.f32.mrf.mxu1 }
 0x219   : > { %v9233_v39 = vpop.f32.mrf.mxu0 }
 0x21a   : > { %v9235_v50 = vpop.f32.mrf.mxu1  ;;  %v9301_v28 = vpop.permute.xlu0 %7060 }
 0x21b   : > { %v9239_v29 = vpop.f32.mrf.mxu0  ;;  %v9313_v1 = vpop.permute.xlu1 %7065 }
 0x21c   : > { %v9241_v47 = vpop.f32.mrf.mxu1 }
 0x21d   : > { %v9243_v3 = vpop.f32.mrf.mxu0 }
 0x21e   : > { %v9245_v21 = vpop.f32.mrf.mxu1  ;;  %v9317_v53 = vpop.permute.xlu0 %7070 }
 0x21f   : > { %v9247_v10 = vpop.f32.mrf.mxu0 }
 0x220   : > { %v9251_v12 = vpop.f32.mrf.mxu1 }
 0x221   : > { %v9255_v19 = vpop.f32.mrf.mxu0 }
 0x222   : > { %v9257_v59 = vpop.f32.mrf.mxu1 }
 0x223   : > { %v9259_v54 = vpop.f32.mrf.mxu0 }
 0x224   : > { %v9261_v31 = vpop.f32.mrf.mxu1 }
 0x225   : > { %v9263_v55 = vpop.f32.mrf.mxu0 }
 0x226   : > { %v9267_v16 = vpop.f32.mrf.mxu1 }
 0x227   : > { %v9271_v0 = vpop.f32.mrf.mxu0 }
 0x228   : > { %v9273_v4 = vpop.f32.mrf.mxu1 }
 0x229   : > { %10089 = vst [vmem:[#allocation14_spill] sm:$0xff] %v9273_v4  ;;  %v9275_v57 = vpop.f32.mrf.mxu0 }
 0x22a   : > { %10090 = vst [vmem:[#allocation5_spill] sm:$0xff] %v9275_v57  ;;  %v9277_v13 = vpop.f32.mrf.mxu1 }
 0x22b   : > { %10091 = vst [vmem:[#allocation16_spill] sm:$0xff] %v9277_v13  ;;  %v9279_v7 = vpop.f32.mrf.mxu0  ;;  %v7067_v13 = vunpack.i.l.bf16 %v9313_v1 }
 0x22c   : > { %10092 = vst [vmem:[#allocation17_spill] sm:$0xff] %v9279_v7  ;;  %v9283_v62 = vpop.f32.mrf.mxu1  ;;  %v7068_v7 = vunpack.i.h.bf16 %v9313_v1  ;;  %v3811_v1 = vadd.f32 %v9227_v46, %v9134_v22 }
 0x22d   : > { %10093 = vst [vmem:[#allocation7_spill] sm:$0xff] %v9283_v62  ;;  %v9287_v56 = vpop.f32.mrf.mxu0 }
 0x22e   : > { %10094 = vst [vmem:[#allocation21_spill] sm:$0xff] %v9287_v56  ;;  %v9289_v52 = vpop.f32.mrf.mxu1 }
 0x22f   : > { %10095 = vst [vmem:[#allocation18_spill] sm:$0xff] %v9289_v52  ;;  %v9291_v9 = vpop.f32.mrf.mxu0  ;;  %v7038_v52 = vunpack.i.h.bf16 %v9265_v32 }
 0x230   : > { %10096 = vst [vmem:[#allocation19_spill] sm:$0xff] %v9291_v9  ;;  %v9293_v37 = vpop.f32.mrf.mxu1 }
 0x231   : > { %10097 = vst [vmem:[#allocation22_spill] sm:$0xff] %v9293_v37  ;;  %v9295_v18 = vpop.f32.mrf.mxu0 }
 0x232   : > { %10098 = vst [vmem:[#allocation23_spill] sm:$0xff] %v9295_v18  ;;  %v9299_v49 = vpop.f32.mrf.mxu1 }
 0x233   : > { %10099 = vst [vmem:[#allocation20_spill] sm:$0xff] %v9299_v49  ;;  %v9303_v63 = vpop.f32.mrf.mxu0 }
 0x234   : > { %10100 = vst [vmem:[#allocation8_spill] sm:$0xff] %v9303_v63  ;;  %v9305_v11 = vpop.f32.mrf.mxu1 }
 0x235   : > { %10101 = vst [vmem:[#allocation24_spill] sm:$0xff] %v9305_v11  ;;  %v9307_v44 = vpop.f32.mrf.mxu0 }
 0x236   : > { %10102 = vst [vmem:[#allocation25_spill] sm:$0xff] %v9307_v44  ;;  %v9309_v58 = vpop.f32.mrf.mxu1  ;;  %v9329_v44 = vpop.permute.xlu1 %7075 }
 0x237   : > { %10103 = vst [vmem:[#allocation9_spill] sm:$0xff] %v9309_v58  ;;  %v9311_v60 = vpop.f32.mrf.mxu0  ;;  %v7077_v25 = vunpack.i.l.bf16 %v9329_v44 }
 0x238   : > { %10104 = vst [vmem:[#allocation42_spill] sm:$0xff] %v9311_v60  ;;  %v9315_v5 = vpop.f32.mrf.mxu1  ;;  %v9333_v60 = vpop.permute.xlu0 %7080 }
 0x239   : > { %10105 = vst [vmem:[#allocation43_spill] sm:$0xff] %v9315_v5  ;;  %v9319_v34 = vpop.f32.mrf.mxu0 }
 0x23a   : > { %10106 = vst [vmem:[#allocation44_spill] sm:$0xff] %v9319_v34  ;;  %v9321_v49 = vpop.f32.mrf.mxu1 }
 0x23b   : > { %10107 = vst [vmem:[#allocation45_spill] sm:$0xff] %v9321_v49  ;;  %v9323_v61 = vpop.f32.mrf.mxu0 }
 0x23c   : > { %10108 = vst [vmem:[#allocation46_spill] sm:$0xff] %v9323_v61  ;;  %v9325_v63 = vpop.f32.mrf.mxu1  ;;  %v9345_v61 = vpop.permute.xlu1 %7085 }
 0x23d   : > { %10109 = vst [vmem:[#allocation47_spill] sm:$0xff] %v9325_v63  ;;  %v9327_v11 = vpop.f32.mrf.mxu0  ;;  %v7088_v22 = vunpack.i.h.bf16 %v9345_v61  ;;  %v7087_v46 = vunpack.i.l.bf16 %v9345_v61 }
 0x23e   : > { %10110 = vst [vmem:[#allocation48_spill] sm:$0xff] %v9327_v11  ;;  %v9331_v58 = vpop.f32.mrf.mxu1  ;;  %v9349_v11 = vpop.permute.xlu0 %7090 }
 0x23f   : > { %10111 = vst [vmem:[#allocation49_spill] sm:$0xff] %v9331_v58  ;;  %v9335_v18 = vpop.f32.mrf.mxu0 }
 0x240   : > { %10112 = vst [vmem:[#allocation50_spill] sm:$0xff] %v9335_v18  ;;  %v9337_v5 = vpop.f32.mrf.mxu1  ;;  %v7023_v18 = vunpack.i.h.bf16 %v9237_v40 }
 0x241   : > { %10113 = vst [vmem:[#allocation51_spill] sm:$0xff] %v9337_v5  ;;  %v9339_v37 = vpop.f32.mrf.mxu0  ;;  %v7022_v5 = vunpack.i.l.bf16 %v9237_v40  ;;  %v9369_v40 = vpop.permute.xlu1 %7095 }
 0x242   : > { %10114 = vst [vmem:[#allocation52_spill] sm:$0xff] %v9339_v37  ;;  %v9341_v34 = vpop.f32.mrf.mxu1  ;;  %v7033_v37 = vunpack.i.h.bf16 %v9253_v48 }
 0x243   : > { %10115 = vst [vmem:[#allocation53_spill] sm:$0xff] %v9341_v34  ;;  %v9343_v49 = vpop.f32.mrf.mxu0  ;;  %v7032_v34 = vunpack.i.l.bf16 %v9253_v48  ;;  %v9374_v48 = vsel %vm5364_vm1, %v7022_v5, %v7023_v18  ;;  %v7043_v5 = vunpack.i.h.bf16 %v9269_v45  ;;  %v7042_v18 = vunpack.i.l.bf16 %v9269_v45 }
 0x244   : > { %10116 = vst [vmem:[#allocation54_spill] sm:$0xff] %v9343_v49  ;;  %v9347_v63 = vpop.f32.mrf.mxu1  ;;  %v7028_v49 = vunpack.i.h.bf16 %v9249_v42  ;;  %v7062_v45 = vunpack.i.l.bf16 %v9301_v28 }
 0x245   : > { %10117 = vst [vmem:[#allocation55_spill] sm:$0xff] %v9347_v63  ;;  %v9351_v23 = vpop.f32.mrf.mxu0  ;;  %v7027_v63 = vunpack.i.l.bf16 %v9249_v42 }
 0x246   : > { %10118 = vst [vmem:[#allocation56_spill] sm:$0xff] %v9351_v23  ;;  %v9353_v58 = vpop.f32.mrf.mxu1  ;;  %v7037_v23 = vunpack.i.l.bf16 %v9265_v32  ;;  %v9384_v32 = vsel %vm5364_vm1, %v7032_v34, %v7033_v37  ;;  %v7047_v34 = vunpack.i.l.bf16 %v9281_v43  ;;  %v7073_v37 = vunpack.i.h.bf16 %v9317_v53 }
 0x247   : > { %10119 = vst [vmem:[#allocation57_spill] sm:$0xff] %v9353_v58  ;;  %v9359_v9 = vpop.f32.mrf.mxu0  ;;  %v9381_v42 = vsel %vm5364_vm1, %v7027_v63, %v7028_v49  ;;  %v7058_v49 = vunpack.i.h.bf16 %v9297_v20 }
 0x248   : > { %10120 = vst [vmem:[#allocation58_spill] sm:$0xff] %v9359_v9  ;;  %v9365_v14 = vpop.f32.mrf.mxu1  ;;  %v9376_v9 = vpop.permute.xlu0 %7100  ;;  %10125 = vst [vmem:[#allocation63_spill] sm:$0xff] %v9381_v42  ;;  %v7082_v42 = vunpack.i.l.bf16 %v9333_v60 }
 0x249   : > { %10121 = vst [vmem:[#allocation59_spill] sm:$0xff] %v9365_v14  ;;  %v9367_v58 = vpop.f32.mrf.mxu0  ;;  %v9387_v14 = vsel %vm5364_vm1, %v7037_v23, %v7038_v52  ;;  %v7057_v23 = vunpack.i.l.bf16 %v9297_v20  ;;  %v7078_v20 = vunpack.i.h.bf16 %v9329_v44  ;;  %v9428_v44 = vsel %vm5364_vm1, %v7042_v18, %v7043_v5 }
 0x24a   : > { %10122 = vst [vmem:[#allocation60_spill] sm:$0xff] %v9367_v58  ;;  %v9371_v56 = vpop.f32.mrf.mxu1  ;;  %v7053_v58 = vunpack.i.h.bf16 %v9285_v24 }
 0x24b   : > { %10123 = vst [vmem:[#allocation61_spill] sm:$0xff] %v9371_v56  ;;  %v9378_v62 = vpop.f32.mrf.mxu0  ;;  %v7048_v56 = vunpack.i.h.bf16 %v9281_v43  ;;  %v9439_v26 = vsel %vm5364_vm1, %v7057_v23, %v7058_v49  ;;  %v9458_v49 = vsel %vm5364_vm1, %v7077_v25, %v7078_v20  ;;  %v7097_v25 = vunpack.i.l.bf16 %v9369_v40 }
 0x24c   : > { %10124 = vst [vmem:[#allocation62_spill] sm:$0xff] %v9378_v62  ;;  %v9390_v27 = vpop.f32.mrf.mxu1  ;;  %v7052_v62 = vunpack.i.l.bf16 %v9285_v24  ;;  %v7072_v24 = vunpack.i.l.bf16 %v9317_v53  ;;  %v7093_v53 = vunpack.i.h.bf16 %v9349_v11 }
 0x24d   : > { %10126 = vst [vmem:[#allocation64_spill] sm:$0xff] %v9390_v27  ;;  %v9396_v63 = vpop.f32.mrf.mxu0  ;;  %v7063_v27 = vunpack.i.h.bf16 %v9301_v28  ;;  %v7083_v28 = vunpack.i.h.bf16 %v9333_v60  ;;  %v9431_v4 = vsel %vm5364_vm1, %v7047_v34, %v7048_v56  ;;  %v3814_v56 = vadd.f32 %v9231_v8, %v9137_v41 }
 0x24e   : > { %10127 = vst [vmem:[#allocation65_spill] sm:$0xff] %v9396_v63  ;;  %v9402_v52 = vpop.f32.mrf.mxu1  ;;  %v3813_v63 = vadd.f32 %v9223_v30, %v9131_v36  ;;  %v7092_v36 = vunpack.i.l.bf16 %v9349_v11  ;;  %v7111_v30 = vpop.permute.xlu0 %7110  ;;  %v9442_v11 = vsel %vm5364_vm1, %v7072_v24, %v7073_v37  ;;  %v7098_v41 = vunpack.i.h.bf16 %v9369_v40  ;;  %v9485_v40 = vld [vmem:[%s9873_s3] ss:$0 sm:$0xff] }
 0x24f   : > { %10128 = vst [vmem:[#allocation66_spill] sm:$0xff] %v9402_v52  ;;  %v9410_v43 = vpop.f32.mrf.mxu0  ;;  %v9415_v52 = vpop.permute.xlu1 %7105  ;;  %v9461_v23 = vsel %vm5364_vm1, %v7082_v42, %v7083_v28  ;;  %v7103_v37 = vunpack.i.h.bf16 %v9376_v9  ;;  %v7112_v24 = vunpack.i.l.bf16 %v7111_v30 }
 0x250   : > { %10129 = vst [vmem:[#allocation67_spill] sm:$0xff] %v9410_v43  ;;  %v9417_v57 = vpop.f32.mrf.mxu1  ;;  %v4095_v5 = vadd.f32 %v9229_v2, %v3813_v63  ;;  %v9464_v61 = vsel %vm5364_vm1, %v7092_v36, %v7093_v53  ;;  %v4093_v2 = vadd.f32 %v9233_v39, %v3811_v1  ;;  %v9474_v63 = vsel %vm5364_vm1, %v7087_v46, %v7088_v22  ;;  %v9497_v46 = vld [vmem:[%s9874_s4] ss:$0 sm:$0xff] }
 0x251   : > { %10130 = vst [vmem:[#allocation68_spill] sm:$0xff] %v9417_v57  ;;  %v9425_v43 = vpop.f32.mrf.mxu0  ;;  %v9434_v57 = vsel %vm5364_vm1, %v7052_v62, %v7053_v58  ;;  %v9452_v58 = vsel %vm5364_vm1, %v7062_v45, %v7063_v27  ;;  %v9455_v62 = vsel %vm5364_vm1, %v7067_v13, %v7068_v7  ;;  %v3812_v27 = vadd.f32 %v9235_v50, %v9140_v35 }
 0x252   : > { %v9436_v60 = vpop.f32.mrf.mxu1  ;;  %v7113_v45 = vunpack.i.h.bf16 %v7111_v30  ;;  %v9477_v39 = vpop.permute.xlu0 %7120  ;;  %v4096_v35 = vadd.f32 %v9239_v29, %v3814_v56  ;;  %v3817_v50 = vadd.f32 %v9241_v47, %v9143_v38  ;;  %v7102_v53 = vunpack.i.l.bf16 %v9376_v9 }
 0x253   : > { %v9449_v18 = vpop.f32.mrf.mxu0  ;;  %v7116_v7 = vpop.permute.xlu1 %7115  ;;  %v7108_v1 = vunpack.i.h.bf16 %v9415_v52  ;;  %v7107_v29 = vunpack.i.l.bf16 %v9415_v52  ;;  %v4094_v38 = vadd.f32 %v9243_v3, %v3812_v27  ;;  %v3815_v47 = vadd.f32 %v9245_v21, %v9146_v17 }
 0x254   : > { %v6890_v34 = vpop.f32.mrf.mxu1  ;;  %v7118_v22 = vunpack.i.h.bf16 %v7116_v7  ;;  %v7117_v9 = vunpack.i.l.bf16 %v7116_v7  ;;  %v9505_v3 = vsel %vm5364_vm1, %v7097_v25, %v7098_v41  ;;  %v9508_v17 = vsel %vm5364_vm1, %v7112_v24, %v7113_v45 }
 0x255   : > { %v9470_v8 = vpop.f32.mrf.mxu0  ;;  %v4495_v13 = vadd.f32 %v6890_v34, %v4095_v5  ;;  %v4099_v21 = vadd.f32 %v9247_v10, %v3817_v50  ;;  %v3818_v27 = vadd.f32 %v9251_v12, %v9149_v51  ;;  %v9519_v25 = vsel %vm5364_vm1, %v7107_v29, %v7108_v1 }
 0x256   : > { %v4366_v42 = vpop.f32.mrf.mxu1  ;;  %v9521_v45 = vpop.permute.xlu0 %7130  ;;  %v4097_v10 = vadd.f32 %v9255_v19, %v3815_v47  ;;  %v3816_v51 = vadd.f32 %v9257_v59, %v9152_v6  ;;  %v9527_v24 = vsel %vm5364_vm1, %v7117_v9, %v7118_v22  ;;  %v3821_v19 = vadd.f32 %v9261_v31, %v9155_v15 }
 0x257   : > { %v6924_v20 = vpop.f32.mrf.mxu0  ;;  %v4493_v28 = vadd.f32 %v4366_v42, %v4093_v2  ;;  %v9514_v42 = vsel %vm5364_vm1, %v7102_v53, %v7103_v37  ;;  %v4100_v29 = vadd.f32 %v9259_v54, %v3818_v27  ;;  %v3819_v31 = vadd.f32 %v9267_v16, %v9158_v33 }
 0x258   : > { %v4968_v36 = vadd.f32 %v6924_v20, %v4495_v13  ;;  %v6891_v30 = vpop.f32.mrf.mxu1  ;;  %v4098_v15 = vadd.f32 %v9263_v55, %v3816_v51  ;;  %v7132_v9 = vunpack.i.l.bf16 %v9521_v45  ;;  %v4103_v55 = vadd.f32 %v9271_v0, %v3821_v19 }
 0x259   : > { %v4839_v5 = vpop.f32.mrf.mxu0  ;;  %v4496_v56 = vadd.f32 %v6891_v30, %v4096_v35 }
 0x25a   : > { %v5007_v34 = vmul.f32 %v9485_v40, %v4968_v36  ;;  %v4966_v52 = vadd.f32 %v4839_v5, %v4493_v28  ;;  %v4369_v2 = vpop.f32.mrf.mxu1 }
 0x25b   : > { %v6925_v13 = vpop.f32.mrf.mxu0  ;;  %v4494_v7 = vadd.f32 %v4369_v2, %v4094_v38  ;;  %v7133_v38 = vunpack.i.h.bf16 %v9521_v45 }
 0x25c   : > { %v5046_v35 = vadd.f32 %v9497_v46, %v5007_v34  ;;  %v5005_v20 = vmul.f32 %v9485_v40, %v4966_v52  ;;  %v4969_v28 = vadd.f32 %v6925_v13, %v4496_v56  ;;  %v6894_v41 = vpop.f32.mrf.mxu1  ;;  %v10131_v13 = vld [vmem:[#allocation29_spill] sm:$0xff] }
 0x25d   : > { %v4842_v12 = vpop.f32.mrf.mxu0  ;;  %v4499_v37 = vadd.f32 %v6894_v41, %v4099_v21 }
 0x25e   : > { %v5044_v50 = vadd.f32 %v9497_v46, %v5005_v20  ;;  %v5008_v53 = vmul.f32 %v9485_v40, %v4969_v28  ;;  %v5431_v36 = vadd.f32 %v9384_v32, %v5046_v35  ;;  %v4967_v30 = vadd.f32 %v4842_v12, %v4494_v7  ;;  %v4382_v1 = vpop.f32.mrf.mxu1  ;;  %v10132_v7 = vld [vmem:[#allocation14_spill] sm:$0xff]  ;;  %v10133_v28 = vld [vmem:[#allocation63_spill] sm:$0xff] }
 0x25f   : > { %v6928_v6 = vpop.f32.mrf.mxu0  ;;  %v4497_v59 = vadd.f32 %v4382_v1, %v4097_v10  ;;  %v3822_v33 = vadd.f32 %v10132_v7, %v10131_v13  ;;  %v7123_v20 = vunpack.i.h.bf16 %v9477_v39  ;;  %v10141_v7 = vld [vmem:[#allocation30_spill] sm:$0xff] }
 0x260   : > { %v5429_v22 = vadd.f32 %v9374_v48, %v5044_v50  ;;  %v5047_v47 = vadd.f32 %v9497_v46, %v5008_v53  ;;  %5464 = vst.msk [vmem:[%s9539_s27 + $0x10] sm:$0xff] %vm5461_vm2, %v5431_v36  ;;  %v5006_v32 = vmul.f32 %v9485_v40, %v4967_v30  ;;  %v4972_v54 = vadd.f32 %v6928_v6, %v4499_v37  ;;  %v6895_v5 = vpop.f32.mrf.mxu1  ;;  %v10134_v37 = vld [vmem:[#allocation5_spill] sm:$0xff]  ;;  %v10135_v50 = vld [vmem:[#allocation10_spill] sm:$0xff]  ;;  %v10136_v53 = vld [vmem:[#allocation16_spill] sm:$0xff] }
 0x261   : > { %v4855_v56 = vpop.f32.mrf.mxu0  ;;  %v4500_v48 = vadd.f32 %v6895_v5, %v4100_v29  ;;  %v4101_v0 = vadd.f32 %v10134_v37, %v3819_v31  ;;  %v3820_v36 = vadd.f32 %v10136_v53, %v10135_v50  ;;  %v7122_v29 = vunpack.i.l.bf16 %v9477_v39  ;;  %v10139_v31 = vld [vmem:[#allocation7_spill] sm:$0xff]  ;;  %v10145_v53 = vld [vmem:[#allocation22_spill] sm:$0xff] }
 0x262   : > { %5462 = vst.msk [vmem:[%s9539_s27] sm:$0xff] %vm5461_vm2, %v5429_v22  ;;  %v5045_v34 = vadd.f32 %v9497_v46, %v5006_v32  ;;  %v5432_v52 = vadd.f32 %v9387_v14, %v5047_v47  ;;  %v5011_v2 = vmul.f32 %v9485_v40, %v4972_v54  ;;  %v4970_v21 = vadd.f32 %v4855_v56, %v4497_v59  ;;  %v4385_v27 = vpop.f32.mrf.mxu1  ;;  %v9571_v32 = vpop.permute.xlu1 %7125  ;;  %v10137_v54 = vld [vmem:[#allocation17_spill] sm:$0xff]  ;;  %v10143_v37 = vld [vmem:[#allocation19_spill] sm:$0xff] }
 0x263   : > { %v6929_v16 = vpop.f32.mrf.mxu0  ;;  %v4498_v35 = vadd.f32 %v4385_v27, %v4098_v15  ;;  %v4104_v5 = vadd.f32 %v10137_v54, %v3822_v33  ;;  %v10138_v15 = vld [vmem:[#allocation11_spill] sm:$0xff]  ;;  %v10142_v33 = vld [vmem:[#allocation18_spill] sm:$0xff] }
 0x264   : > { %v5430_v41 = vadd.f32 %v10133_v28, %v5045_v34  ;;  %5465 = vst.msk [vmem:[%s9539_s27 + $0x18] sm:$0xff] %vm5461_vm2, %v5432_v52  ;;  %v5050_v14 = vadd.f32 %v9497_v46, %v5011_v2  ;;  %v5009_v10 = vmul.f32 %v9485_v40, %v4970_v21  ;;  %v4973_v51 = vadd.f32 %v6929_v16, %v4500_v48  ;;  %v6898_v12 = vpop.f32.mrf.mxu1  ;;  %v10144_v50 = vld [vmem:[#allocation31_spill] sm:$0xff] }
 0x265   : > { %v4858_v30 = vpop.f32.mrf.mxu0  ;;  %v4503_v1 = vadd.f32 %v6898_v12, %v4103_v55  ;;  %v3825_v56 = vadd.f32 %v10139_v31, %v10138_v15  ;;  %v7128_v34 = vunpack.i.h.bf16 %v9571_v32  ;;  %v10140_v55 = vld [vmem:[#allocation21_spill] sm:$0xff]  ;;  %v3823_v16 = vadd.f32 %v10142_v33, %v10141_v7  ;;  %v10147_v31 = vld [vmem:[#allocation34_spill] sm:$0xff]  ;;  %v10151_v7 = vld [vmem:[#allocation24_spill] sm:$0xff] }
 0x266   : > { %5463 = vst.msk [vmem:[%s9539_s27 + $0x8] sm:$0xff] %vm5461_vm2, %v5430_v41  ;;  %v5048_v19 = vadd.f32 %v9497_v46, %v5009_v10  ;;  %v5012_v6 = vmul.f32 %v9485_v40, %v4973_v51  ;;  %v5435_v59 = vadd.f32 %v9434_v57, %v5050_v14  ;;  %v4971_v22 = vadd.f32 %v4858_v30, %v4498_v35  ;;  %v4398_v47 = vpop.f32.mrf.mxu1  ;;  %v7136_v54 = vpop.permute.xlu1 %7135 }
 0x267   : > { %v6932_v48 = vpop.f32.mrf.mxu0  ;;  %v4501_v39 = vadd.f32 %v4398_v47, %v4101_v0  ;;  %v4102_v13 = vadd.f32 %v10140_v55, %v3820_v36  ;;  %v7127_v41 = vunpack.i.l.bf16 %v9571_v32  ;;  %v4107_v0 = vadd.f32 %v10143_v37, %v3825_v56  ;;  %v10148_v56 = vld [vmem:[#allocation20_spill] sm:$0xff]  ;;  %v10154_v37 = vld [vmem:[#allocation9_spill] sm:$0xff] }
 0x268   : > { %v5433_v52 = vadd.f32 %v9428_v44, %v5048_v19  ;;  %v5051_v2 = vadd.f32 %v9497_v46, %v5012_v6  ;;  %5468 = vst.msk [vmem:[%s9539_s27 + $0x30] sm:$0xff] %vm5461_vm2, %v5435_v59  ;;  %v5010_v57 = vmul.f32 %v9485_v40, %v4971_v22  ;;  %v4976_v21 = vadd.f32 %v6932_v48, %v4503_v1  ;;  %v6899_v27 = vpop.f32.mrf.mxu1 }
 0x269   : > { %v4871_v35 = vpop.f32.mrf.mxu0  ;;  %v4504_v28 = vadd.f32 %v6899_v27, %v4104_v5  ;;  %v3826_v36 = vadd.f32 %v10145_v53, %v10144_v50  ;;  %v9597_v19 = vsel %vm5364_vm1, %v7132_v9, %v7133_v38  ;;  %v10146_v5 = vld [vmem:[#allocation23_spill] sm:$0xff]  ;;  %v3824_v48 = vadd.f32 %v10148_v56, %v10147_v31  ;;  %v10149_v27 = vld [vmem:[#allocation8_spill] sm:$0xff] }
 0x26a   : > { %5466 = vst.msk [vmem:[%s9539_s27 + $0x20] sm:$0xff] %vm5461_vm2, %v5433_v52  ;;  %v5049_v44 = vadd.f32 %v9497_v46, %v5010_v57  ;;  %v5436_v14 = vadd.f32 %v9439_v26, %v5051_v2  ;;  %v5015_v10 = vmul.f32 %v9485_v40, %v4976_v21  ;;  %v4974_v51 = vadd.f32 %v4871_v35, %v4501_v39  ;;  %v4401_v12 = vpop.f32.mrf.mxu1  ;;  %v9615_v21 = vpop.permute.xlu0 %7140 }
 0x26b   : > { %v6933_v30 = vpop.f32.mrf.mxu0  ;;  %v4502_v1 = vadd.f32 %v4401_v12, %v4102_v13  ;;  %v4105_v15 = vadd.f32 %v10146_v5, %v3823_v16  ;;  %v9608_v38 = vsel %vm5364_vm1, %v7122_v29, %v7123_v20  ;;  %v4108_v55 = vadd.f32 %v10149_v27, %v3826_v36  ;;  %v10150_v13 = vld [vmem:[#allocation35_spill] sm:$0xff]  ;;  %v10153_v12 = vld [vmem:[#allocation32_spill] sm:$0xff]  ;;  %v10160_v27 = vld [vmem:[#allocation45_spill] sm:$0xff] }
 0x26c   : > { %v5434_v6 = vadd.f32 %v9431_v4, %v5049_v44  ;;  %5469 = vst.msk [vmem:[%s9539_s27 + $0x38] sm:$0xff] %vm5461_vm2, %v5436_v14  ;;  %v5054_v26 = vadd.f32 %v9497_v46, %v5015_v10  ;;  %v5013_v59 = vmul.f32 %v9485_v40, %v4974_v51  ;;  %v4977_v22 = vadd.f32 %v6933_v30, %v4504_v28  ;;  %v6902_v47 = vpop.f32.mrf.mxu1  ;;  %v10152_v10 = vld [vmem:[#allocation25_spill] sm:$0xff]  ;;  %v10157_v5 = vld [vmem:[#allocation43_spill] sm:$0xff] }
 0x26d   : > { %v4874_v45 = vpop.f32.mrf.mxu0  ;;  %v4507_v39 = vadd.f32 %v6902_v47, %v4107_v0  ;;  %v3829_v33 = vadd.f32 %v10151_v7, %v10150_v13  ;;  %v7138_v16 = vunpack.i.h.bf16 %v7136_v54  ;;  %v4106_v51 = vadd.f32 %v10152_v10, %v3824_v48  ;;  %v10156_v47 = vld [vmem:[#allocation33_spill] sm:$0xff] }
 0x26e   : > { %5467 = vst.msk [vmem:[%s9539_s27 + $0x28] sm:$0xff] %vm5461_vm2, %v5434_v6  ;;  %v5052_v4 = vadd.f32 %v9497_v46, %v5013_v59  ;;  %v5016_v9 = vmul.f32 %v9485_v40, %v4977_v22  ;;  %v5439_v52 = vadd.f32 %v9442_v11, %v5054_v26  ;;  %v4975_v2 = vadd.f32 %v4874_v45, %v4502_v1  ;;  %v4414_v57 = vpop.f32.mrf.mxu1  ;;  %v10155_v59 = vld [vmem:[#allocation42_spill] sm:$0xff] }
 0x26f   : > { %v6936_v20 = vpop.f32.mrf.mxu0  ;;  %v4505_v29 = vadd.f32 %v4414_v57, %v4105_v15  ;;  %v3827_v0 = vadd.f32 %v10154_v37, %v10153_v12  ;;  %v7137_v36 = vunpack.i.l.bf16 %v7136_v54  ;;  %v4111_v22 = vadd.f32 %v10155_v59, %v3829_v33  ;;  %v10159_v57 = vld [vmem:[#allocation36_spill] sm:$0xff] }
 0x270   : > { %v5437_v35 = vadd.f32 %v9452_v58, %v5052_v4  ;;  %v5055_v28 = vadd.f32 %v9497_v46, %v5016_v9  ;;  %5472 = vst.msk [vmem:[%s9539_s27 + $0x50] sm:$0xff] %vm5461_vm2, %v5439_v52  ;;  %v5014_v11 = vmul.f32 %v9485_v40, %v4975_v2  ;;  %v4980_v44 = vadd.f32 %v6936_v20, %v4507_v39  ;;  %v6903_v14 = vpop.f32.mrf.mxu1  ;;  %v9646_v9 = vpop.permute.xlu0 %7150  ;;  %v10158_v52 = vld [vmem:[#allocation44_spill] sm:$0xff] }
 0x271   : > { %v4887_v50 = vpop.f32.mrf.mxu0  ;;  %v4508_v53 = vadd.f32 %v6903_v14, %v4108_v55  ;;  %v3830_v15 = vadd.f32 %v10157_v5, %v10156_v47  ;;  %v9639_v54 = vsel %vm5364_vm1, %v7127_v41, %v7128_v34  ;;  %v4109_v2 = vadd.f32 %v10158_v52, %v3827_v0 }
 0x272   : > { %5470 = vst.msk [vmem:[%s9539_s27 + $0x40] sm:$0xff] %vm5461_vm2, %v5437_v35  ;;  %v5053_v58 = vadd.f32 %v9497_v46, %v5014_v11  ;;  %v5440_v30 = vadd.f32 %v9458_v49, %v5055_v28  ;;  %v5019_v1 = vmul.f32 %v9485_v40, %v4980_v44  ;;  %v4978_v6 = vadd.f32 %v4887_v50, %v4505_v29  ;;  %v4417_v26 = vpop.f32.mrf.mxu1  ;;  %v10161_v29 = vld [vmem:[#allocation46_spill] sm:$0xff]  ;;  %v10162_v28 = vld [vmem:[#allocation37_spill] sm:$0xff]  ;;  %v10163_v11 = vld [vmem:[#allocation47_spill] sm:$0xff] }
 0x273   : > { %v6937_v31 = vpop.f32.mrf.mxu0  ;;  %v4506_v56 = vadd.f32 %v4417_v26, %v4106_v51  ;;  %v3828_v32 = vadd.f32 %v10160_v27, %v10159_v57  ;;  %v4112_v35 = vadd.f32 %v10161_v29, %v3830_v15  ;;  %v3833_v44 = vadd.f32 %v10163_v11, %v10162_v28  ;;  %v10164_v50 = vld [vmem:[#allocation48_spill] sm:$0xff]  ;;  %v10167_v15 = vld [vmem:[#allocation50_spill] sm:$0xff] }
 0x274   : > { %v5438_v48 = vadd.f32 %v9455_v62, %v5053_v58  ;;  %5473 = vst.msk [vmem:[%s9539_s27 + $0x58] sm:$0xff] %vm5461_vm2, %v5440_v30  ;;  %v5058_v49 = vadd.f32 %v9497_v46, %v5019_v1  ;;  %v5017_v45 = vmul.f32 %v9485_v40, %v4978_v6  ;;  %v4981_v39 = vadd.f32 %v6937_v31, %v4508_v53  ;;  %v6906_v4 = vpop.f32.mrf.mxu1  ;;  %v10166_v58 = vld [vmem:[#allocation49_spill] sm:$0xff] }
 0x275   : > { %v4890_v55 = vpop.f32.mrf.mxu0  ;;  %v4511_v34 = vadd.f32 %v6906_v4, %v4111_v22  ;;  %v9652_v62 = vsel %vm5364_vm1, %v7137_v36, %v7138_v16  ;;  %v7153_v16 = vunpack.i.h.bf16 %v9646_v9  ;;  %v4110_v53 = vadd.f32 %v10164_v50, %v3828_v32  ;;  %v10165_v36 = vld [vmem:[#allocation38_spill] sm:$0xff]  ;;  %v10170_v32 = vld [vmem:[#allocation52_spill] sm:$0xff] }
 0x276   : > { %5471 = vst.msk [vmem:[%s9539_s27 + $0x48] sm:$0xff] %vm5461_vm2, %v5438_v48  ;;  %v5056_v41 = vadd.f32 %v9497_v46, %v5017_v45  ;;  %v5020_v13 = vmul.f32 %v9485_v40, %v4981_v39  ;;  %v5443_v7 = vadd.f32 %v9464_v61, %v5058_v49  ;;  %v4979_v33 = vadd.f32 %v4890_v55, %v4506_v56  ;;  %v4430_v20 = vpop.f32.mrf.mxu1  ;;  %v10168_v56 = vld [vmem:[#allocation12_spill] sm:$0xff]  ;;  %v10169_v48 = vld [vmem:[#allocation51_spill] sm:$0xff] }
 0x277   : > { %v6940_v14 = vpop.f32.mrf.mxu0  ;;  %v4509_v10 = vadd.f32 %v4430_v20, %v4109_v2  ;;  %v3831_v30 = vadd.f32 %v10166_v58, %v10165_v36  ;;  %v7152_v26 = vunpack.i.l.bf16 %v9646_v9  ;;  %v4115_v31 = vadd.f32 %v10167_v15, %v3833_v44  ;;  %v9695_v44 = vpop.permute.xlu1 %7145 }
 0x278   : > { %v5441_v51 = vadd.f32 %v9461_v23, %v5056_v41  ;;  %v5059_v12 = vadd.f32 %v9497_v46, %v5020_v13  ;;  %5476 = vst.msk [vmem:[%s9539_s27 + $0x70] sm:$0xff] %vm5461_vm2, %v5443_v7  ;;  %v5018_v61 = vmul.f32 %v9485_v40, %v4979_v33  ;;  %v4984_v37 = vadd.f32 %v6940_v14, %v4511_v34  ;;  %v6907_v0 = vpop.f32.mrf.mxu1  ;;  %v10171_v34 = vld [vmem:[#allocation13_spill] sm:$0xff]  ;;  %v10173_v14 = vld [vmem:[#allocation54_spill] sm:$0xff] }
 0x279   : > { %v4903_v1 = vpop.f32.mrf.mxu0  ;;  %v4512_v6 = vadd.f32 %v6907_v0, %v4112_v35  ;;  %v3834_v49 = vadd.f32 %v10169_v48, %v10168_v56  ;;  %v7143_v4 = vunpack.i.h.bf16 %v9615_v21  ;;  %v4113_v55 = vadd.f32 %v10170_v32, %v3831_v30  ;;  %v10172_v41 = vld [vmem:[#allocation53_spill] sm:$0xff]  ;;  %v10176_v30 = vld [vmem:[#allocation56_spill] sm:$0xff] }
 0x27a   : > { %5474 = vst.msk [vmem:[%s9539_s27 + $0x60] sm:$0xff] %vm5461_vm2, %v5441_v51  ;;  %v5057_v23 = vadd.f32 %v9497_v46, %v5018_v61  ;;  %v5444_v59 = vadd.f32 %v9505_v3, %v5059_v12  ;;  %v5023_v22 = vmul.f32 %v9485_v40, %v4984_v37  ;;  %v4982_v47 = vadd.f32 %v4903_v1, %v4509_v10  ;;  %v4433_v5 = vpop.f32.mrf.mxu1  ;;  %v10174_v51 = vld [vmem:[#allocation6_spill] sm:$0xff]  ;;  %v10175_v12 = vld [vmem:[#allocation55_spill] sm:$0xff] }
 0x27b   : > { %v6941_v45 = vpop.f32.mrf.mxu0  ;;  %v4510_v39 = vadd.f32 %v4433_v5, %v4110_v53  ;;  %v3832_v13 = vadd.f32 %v10172_v41, %v10171_v34  ;;  %v7142_v20 = vunpack.i.l.bf16 %v9615_v21  ;;  %v4116_v10 = vadd.f32 %v10173_v14, %v3834_v49  ;;  %v10179_v49 = vld [vmem:[#allocation58_spill] sm:$0xff] }
 0x27c   : > { %v5442_v52 = vadd.f32 %v9474_v63, %v5057_v23  ;;  %5477 = vst.msk [vmem:[%s9539_s27 + $0x78] sm:$0xff] %vm5461_vm2, %v5444_v59  ;;  %v5062_v3 = vadd.f32 %v9497_v46, %v5023_v22  ;;  %v5021_v2 = vmul.f32 %v9485_v40, %v4982_v47  ;;  %v4985_v57 = vadd.f32 %v6941_v45, %v4512_v6  ;;  %v6910_v27 = vpop.f32.mrf.mxu1  ;;  %v10177_v6 = vld [vmem:[#allocation39_spill] sm:$0xff]  ;;  %v10178_v23 = vld [vmem:[#allocation57_spill] sm:$0xff] }
 0x27d   : > { %v4906_v7 = vpop.f32.mrf.mxu0  ;;  %v4515_v33 = vadd.f32 %v6910_v27, %v4115_v31  ;;  %v3837_v61 = vadd.f32 %v10175_v12, %v10174_v51  ;;  %v7148_v0 = vunpack.i.h.bf16 %v9695_v44  ;;  %v4114_v1 = vadd.f32 %v10176_v30, %v3832_v13  ;;  %v7156_v13 = vpop.permute.xlu1 %7155  ;;  %v10185_v12 = vld [vmem:[#allocation62_spill] sm:$0xff] }
 0x27e   : > { %5475 = vst.msk [vmem:[%s9539_s27 + $0x68] sm:$0xff] %vm5461_vm2, %v5442_v52  ;;  %v5060_v63 = vadd.f32 %v9497_v46, %v5021_v2  ;;  %v5024_v29 = vmul.f32 %v9485_v40, %v4985_v57  ;;  %v5447_v35 = vadd.f32 %v9508_v17, %v5062_v3  ;;  %v4983_v28 = vadd.f32 %v4906_v7, %v4510_v39  ;;  %v4446_v11 = vpop.f32.mrf.mxu1  ;;  %v10180_v39 = vld [vmem:[#allocation26_spill] sm:$0xff]  ;;  %v10181_v52 = vld [vmem:[#allocation59_spill] sm:$0xff]  ;;  %v10182_v7 = vld [vmem:[#allocation60_spill] sm:$0xff]  ;;  %v9737_v51 = vpop.permute.xlu0 %7160 }
 0x27f   : > { %v6944_v37 = vpop.f32.mrf.mxu0  ;;  %v4513_v21 = vadd.f32 %v4446_v11, %v4113_v55  ;;  %v3835_v59 = vadd.f32 %v10178_v23, %v10177_v6  ;;  %v7147_v5 = vunpack.i.l.bf16 %v9695_v44  ;;  %v4119_v45 = vadd.f32 %v10179_v49, %v3837_v61  ;;  %v10189_v23 = vld [vmem:[#allocation27_spill] sm:$0xff] }
 0x280   : > { %v5445_v50 = vadd.f32 %v9514_v42, %v5060_v63  ;;  %v5063_v53 = vadd.f32 %v9497_v46, %v5024_v29  ;;  %5480 = vst.msk [vmem:[%s9539_s27 + $0x90] sm:$0xff] %vm5461_vm2, %v5447_v35  ;;  %v5022_v17 = vmul.f32 %v9485_v40, %v4983_v28  ;;  %v4988_v36 = vadd.f32 %v6944_v37, %v4515_v33  ;;  %v6911_v58 = vpop.f32.mrf.mxu1  ;;  %v10183_v63 = vld [vmem:[#allocation41_spill] sm:$0xff]  ;;  %v10186_v37 = vld [vmem:[#allocation40_spill] sm:$0xff] }
 0x281   : > { %v4919_v22 = vpop.f32.mrf.mxu0  ;;  %v4516_v47 = vadd.f32 %v6911_v58, %v4116_v10  ;;  %v3838_v3 = vadd.f32 %v10181_v52, %v10180_v39  ;;  %v9721_v27 = vsel %vm5364_vm1, %v7152_v26, %v7153_v16  ;;  %v4117_v33 = vadd.f32 %v10182_v7, %v3835_v59  ;;  %v10184_v29 = vld [vmem:[#allocation61_spill] sm:$0xff]  ;;  %v10190_v59 = vld [vmem:[#allocation66_spill] sm:$0xff]  ;;  %v10191_v39 = vld [vmem:[#allocation67_spill] sm:$0xff] }
 0x282   : > { %5478 = vst.msk [vmem:[%s9539_s27 + $0x80] sm:$0xff] %vm5461_vm2, %v5445_v50  ;;  %v5061_v42 = vadd.f32 %v9497_v46, %v5022_v17  ;;  %v5448_v15 = vadd.f32 %v9527_v24, %v5063_v53  ;;  %v5027_v31 = vmul.f32 %v9485_v40, %v4988_v36  ;;  %v4986_v56 = vadd.f32 %v4919_v22, %v4513_v21  ;;  %v4449_v48 = vpop.f32.mrf.mxu1  ;;  %v10187_v21 = vld [vmem:[#allocation64_spill] sm:$0xff] }
 0x283   : > { %v6945_v2 = vpop.f32.mrf.mxu0  ;;  %v4514_v57 = vadd.f32 %v4449_v48, %v4114_v1  ;;  %v3836_v35 = vadd.f32 %v10184_v29, %v10183_v63  ;;  %v5389_v16 = vsel %vm5364_vm1, %v7142_v20, %v7143_v4  ;;  %v4120_v61 = vadd.f32 %v10185_v12, %v3838_v3  ;;  %v10188_v1 = vld [vmem:[#allocation65_spill] sm:$0xff]  ;;  %v10192_v3 = vld [vmem:[#allocation28_spill] sm:$0xff]  ;;  %v10194_v29 = vld [vmem:[#allocation15_spill] sm:$0xff] }
 0x284   : > { %v5446_v32 = vadd.f32 %v9519_v25, %v5061_v42  ;;  %5481 = vst.msk [vmem:[%s9539_s27 + $0x98] sm:$0xff] %vm5461_vm2, %v5448_v15  ;;  %v5066_v24 = vadd.f32 %v9497_v46, %v5027_v31  ;;  %v5025_v55 = vmul.f32 %v9485_v40, %v4986_v56  ;;  %v4989_v34 = vadd.f32 %v6945_v2, %v4516_v47  ;;  %v6914_v41 = vpop.f32.mrf.mxu1  ;;  %v10193_v2 = vld [vmem:[#allocation68_spill] sm:$0xff] }
 0x285   : > { %v4922_v9 = vpop.f32.mrf.mxu0  ;;  %v4519_v28 = vadd.f32 %v6914_v41, %v4119_v45  ;;  %v3841_v50 = vadd.f32 %v10187_v21, %v10186_v37  ;;  %v7158_v20 = vunpack.i.h.bf16 %v7156_v13  ;;  %v4118_v6 = vadd.f32 %v10188_v1, %v3836_v35  ;;  %v9755_v45 = vpop.permute.xlu1 %7165 }
 0x286   : > { %5479 = vst.msk [vmem:[%s9539_s27 + $0x88] sm:$0xff] %vm5461_vm2, %v5446_v32  ;;  %v5064_v25 = vadd.f32 %v9497_v46, %v5025_v55  ;;  %v5028_v26 = vmul.f32 %v9485_v40, %v4989_v34  ;;  %v5451_v11 = vadd.f32 %v9597_v19, %v5066_v24  ;;  %v4987_v14 = vadd.f32 %v4922_v9, %v4514_v57  ;;  %v4462_v10 = vpop.f32.mrf.mxu1 }
 0x287   : > { %v6948_v53 = vpop.f32.mrf.mxu0  ;;  %v4517_v4 = vadd.f32 %v4462_v10, %v4117_v33  ;;  %v3839_v22 = vadd.f32 %v10190_v59, %v10189_v23  ;;  %v7157_v15 = vunpack.i.l.bf16 %v7156_v13  ;;  %v4123_v52 = vadd.f32 %v10191_v39, %v3841_v50  ;;  %v7171_v33 = vpop.permute.xlu0 %7170 }
 0x288   : > { %v5449_v17 = vadd.f32 %v9608_v38, %v5064_v25  ;;  %v5067_v36 = vadd.f32 %v9497_v46, %v5028_v26  ;;  %5484 = vst.msk [vmem:[%s9539_s27 + $0xb0] sm:$0xff] %vm5461_vm2, %v5451_v11  ;;  %v5026_v19 = vmul.f32 %v9485_v40, %v4987_v14  ;;  %v4992_v58 = vadd.f32 %v6948_v53, %v4519_v28  ;;  %v6915_v30 = vpop.f32.mrf.mxu1 }
 0x289   : > { %v4935_v47 = vpop.f32.mrf.mxu0  ;;  %v4520_v42 = vadd.f32 %v6915_v30, %v4120_v61  ;;  %v3842_v57 = vadd.f32 %v10193_v2, %v10192_v3  ;;  %v5390_v32 = vsel %vm5364_vm1, %v7147_v5, %v7148_v0  ;;  %v4121_v63 = vadd.f32 %v9425_v43, %v3839_v22  ;;  %v7176_v53 = vpop.permute.xlu1 %7175 }
 0x28a   : > { %5482 = vst.msk [vmem:[%s9539_s27 + $0xa0] sm:$0xff] %vm5461_vm2, %v5449_v17  ;;  %v5065_v38 = vadd.f32 %v9497_v46, %v5026_v19  ;;  %v5452_v31 = vadd.f32 %v9652_v62, %v5067_v36  ;;  %v5031_v56 = vmul.f32 %v9485_v40, %v4992_v58  ;;  %v4990_v48 = vadd.f32 %v4935_v47, %v4517_v4  ;;  %v4465_v49 = vpop.f32.mrf.mxu1 }
 0x28b   : > { %v6949_v24 = vpop.f32.mrf.mxu0  ;;  %v4518_v55 = vadd.f32 %v4465_v49, %v4118_v6  ;;  %v3840_v44 = vadd.f32 %v9436_v60, %v10194_v29  ;;  %v5392_v5 = vsel %vm5364_vm1, %v7157_v15, %v7158_v20  ;;  %v4124_v43 = vadd.f32 %v9449_v18, %v3842_v57 }
 0x28c   : > { %v5450_v62 = vadd.f32 %v9639_v54, %v5065_v38  ;;  %5485 = vst.msk [vmem:[%s9539_s27 + $0xb8] sm:$0xff] %vm5461_vm2, %v5452_v31  ;;  %v5070_v34 = vadd.f32 %v9497_v46, %v5031_v56  ;;  %v5029_v41 = vmul.f32 %v9485_v40, %v4990_v48  ;;  %v4993_v13 = vadd.f32 %v6949_v24, %v4520_v42  ;;  %v6918_v7 = vpop.f32.mrf.mxu1 }
 0x28d   : > { %v4938_v35 = vpop.f32.mrf.mxu0  ;;  %v4523_v0 = vadd.f32 %v6918_v7, %v4123_v52  ;;  %v7173_v14 = vunpack.i.h.bf16 %v7171_v33  ;;  %v7172_v10 = vunpack.i.l.bf16 %v7171_v33  ;;  %v7163_v4 = vunpack.i.h.bf16 %v9737_v51 }
 0x28e   : > { %5483 = vst.msk [vmem:[%s9539_s27 + $0xa8] sm:$0xff] %vm5461_vm2, %v5450_v62  ;;  %v5068_v54 = vadd.f32 %v9497_v46, %v5029_v41  ;;  %v5032_v9 = vmul.f32 %v9485_v40, %v4993_v13  ;;  %v5455_v28 = vadd.f32 %v9721_v27, %v5070_v34  ;;  %v4991_v25 = vadd.f32 %v4938_v35, %v4518_v55  ;;  %v4478_v26 = vpop.f32.mrf.mxu1 }
 0x28f   : > { %v6952_v11 = vpop.f32.mrf.mxu0  ;;  %v4521_v60 = vadd.f32 %v4478_v26, %v4121_v63  ;;  %v4122_v27 = vadd.f32 %v9470_v8, %v3840_v44  ;;  %v7162_v18 = vunpack.i.l.bf16 %v9737_v51  ;;  %v5395_v8 = vsel %vm5364_vm1, %v7172_v10, %v7173_v14 }
 0x290   : > { %v5453_v12 = vadd.f32 %v5389_v16, %v5068_v54  ;;  %v5071_v61 = vadd.f32 %v9497_v46, %v5032_v9  ;;  %5488 = vst.msk [vmem:[%s9539_s27 + $0xd0] sm:$0xff] %vm5461_vm2, %v5455_v28  ;;  %v5030_v37 = vmul.f32 %v9485_v40, %v4991_v25  ;;  %v4996_v21 = vadd.f32 %v6952_v11, %v4523_v0  ;;  %v6919_v50 = vpop.f32.mrf.mxu1 }
 0x291   : > { %v4951_v20 = vpop.f32.mrf.mxu0  ;;  %v4524_v17 = vadd.f32 %v6919_v50, %v4124_v43  ;;  %v7178_v23 = vunpack.i.h.bf16 %v7176_v53  ;;  %v7177_v59 = vunpack.i.l.bf16 %v7176_v53  ;;  %v5393_v15 = vsel %vm5364_vm1, %v7162_v18, %v7163_v4 }
 0x292   : > { %5486 = vst.msk [vmem:[%s9539_s27 + $0xc0] sm:$0xff] %vm5461_vm2, %v5453_v12  ;;  %v5069_v16 = vadd.f32 %v9497_v46, %v5030_v37  ;;  %v5456_v36 = vadd.f32 %v5392_v5, %v5071_v61  ;;  %v5035_v19 = vmul.f32 %v9485_v40, %v4996_v21  ;;  %v4994_v58 = vadd.f32 %v4951_v20, %v4521_v60  ;;  %v4481_v30 = vpop.f32.mrf.mxu1 }
 0x293   : > { %v6953_v1 = vpop.f32.mrf.mxu0  ;;  %v4522_v6 = vadd.f32 %v4481_v30, %v4122_v27  ;;  %v7168_v39 = vunpack.i.h.bf16 %v9755_v45  ;;  %v7167_v52 = vunpack.i.l.bf16 %v9755_v45  ;;  %v5396_v3 = vsel %vm5364_vm1, %v7177_v59, %v7178_v23 }
 0x294   : > { %v5454_v22 = vadd.f32 %v5390_v32, %v5069_v16  ;;  %5489 = vst.msk [vmem:[%s9539_s27 + $0xd8] sm:$0xff] %vm5461_vm2, %v5456_v36  ;;  %v5074_v51 = vadd.f32 %v9497_v46, %v5035_v19  ;;  %v5033_v47 = vmul.f32 %v9485_v40, %v4994_v58  ;;  %v4997_v42 = vadd.f32 %v6953_v1, %v4524_v17 }
 0x295   : > { %v4954_v38 = vpop.f32.mrf.mxu0  ;;  %v5394_v45 = vsel %vm5364_vm1, %v7167_v52, %v7168_v39 }
 0x296   : > { %5487 = vst.msk [vmem:[%s9539_s27 + $0xc8] sm:$0xff] %vm5461_vm2, %v5454_v22  ;;  %v5072_v31 = vadd.f32 %v9497_v46, %v5033_v47  ;;  %v5036_v56 = vmul.f32 %v9485_v40, %v4997_v42  ;;  %v5459_v48 = vadd.f32 %v5395_v8, %v5074_v51  ;;  %v4995_v49 = vadd.f32 %v4954_v38, %v4522_v6 }
 0x298   : > { %v5457_v2 = vadd.f32 %v5393_v15, %v5072_v31  ;;  %v5075_v57 = vadd.f32 %v9497_v46, %v5036_v56  ;;  %5492 = vst.msk [vmem:[%s9539_s27 + $0xf0] sm:$0xff] %vm5461_vm2, %v5459_v48  ;;  %v5034_v32 = vmul.f32 %v9485_v40, %v4995_v49 }
 0x29a   : > { %5490 = vst.msk [vmem:[%s9539_s27 + $0xe0] sm:$0xff] %vm5461_vm2, %v5457_v2  ;;  %v5073_v24 = vadd.f32 %v9497_v46, %v5034_v32  ;;  %v5460_v55 = vadd.f32 %v5396_v3, %v5075_v57 }
 0x29c   : > { %v5458_v40 = vadd.f32 %v5394_v45, %v5073_v24  ;;  %5493 = vst.msk [vmem:[%s9539_s27 + $0xf8] sm:$0xff] %vm5461_vm2, %v5460_v55 }
 0x29e   : > { %5491 = vst.msk [vmem:[%s9539_s27 + $0xe8] sm:$0xff] %vm5461_vm2, %v5458_v40 }
 0x29f   : > { %7381 = shalt.err (!%p7378_p5)
}
 0x2a0   : > { %s7382_s14 = scalar_lea.hbm %s9815_s10, 4096  ;;  %s7386_s24 = scalar_lea.hbm %s9875_s5, 8192 }
 0x2a1   : > { %p7383_p6 = scmp.ne.s32.totalorder %s9815_s10, %s7382_s14  ;;  %p7387_p10 = scmp.lt.s32.totalorder %s9815_s10, %s9875_s5 }
 0x2a2   : > { %p7388_p11 = scmp.lt.s32.totalorder %s7386_s24, %s7382_s14 }
 0x2a3   : > { %p7384_p7 = pnand %p7383_p6, %p7524_p4 }
 0x2a4   : > { %p7389_p12 = por %p7388_p11, %p7387_p10 }
 0x2a5   : > { %p7385_p9 = pneg %p7384_p7 }
 0x2a7   : > { %p7390_p13 = pnand %p7389_p12, %p7385_p9 }
 0x2a9   : > { %7393 = shalt.err (!%p7390_p13)
}
 0x2aa   : > { %s7452_s29 = smov 128   ;;  %s7453_s8 = smov 8  }
 0x2ab   : > { %6957 = dma.vmem_to_hbm [thread:$0]  (%p7524_p4), %s9817_s7, 4096, %s9815_s10, %s9825_s21, %s7452_s29, %s7452_s29, %s7453_s8  }
 0x2ac PF: > { %p6963_p0 = scmp.ge.s32.totalorder %s7444_s23, 2  ;;  %s5525_s9 = sand.u32 1, %s7424_s18  }
 0x2ad   : > { %s5526_s11 = scalar_lea.sflag [#allocation3], %s5525_s9 }
 0x2ae   : > { %p6960_p1 = pnand %p6963_p0, %p7531_p8 }
 0x2b0   : > { %p6961_p2 = pneg %p6960_p1 }
 0x2b2   : > { %7419 = dma.done.wait (%p6961_p2), %s5526_s11, 4096  }
 0x2b3   : > { %7421 = vsyncadd (%p6961_p2), %s5526_s11, 4294963200  ;;  %s18_s23 = sadd.s32 1, %s7444_s23   ;;  %s10195_s18 = smov %s7428_s19 }
 0x2b4   : > { %p15_p3 = scmp.ge.s32.totalorder %s18_s23, 4   ;;  %s10196_s19 = smov %s7432_s20 }
 0x2b5   : > { %s10197_s20 = smov %s7537_s6  ;;  %s10198_s21 = smov %s7440_s22 }
 0x2b6   : > { %s10199_s22 = smov %s10201_s26  ;;  %17 = sbr.rel (!%p15_p3) target bundleno = 4 (0x4), region = 95 }
 0x2bb   :  { %5531 = vsyncpa [#allocation3], 1 }
 0x2bc   :  { %5533 = vsyncpa [#allocation3 + $0x1], 1 }

</bundles_post_ra>
